<compile_context>
chip_gen: v7x
topology: tpu7x:2x2x1
jax: 0.10.0
libtpu: 0.0.40
codegen_flags: <defaults>
</compile_context>

<pallas_src>
import math

import jax
import jax.numpy as jnp
from jax.experimental import pallas as pl
from jax.experimental.pallas import tpu as pltpu

LANE = 128                              # feature dims zero-padded to 128 lanes
DEF_TM = 512                            # node-row tile (tiled path)
DEF_TK = 512                            # src-node reduction tile (tiled path)
Y_RESIDENT_BYTES = 8 * 1024 * 1024      # keep Y = X @ W resident below this


def _round_up(x, m):
    return (x + m - 1) // m * m


def _vmem_limit_bytes():
    """~70% of the physical VMEM of the chip we are actually running on."""
    cap = 64 * 1024 * 1024              # conservative default (v7x per-TC VMEM)
    try:
        info = pltpu.get_tpu_info()
        cap = int(getattr(info, "vmem_capacity_bytes", cap)) or cap
    except Exception:
        pass
    return int(cap * 0.7)


# --------------------------------------------------------------------------
# Fused path: A + activations resident in VMEM, both layers in one call.
# --------------------------------------------------------------------------
def _gin_fused_kernel(a_ref, x_ref, w1_ref, b1_ref, w2_ref, b2_ref,
                      out_ref, hid_ref):
    a = a_ref[...]                                           # (N, N) bf16
    # Layer 1:  hid = (A + I) @ (X @ W1) + b1
    y1 = jnp.dot(x_ref[...], w1_ref[...], preferred_element_type=jnp.float32)
    hid = jnp.dot(a, y1.astype(jnp.bfloat16),
                  preferred_element_type=jnp.float32) + b1_ref[...]
    hid_ref[...] = hid.astype(hid_ref.dtype)
    # Layer 2:  out = (A + I) @ (hid @ W2) + b2
    y2 = jnp.dot(hid.astype(jnp.bfloat16), w2_ref[...],
                 preferred_element_type=jnp.float32)
    out_ref[...] = (jnp.dot(a, y2.astype(jnp.bfloat16),
                            preferred_element_type=jnp.float32)
                    + b2_ref[...]).astype(out_ref.dtype)


def _gin_fused(adj_bf16, x_p, w1_p, b1_p, w2_p, b2_p, *, vmem_limit):
    n_pad = adj_bf16.shape[0]
    f_in, f_hid = w1_p.shape
    f_out = w2_p.shape[1]

    flops = (2 * n_pad * (f_in * f_hid + f_hid * f_out)
             + 2 * n_pad * n_pad * (f_hid + f_out))
    bytes_accessed = (n_pad * n_pad * 2 + n_pad * f_in * 2
                      + (f_in * f_hid + f_hid * f_out) * 2
                      + n_pad * (f_hid + f_out) * 4 + (f_hid + f_out) * 4)

    vspec = pl.BlockSpec(memory_space=pltpu.MemorySpace.VMEM)
    out, hid = pl.pallas_call(
        _gin_fused_kernel,
        out_shape=(jax.ShapeDtypeStruct((n_pad, f_out), jnp.float32),
                   jax.ShapeDtypeStruct((n_pad, f_hid), jnp.float32)),
        in_specs=[vspec] * 6,
        out_specs=(vspec, vspec),
        compiler_params=pltpu.CompilerParams(vmem_limit_bytes=vmem_limit),
        cost_estimate=pl.CostEstimate(flops=flops, transcendentals=0,
                                      bytes_accessed=bytes_accessed),
    )(adj_bf16, x_p.astype(jnp.bfloat16), w1_p.astype(jnp.bfloat16), b1_p,
      w2_p.astype(jnp.bfloat16), b2_p)
    return out, hid


# --------------------------------------------------------------------------
# Tiled path: out = (A + I) @ Y + b, A streamed in (tm, tk) bf16 tiles.
# --------------------------------------------------------------------------
def _make_agg_kernel(tk, y_resident):
    def kernel(a_ref, y_ref, b_ref, o_ref, acc_ref):
        k = pl.program_id(1)

        @pl.when(k == 0)
        def _():
            acc_ref[...] = jnp.zeros_like(acc_ref)

        if y_resident:
            off = pl.multiple_of(k * tk, tk)
            y_blk = y_ref[pl.ds(off, tk), :]         # slice the resident Y
        else:
            y_blk = y_ref[...]                       # streamed (tk, f_out) block

        acc_ref[...] += jnp.dot(a_ref[...], y_blk,
                                preferred_element_type=jnp.float32)

        @pl.when(k == pl.num_programs(1) - 1)
        def _():
            o_ref[...] = (acc_ref[...] + b_ref[...]).astype(o_ref.dtype)

    return kernel


def _gin_aggregate(adj_bf16, y_bf16, b_f32, out_dtype, *, tm, tk, vmem_limit):
    n_pad = adj_bf16.shape[0]
    f_out = y_bf16.shape[1]
    assert n_pad % tm == 0 and n_pad % tk == 0

    y_resident = n_pad * f_out * 2 <= min(Y_RESIDENT_BYTES, vmem_limit // 4)
    grid = (n_pad // tm, n_pad // tk)

    if y_resident:
        y_spec = pl.BlockSpec((n_pad, f_out), lambda i, k: (0, 0))  # resident
    else:
        y_spec = pl.BlockSpec((tk, f_out), lambda i, k: (k, 0))     # streamed

    flops = 2 * n_pad * n_pad * f_out
    y_reads = 1 if y_resident else grid[0]
    bytes_accessed = (n_pad * n_pad * 2
                      + y_reads * n_pad * f_out * 2
                      + f_out * 4
                      + n_pad * f_out * jnp.dtype(out_dtype).itemsize)

    return pl.pallas_call(
        _make_agg_kernel(tk, y_resident),
        out_shape=jax.ShapeDtypeStruct((n_pad, f_out), out_dtype),
        grid_spec=pltpu.PrefetchScalarGridSpec(
            num_scalar_prefetch=0,
            grid=grid,
            in_specs=[
                pl.BlockSpec((tm, tk), lambda i, k: (i, k)),    # A block
                y_spec,                                         # projected feats
                pl.BlockSpec((1, f_out), lambda i, k: (0, 0)),  # bias (resident)
            ],
            out_specs=pl.BlockSpec((tm, f_out), lambda i, k: (i, 0)),
            scratch_shapes=[pltpu.VMEM((tm, f_out), jnp.float32)],
        ),
        compiler_params=pltpu.CompilerParams(
            dimension_semantics=("parallel", "arbitrary"),
            vmem_limit_bytes=vmem_limit,
        ),
        cost_estimate=pl.CostEstimate(flops=flops, transcendentals=0,
                                      bytes_accessed=bytes_accessed),
    )(adj_bf16, y_bf16, b_f32)


# --------------------------------------------------------------------------
# Forward wrapper.
# --------------------------------------------------------------------------
def gin_forward(x, edge_index, w1, b1, w2, b2, *,
                tm=DEF_TM, tk=DEF_TK, force_tiled=False):
    """2-layer GIN forward (eps = 0).  Returns (out, hid) like the torch module.

    x: (N, in_dim) f32; edge_index: (2, E) int32.
    w1: (in_dim, hid), b1: (1, hid), w2: (hid, out), b2: (1, out).
    """
    n, in_dim = x.shape
    hid_dim = w1.shape[1]
    out_dim = w2.shape[1]
    vmem_limit = _vmem_limit_bytes()

    # Feature dims padded to 128 lanes -> lane-dense loads/stores (no vst.msk).
    f_in = _round_up(in_dim, LANE)
    f_hid = _round_up(hid_dim, LANE)
    f_out = _round_up(out_dim, LANE)

    # Fused if the whole problem (A resident, read once for both layers) fits
    # comfortably in VMEM on this generation; else the tiled per-layer path.
    n128 = _round_up(n, LANE)
    fused_bytes = (n128 * n128 * 2                          # A (bf16)
                   + n128 * (f_in + f_hid + f_out) * 2      # X, y1, y2 (bf16)
                   + 2 * n128 * (f_hid + f_out) * 4         # hid/out f32 + slack
                   + (f_in * f_hid + f_hid * f_out) * 2)    # weights
    use_fused = (not force_tiled) and fused_bytes <= vmem_limit // 2

    if use_fused:
        n_pad = n128
    else:
        # Keep >= 2 row tiles so the "parallel" row axis can shard across both
        # TensorCores on v7x megacore.
        n_pad = _round_up(n, math.lcm(tm, tk))
        while tm > LANE and n_pad // tm < 2:
            tm //= 2
            n_pad = _round_up(n, math.lcm(tm, tk))

    # Zero-padded, lane-aligned parameters / features.
    x_p = jnp.zeros((n_pad, f_in), jnp.float32).at[:n, :in_dim].set(x)
    w1_p = jnp.zeros((f_in, f_hid), jnp.float32).at[:in_dim, :hid_dim].set(w1)
    b1_p = jnp.zeros((1, f_hid), jnp.float32).at[:, :hid_dim].set(b1)
    w2_p = jnp.zeros((f_hid, f_out), jnp.float32).at[:hid_dim, :out_dim].set(w2)
    b2_p = jnp.zeros((1, f_out), jnp.float32).at[:, :out_dim].set(b2)

    # Dense (A + I) scatter-built directly in bf16 (edge multiplicities are
    # small integers -> exact; avoids an f32 N^2 intermediate + cast pass).
    # TODO(synk): for large sparse graphs replace this dense O(N^2) adjacency
    # with a block-sparse / CSR formulation (PrefetchScalarGridSpec with a
    # nonzero-block map) so only nonzero A tiles are DMA'd and matmul'd.
    src, dst = edge_index[0], edge_index[1]
    adj = jnp.zeros((n_pad, n_pad), jnp.bfloat16).at[dst, src].add(
        jnp.bfloat16(1.0))
    diag = jnp.arange(n_pad)
    adj = adj.at[diag, diag].add(jnp.bfloat16(1.0))

    if use_fused:
        out_p, hid_p = _gin_fused(adj, x_p, w1_p, b1_p, w2_p, b2_p,
                                  vmem_limit=vmem_limit)
        return out_p[:n, :out_dim], hid_p[:n, :hid_dim]

    # Tiled path: project first (tiny XLA matmuls), aggregate in Pallas.
    # Layer 1: hid = (A + I) @ (X @ W1) + b1, emitted in bf16 (halves writeback
    # and layer-2 activation reads).
    y1 = jnp.dot(x_p, w1_p,
                 preferred_element_type=jnp.float32).astype(jnp.bfloat16)
    hid_p = _gin_aggregate(adj, y1, b1_p, jnp.bfloat16,
                           tm=tm, tk=tk, vmem_limit=vmem_limit)
    # Layer 2: out = (A + I) @ (hid @ W2) + b2.
    y2 = jnp.dot(hid_p, w2_p.astype(jnp.bfloat16),
                 preferred_element_type=jnp.float32).astype(jnp.bfloat16)
    out_p = _gin_aggregate(adj, y2, b2_p, jnp.float32,
                           tm=tm, tk=tk, vmem_limit=vmem_limit)

    return out_p[:n, :out_dim], hid_p[:n, :hid_dim].astype(jnp.float32)


def init_linear(key, in_features, out_features):
    """Deterministic nn.Linear-style init (uniform +/- 1/sqrt(fan_in)).
    Returns W already transposed to (in, out) for x @ W, and bias (1, out)."""
    kw, kb = jax.random.split(key)
    bound = 1.0 / jnp.sqrt(jnp.float32(in_features))
    w = jax.random.uniform(kw, (in_features, out_features), jnp.float32,
                           -bound, bound)
    b = jax.random.uniform(kb, (1, out_features), jnp.float32, -bound, bound)
    return w, b


if __name__ == "__main__":
    key = jax.random.PRNGKey(0)
    k_x, k_l1, k_l2 = jax.random.split(key, 3)

    # Small synthetic graph: bidirectional ring.
    N, IN_DIM, HID_DIM, OUT_DIM = 600, 8, 32, 16
    nodes = jnp.arange(N, dtype=jnp.int32)
    nxt = (nodes + 1) % N
    src = jnp.concatenate([nodes, nxt])
    dst = jnp.concatenate([nxt, nodes])
    edge_index = jnp.stack([src, dst], axis=0)               # (2, 2N)

    x = jax.random.normal(k_x, (N, IN_DIM), jnp.float32)
    w1, b1 = init_linear(k_l1, IN_DIM, HID_DIM)
    w2, b2 = init_linear(k_l2, IN_DIM and HID_DIM, OUT_DIM)  # fan_in = HID_DIM

    # Fused path (A resident, default for this size) and tiled path (forced).
    out_f, hid_f = gin_forward(x, edge_index, w1, b1, w2, b2)
    out_t, hid_t = gin_forward(x, edge_index, w1, b1, w2, b2, force_tiled=True)
    jax.block_until_ready((out_f, hid_f, out_t, hid_t))

    # Pure f32 JAX reference of the GINConv semantics.  The kernels run the
    # adjacency / activation matmuls in bf16 on the MXU (f32 accumulation),
    # hence bf16-level tolerances.
    adj_ref = jnp.zeros((N, N), jnp.float32).at[
        edge_index[1], edge_index[0]].add(1.0)
    hid_ref = (x + adj_ref @ x) @ w1 + b1
    out_ref = (hid_ref + adj_ref @ hid_ref) @ w2 + b2

    assert jnp.allclose(hid_f, hid_ref, rtol=5e-2, atol=5e-2), "fused hid mismatch"
    assert jnp.allclose(out_f, out_ref, rtol=5e-2, atol=5e-2), "fused out mismatch"
    assert jnp.allclose(hid_t, hid_ref, rtol=5e-2, atol=5e-2), "tiled hid mismatch"
    assert jnp.allclose(out_t, out_ref, rtol=5e-2, atol=5e-2), "tiled out mismatch"

    print("KERNEL_OK")
</pallas_src>

<mosaic_0001>
module attributes {stable_mosaic.version = 11 : i64} {
  func.func @_gin_fused_kernel(%arg0: memref<640x640xbf16, #tpu.memory_space<vmem>>, %arg1: memref<640x128xbf16, #tpu.memory_space<vmem>>, %arg2: memref<128x128xbf16, #tpu.memory_space<vmem>>, %arg3: memref<1x128xf32, #tpu.memory_space<vmem>>, %arg4: memref<128x128xbf16, #tpu.memory_space<vmem>>, %arg5: memref<1x128xf32, #tpu.memory_space<vmem>>, %arg6: memref<640x128xf32, #tpu.memory_space<vmem>>, %arg7: memref<640x128xf32, #tpu.memory_space<vmem>>) attributes {dimension_semantics = [], scalar_prefetch = 0 : i64, scratch_operands = 0 : i64, tpu.core_type = #tpu.core_type<tc>} {
    %c0 = arith.constant 0 : index
    %c0_0 = arith.constant 0 : index
    %0 = vector.load %arg0[%c0, %c0_0] : memref<640x640xbf16, #tpu.memory_space<vmem>>, vector<640x640xbf16>
    %c0_1 = arith.constant 0 : index
    %c0_2 = arith.constant 0 : index
    %1 = vector.load %arg1[%c0_1, %c0_2] : memref<640x128xbf16, #tpu.memory_space<vmem>>, vector<640x128xbf16>
    %c0_3 = arith.constant 0 : index
    %c0_4 = arith.constant 0 : index
    %2 = vector.load %arg2[%c0_3, %c0_4] : memref<128x128xbf16, #tpu.memory_space<vmem>>, vector<128x128xbf16>
    %cst = arith.constant dense<0.000000e+00> : vector<640x128xf32>
    %3 = tpu.matmul %1, %2, %cst {dimension_numbers = #tpu.dot_dimension_numbers<[1], [0], [0], [1], [0, 0, 1, 1], [], []>} : vector<640x128xbf16>, vector<128x128xbf16>, vector<640x128xf32> -> vector<640x128xf32>
    %4 = arith.truncf %3 : vector<640x128xf32> to vector<640x128xbf16>
    %cst_5 = arith.constant dense<0.000000e+00> : vector<640x128xf32>
    %5 = tpu.matmul %0, %4, %cst_5 {dimension_numbers = #tpu.dot_dimension_numbers<[1], [0], [0], [1], [0, 0, 1, 1], [], []>} : vector<640x640xbf16>, vector<640x128xbf16>, vector<640x128xf32> -> vector<640x128xf32>
    %c0_6 = arith.constant 0 : index
    %c0_7 = arith.constant 0 : index
    %6 = vector.load %arg3[%c0_6, %c0_7] : memref<1x128xf32, #tpu.memory_space<vmem>>, vector<1x128xf32>
    %7 = vector.broadcast %6 : vector<1x128xf32> to vector<640x128xf32>
    %8 = arith.addf %5, %7 : vector<640x128xf32>
    %c0_8 = arith.constant 0 : index
    %c0_9 = arith.constant 0 : index
    %9 = vector.load %arg7[%c0_8, %c0_9] : memref<640x128xf32, #tpu.memory_space<vmem>>, vector<640x128xf32>
    tpu.vector_store %arg7[%c0_8, %c0_9], %8 {strides = array<i32>} : memref<640x128xf32, #tpu.memory_space<vmem>>, vector<640x128xf32>,
    %10 = arith.truncf %8 : vector<640x128xf32> to vector<640x128xbf16>
    %c0_10 = arith.constant 0 : index
    %c0_11 = arith.constant 0 : index
    %11 = vector.load %arg4[%c0_10, %c0_11] : memref<128x128xbf16, #tpu.memory_space<vmem>>, vector<128x128xbf16>
    %cst_12 = arith.constant dense<0.000000e+00> : vector<640x128xf32>
    %12 = tpu.matmul %10, %11, %cst_12 {dimension_numbers = #tpu.dot_dimension_numbers<[1], [0], [0], [1], [0, 0, 1, 1], [], []>} : vector<640x128xbf16>, vector<128x128xbf16>, vector<640x128xf32> -> vector<640x128xf32>
    %13 = arith.truncf %12 : vector<640x128xf32> to vector<640x128xbf16>
    %cst_13 = arith.constant dense<0.000000e+00> : vector<640x128xf32>
    %14 = tpu.matmul %0, %13, %cst_13 {dimension_numbers = #tpu.dot_dimension_numbers<[1], [0], [0], [1], [0, 0, 1, 1], [], []>} : vector<640x640xbf16>, vector<640x128xbf16>, vector<640x128xf32> -> vector<640x128xf32>
    %c0_14 = arith.constant 0 : index
    %c0_15 = arith.constant 0 : index
    %15 = vector.load %arg5[%c0_14, %c0_15] : memref<1x128xf32, #tpu.memory_space<vmem>>, vector<1x128xf32>
    %16 = vector.broadcast %15 : vector<1x128xf32> to vector<640x128xf32>
    %17 = arith.addf %14, %16 : vector<640x128xf32>
    %c0_16 = arith.constant 0 : index
    %c0_17 = arith.constant 0 : index
    %18 = vector.load %arg6[%c0_16, %c0_17] : memref<640x128xf32, #tpu.memory_space<vmem>>, vector<640x128xf32>
    tpu.vector_store %arg6[%c0_16, %c0_17], %17 {strides = array<i32>} : memref<640x128xf32, #tpu.memory_space<vmem>>, vector<640x128xf32>,
    return
  }
}

</mosaic_0001>

<bundles_post_ra>
// kernel: tpu_custom_call.1
= control target key start
LH: loop header
LB: loop body
LE: loop exit
PB: predicated region body
PF: predicated region fallthrough
CT: control target
= control target key end

     0   :  { %13 = vsyncpa [#allocation3], 0  ;;  %s7836_s0 = inlined_call_operand.hbm [shape: bf16[640,640], index: 0, kind: input, shape index: {}]   ;;  %s7837_s1 = inlined_call_operand.hbm [shape: bf16[640,128], index: 1, kind: input, shape index: {}]   ;;  %s7838_s2 = inlined_call_operand.hbm [shape: bf16[128,128], index: 2, kind: input, shape index: {}]   ;;  %s7839_s3 = inlined_call_operand.vmem [shape: f32[1,128], index: 3, kind: input, shape index: {}]   ;;  %s7840_s4 = inlined_call_operand.hbm [shape: bf16[128,128], index: 4, kind: input, shape index: {}]   ;;  %s7841_s5 = inlined_call_operand.vmem [shape: f32[1,128], index: 5, kind: input, shape index: {}]   ;;  %s7842_s6 = inlined_call_operand.hbm [shape: f32[640,128], index: 6, kind: output, shape index: {0}]   ;;  %s7843_s7 = inlined_call_operand.hbm [shape: f32[640,128], index: 7, kind: output, shape index: {1}]  }
   0x1   :  { %14 = vsyncpa [#allocation6], 0 }
   0x2   :  { %15 = vsyncpa [#allocation9], 0 }
   0x3   :  { %16 = vsyncpa [#allocation4], 0 }
   0x4   :  { %17 = vsyncpa [#allocation12], 0  ;;  %s6970_s24 = smov [#allocation5]   ;;  %s6828_s28 = scalar_lea.hbm %s7837_s1, 5120 }
   0x5   :  { %s35_s25 = sshll.u32 %s6970_s24, 4  ;;  %p6829_p0 = scmp.ne.s32.totalorder %s7837_s1, %s6828_s28  ;;  %s36_s25 = int_to_ptr.vmem [resolvable:$true] %s35_s25 }
   0x6   :  { %p6832_p1 = scmp.lt.u32.totalorder %s6828_s28, %s7837_s1 }
   0x8   :  { %p6834_p2 = pnand %p6832_p1, %p6829_p0 }
   0xa   :  { %6837 = shalt.err (!%p6834_p2)
}
   0xb   :  { %s6838_s10 = scalar_lea.vmem %s36_s25, 5120  ;;  %p6843_p4 = scmp.lt.s32.totalorder %s36_s25, %s36_s25 }
   0xc   :  { %p6839_p3 = scmp.ne.s32.totalorder %s36_s25, %s6838_s10  ;;  %p6844_p5 = scmp.lt.s32.totalorder %s6838_s10, %s6838_s10 }
   0xe   :  { %p6845_p6 = por %p6844_p5, %p6843_p4 }
  0x10   :  { %p6846_p7 = pnand %p6845_p6, %p6839_p3 }
  0x12   :  { %6849 = shalt.err (!%p6846_p7)
}
  0x13   :  { %s6971_s11 = smov 64   ;;  %s6972_s12 = smov 4  }
  0x14   :  { %41 = dma.hbm_to_vmem [thread:$0]  %s7837_s1, 5120, %s36_s25, [#allocation6], %s6971_s11, %s6971_s11, %s6972_s12  }
  0x15   :  { %s6973_s15 = smov [#allocation2]   ;;  %s6850_s19 = scalar_lea.hbm %s7836_s0, 25600 }
  0x16   :  { %s23_s16 = sshll.u32 %s6973_s15, 4  ;;  %p6851_p8 = scmp.ne.s32.totalorder %s7836_s0, %s6850_s19  ;;  %s24_s16 = int_to_ptr.vmem [resolvable:$true] %s23_s16 }
  0x17   :  { %p6854_p9 = scmp.lt.u32.totalorder %s6850_s19, %s7836_s0 }
  0x19   :  { %p6856_p10 = pnand %p6854_p9, %p6851_p8 }
  0x1b   :  { %6859 = shalt.err (!%p6856_p10)
}
  0x1c   :  { %s6860_s24 = scalar_lea.vmem %s24_s16, 25600  ;;  %p6865_p12 = scmp.lt.s32.totalorder %s24_s16, %s24_s16 }
  0x1d   :  { %p6861_p11 = scmp.ne.s32.totalorder %s24_s16, %s6860_s24  ;;  %p6866_p13 = scmp.lt.s32.totalorder %s6860_s24, %s6860_s24 }
  0x1f   :  { %p6867_p0 = por %p6866_p13, %p6865_p12 }
  0x21   :  { %p6868_p1 = pnand %p6867_p0, %p6861_p11 }
  0x23   :  { %6871 = shalt.err (!%p6868_p1)
}
  0x24   :  { %s6974_s1 = smov 320   ;;  %s6975_s25 = smov 20  }
  0x25   :  { %29 = dma.hbm_to_vmem [thread:$0]  %s7836_s0, 25600, %s24_s16, [#allocation3], %s6974_s1, %s6974_s1, %s6975_s25  }
  0x26   :  { %s6976_s28 = smov [#allocation7]   ;;  %s6977_s30 = smov [#allocation8]  }
  0x27   :  { %s47_s29 = sshll.u32 %s6976_s28, 4  ;;  %s61_s8 = sshll.u32 %s6977_s30, 4  ;;  %s48_s29 = int_to_ptr.vmem [resolvable:$true] %s47_s29  ;;  %s7050_s8 = int_to_ptr.vmem [resolvable:$true] %s61_s8 }
  0x28   :  { %s6872_s13 = scalar_lea.hbm %s7838_s2, 1024 }
  0x29   :  { %p6873_p2 = scmp.ne.s32.totalorder %s7838_s2, %s6872_s13  ;;  %p6876_p3 = scmp.lt.u32.totalorder %s6872_s13, %s7838_s2 }
  0x2b   :  { %p6878_p4 = pnand %p6876_p3, %p6873_p2 }
  0x2d   :  { %6881 = shalt.err (!%p6878_p4)
}
  0x2e   :  { %s6882_s0 = scalar_lea.vmem %s48_s29, 1024  ;;  %p6887_p6 = scmp.lt.s32.totalorder %s48_s29, %s48_s29 }
  0x2f   :  { %p6883_p5 = scmp.ne.s32.totalorder %s48_s29, %s6882_s0  ;;  %p6888_p7 = scmp.lt.s32.totalorder %s6882_s0, %s6882_s0 }
  0x31   :  { %p6889_p8 = por %p6888_p7, %p6887_p6 }
  0x33   :  { %p6890_p9 = pnand %p6889_p8, %p6883_p5 }
  0x35   :  { %6893 = shalt.err (!%p6890_p9)
}
  0x36   :  { %53 = dma.hbm_to_vmem [thread:$0]  %s7838_s2, 1024, %s48_s29, [#allocation6], %s6971_s11, %s6971_s11, %s6972_s12  }
  0x37   :  { %s6894_s22 = scalar_lea.hbm %s7840_s4, 1024 }
  0x38   :  { %p6895_p10 = scmp.ne.s32.totalorder %s7840_s4, %s6894_s22  ;;  %p6898_p11 = scmp.lt.u32.totalorder %s6894_s22, %s7840_s4 }
  0x3a   :  { %p6900_p12 = pnand %p6898_p11, %p6895_p10 }
  0x3c   :  { %6903 = shalt.err (!%p6900_p12)
}
  0x3d   :  { %s6904_s26 = scalar_lea.vmem %s7050_s8, 1024  ;;  %p6909_p0 = scmp.lt.s32.totalorder %s7050_s8, %s7050_s8 }
  0x3e   :  { %p6905_p13 = scmp.ne.s32.totalorder %s7050_s8, %s6904_s26  ;;  %p6910_p1 = scmp.lt.s32.totalorder %s6904_s26, %s6904_s26 }
  0x40   :  { %p6911_p2 = por %p6910_p1, %p6909_p0 }
  0x42   :  { %p6912_p3 = pnand %p6911_p2, %p6905_p13 }
  0x44   :  { %6915 = shalt.err (!%p6912_p3)
}
  0x45   :  { %67 = dma.hbm_to_vmem [thread:$0]  %s7840_s4, 1024, %s7050_s8, [#allocation9], %s6971_s11, %s6971_s11, %s6972_s12  }
  0x46   :  { %6960 = dma.done.wait [#allocation3], 25600  }
  0x47   :  { %6961 = vsyncadd [#allocation3], 4294941696 }
  0x48   :  { %6962 = dma.done.wait [#allocation6], 6144  }
  0x49   :  { %6963 = vsyncadd [#allocation6], 4294961152 }
  0x4a   :  { %6964 = dma.done.wait [#allocation9], 1024  }
  0x4b   :  { %6965 = vsyncadd [#allocation9], 4294966272  ;;  %v6291_v0 = vld [vmem:[#allocation7] sm:$0xff]   ;;  %v6292_v1 = vld [vmem:[#allocation7 + $0x8] sm:$0xff]   ;;  %v7844_v33 = vmov 0  }
  0x4c   :  { %5414 = vmatprep.subr.bf16.mxu1 %v6291_v0  ;;  %v6293_v2 = vld [vmem:[#allocation7 + $0x10] sm:$0xff]   ;;  %v6294_v3 = vld [vmem:[#allocation7 + $0x18] sm:$0xff]   ;;  %v6299_v4 = vld [vmem:[#allocation5] sm:$0xff]  }
  0x4d   :  { %5415 = vmatpush3.bf16.msra.mxu1 %v6291_v0  ;;  %5430 = vmatprep.mubr.bf16.mxu1 %v6299_v4  ;;  %v6295_v5 = vld [vmem:[#allocation7 + $0x20] sm:$0xff]   ;;  %v6296_v6 = vld [vmem:[#allocation7 + $0x28] sm:$0xff]   ;;  %v6297_v7 = vld [vmem:[#allocation7 + $0x30] sm:$0xff]  }
  0x4e   :  { %5416 = vmatprep.subr.bf16.mxu1 %v6292_v1  ;;  %v6298_v8 = vld [vmem:[#allocation7 + $0x38] sm:$0xff]   ;;  %v6300_v9 = vld [vmem:[#allocation5 + $0x8] sm:$0xff]   ;;  %v6301_v10 = vld [vmem:[#allocation5 + $0x10] sm:$0xff]  }
  0x4f   :  { %v6302_v11 = vld [vmem:[#allocation5 + $0x18] sm:$0xff]   ;;  %v6303_v12 = vld [vmem:[#allocation5 + $0x20] sm:$0xff]   ;;  %v6304_v13 = vld [vmem:[#allocation5 + $0x28] sm:$0xff]  }
  0x50   :  { %v6305_v14 = vld [vmem:[#allocation5 + $0x30] sm:$0xff]   ;;  %v6306_v15 = vld [vmem:[#allocation5 + $0x38] sm:$0xff]   ;;  %v6307_v16 = vld [vmem:[#allocation5 + $0x40] sm:$0xff]  }
  0x51   :  { %5417 = vmatpush3.bf16.msra.mxu1 %v6292_v1  ;;  %v6308_v17 = vld [vmem:[#allocation5 + $0x48] sm:$0xff]   ;;  %v6309_v18 = vld [vmem:[#allocation5 + $0x50] sm:$0xff]   ;;  %v6310_v19 = vld [vmem:[#allocation5 + $0x58] sm:$0xff]  }
  0x52   :  { %5418 = vmatprep.subr.bf16.mxu1 %v6293_v2  ;;  %v6311_v20 = vld [vmem:[#allocation5 + $0x60] sm:$0xff]   ;;  %v6312_v21 = vld [vmem:[#allocation5 + $0x68] sm:$0xff]   ;;  %v6313_v22 = vld [vmem:[#allocation5 + $0x70] sm:$0xff]  }
  0x53   :  { %v6314_v23 = vld [vmem:[#allocation5 + $0x78] sm:$0xff]   ;;  %v6315_v24 = vld [vmem:[#allocation5 + $0x80] sm:$0xff]   ;;  %v6316_v25 = vld [vmem:[#allocation5 + $0x88] sm:$0xff]  }
  0x54   :  { %v6317_v26 = vld [vmem:[#allocation5 + $0x90] sm:$0xff]   ;;  %v6318_v27 = vld [vmem:[#allocation5 + $0x98] sm:$0xff]   ;;  %v6319_v28 = vld [vmem:[#allocation5 + $0xa0] sm:$0xff]  }
  0x55   :  { %5419 = vmatpush3.bf16.msra.mxu1 %v6293_v2  ;;  %v6320_v29 = vld [vmem:[#allocation5 + $0xa8] sm:$0xff]   ;;  %v6321_v30 = vld [vmem:[#allocation5 + $0xb0] sm:$0xff]   ;;  %v6322_v31 = vld [vmem:[#allocation5 + $0xb8] sm:$0xff]  }
  0x56   :  { %5420 = vmatprep.subr.bf16.mxu1 %v6294_v3  ;;  %v6323_v32 = vld [vmem:[#allocation5 + $0xc0] sm:$0xff]   ;;  %v6324_v34 = vld [vmem:[#allocation5 + $0xc8] sm:$0xff]   ;;  %v6325_v35 = vld [vmem:[#allocation5 + $0xd0] sm:$0xff]  }
  0x57   :  { %v6326_v36 = vld [vmem:[#allocation5 + $0xd8] sm:$0xff]   ;;  %v6327_v37 = vld [vmem:[#allocation5 + $0xe0] sm:$0xff]   ;;  %v6328_v38 = vld [vmem:[#allocation5 + $0xe8] sm:$0xff]  }
  0x58   :  { %v6329_v39 = vld [vmem:[#allocation5 + $0xf0] sm:$0xff]   ;;  %v6330_v40 = vld [vmem:[#allocation5 + $0xf8] sm:$0xff]   ;;  %v6331_v41 = vld [vmem:[#allocation5 + $0x100] sm:$0xff]  }
  0x59   :  { %5421 = vmatpush3.bf16.msra.mxu1 %v6294_v3  ;;  %v6332_v42 = vld [vmem:[#allocation5 + $0x108] sm:$0xff]   ;;  %v6333_v43 = vld [vmem:[#allocation5 + $0x110] sm:$0xff]   ;;  %v6334_v44 = vld [vmem:[#allocation5 + $0x118] sm:$0xff]  }
  0x5a   :  { %5422 = vmatprep.subr.bf16.mxu1 %v6295_v5  ;;  %v6335_v45 = vld [vmem:[#allocation5 + $0x120] sm:$0xff]   ;;  %v6336_v46 = vld [vmem:[#allocation5 + $0x128] sm:$0xff]   ;;  %v6337_v47 = vld [vmem:[#allocation5 + $0x130] sm:$0xff]  }
  0x5b   :  { %v6338_v48 = vld [vmem:[#allocation5 + $0x138] sm:$0xff]  }
  0x5c   :  { %v6341_v49 = vld [vmem:[#allocation2 + $0x4] ss:$20 sps:$4 sm:$0xff]  }
  0x5d   :  { %5423 = vmatpush3.bf16.msra.mxu1 %v6295_v5 }
  0x5e   :  { %5424 = vmatprep.subr.bf16.mxu1 %v6296_v6 }
  0x61   :  { %5425 = vmatpush3.bf16.msra.mxu1 %v6296_v6 }
  0x62   :  { %5426 = vmatprep.subr.bf16.mxu1 %v6297_v7 }
  0x65   :  { %5427 = vmatpush3.bf16.msra.mxu1 %v6297_v7 }
  0x66   :  { %5428 = vmatprep.subr.bf16.mxu1 %v6298_v8 }
  0x69   :  { %5429 = vmatpush3.bf16.msra.mxu1 %v6298_v8 }
  0x6a   :  { %2147 = vmatprep.subr.bf16.mxu1 %v7844_v33 }
  0x6c   :  { %5431 = vmatmul.mubr.bf16.vlgmr.msra.gmra.mrb[0].mxu1 %v6300_v9 }
  0x6d   :  { %5434 = vmatprep.mubr.bf16.mxu1 %v6301_v10 }
  0x74   :  { %5435 = vmatmul.mubr.bf16.gmra.mrb[4].mxu1 %v6302_v11 }
  0x75   :  { %5438 = vmatprep.mubr.bf16.mxu1 %v6303_v12 }
  0x7c   :  { %5439 = vmatmul.mubr.bf16.gmra.mrb[8].mxu1 %v6304_v13 }
  0x7d   :  { %5442 = vmatprep.mubr.bf16.mxu1 %v6305_v14 }
  0x84   :  { %5443 = vmatmul.mubr.bf16.gmra.mrb[12].mxu1 %v6306_v15 }
  0x85   :  { %5446 = vmatprep.mubr.bf16.mxu1 %v6307_v16 }
  0x8c   :  { %5447 = vmatmul.mubr.bf16.gmra.mrb[16].mxu1 %v6308_v17 }
  0x8d   :  { %5450 = vmatprep.mubr.bf16.mxu1 %v6309_v18 }
  0x94   :  { %5451 = vmatmul.mubr.bf16.gmra.mrb[20].mxu1 %v6310_v19 }
  0x95   :  { %5454 = vmatprep.mubr.bf16.mxu1 %v6311_v20 }
  0x9c   :  { %5455 = vmatmul.mubr.bf16.gmra.mrb[24].mxu1 %v6312_v21 }
  0x9d   :  { %5458 = vmatprep.mubr.bf16.mxu1 %v6313_v22 }
  0xa4   :  { %5459 = vmatmul.mubr.bf16.gmra.mrb[28].mxu1 %v6314_v23 }
  0xa5   :  { %5462 = vmatprep.mubr.bf16.mxu1 %v6315_v24 }
  0xac   :  { %5463 = vmatmul.mubr.bf16.gmra.mrb[32].mxu1 %v6316_v25 }
  0xad   :  { %5466 = vmatprep.mubr.bf16.mxu1 %v6317_v26 }
  0xb4   :  { %5467 = vmatmul.mubr.bf16.gmra.mrb[36].mxu1 %v6318_v27 }
  0xb5   :  { %5470 = vmatprep.mubr.bf16.mxu1 %v6319_v28 }
  0xbc   :  { %5471 = vmatmul.mubr.bf16.gmra.mrb[40].mxu1 %v6320_v29 }
  0xbd   :  { %5474 = vmatprep.mubr.bf16.mxu1 %v6321_v30 }
  0xc4   :  { %5475 = vmatmul.mubr.bf16.gmra.mrb[44].mxu1 %v6322_v31 }
  0xc5   :  { %5478 = vmatprep.mubr.bf16.mxu1 %v6323_v32 }
  0xcc   :  { %5479 = vmatmul.mubr.bf16.gmra.mrb[48].mxu1 %v6324_v34 }
  0xcd   :  { %5482 = vmatprep.mubr.bf16.mxu1 %v6325_v35 }
  0xd4   :  { %5483 = vmatmul.mubr.bf16.gmra.mrb[52].mxu1 %v6326_v36  ;;  %v6339_v36 = vld [vmem:[#allocation2] ss:$20 sps:$4 sm:$0xff]  }
  0xd5   :  { %5486 = vmatprep.mubr.bf16.mxu1 %v6327_v37 }
  0xdc   :  { %5487 = vmatmul.mubr.bf16.gmra.mrb[56].mxu1 %v6328_v38  ;;  %v6342_v38 = vld [vmem:[#allocation2 + $0x2c] ss:$20 sps:$4 sm:$0xff]  }
  0xdd   :  { %5490 = vmatprep.mubr.bf16.mxu1 %v6329_v39 }
  0xe4   :  { %5491 = vmatmul.mubr.bf16.gmra.mrb[60].mxu1 %v6330_v40 }
  0xe5   :  { %5494 = vmatprep.mubr.bf16.mxu1 %v6331_v41 }
  0xec   :  { %5495 = vmatmul.mubr.bf16.gmra.mrb[64].mxu1 %v6332_v42 }
  0xed   :  { %5498 = vmatprep.mubr.bf16.mxu1 %v6333_v43 }
  0xf4   :  { %5499 = vmatmul.mubr.bf16.gmra.mrb[68].mxu1 %v6334_v44  ;;  %v6344_v44 = vld [vmem:[#allocation2 + $0x28] ss:$20 sps:$4 sm:$0xff]  }
  0xf5   :  { %5502 = vmatprep.mubr.bf16.mxu1 %v6335_v45 }
  0xfc   :  { %5503 = vmatmul.mubr.bf16.gmra.mrb[72].mxu1 %v6336_v46  ;;  %v6345_v46 = vld [vmem:[#allocation2 + $0x54] ss:$20 sps:$4 sm:$0xff]  }
  0xfd   :  { %5506 = vmatprep.mubr.bf16.mxu1 %v6337_v47 }
 0x104   :  { %5507 = vmatmul.mubr.bf16.gmra.mrb[76].mxu1 %v6338_v48 }
 0x105   :  { %2179 = vmatprep.mubr.bf16.mxu1 %v6341_v49 }
 0x13f   :  { %v5432_v50 = vpop.f32.mrb[0].mxu1 }
 0x140   :  { %v741_v51 = vpop.f32.mrb[1].mxu1 }
 0x141   :  { %v5433_v52 = vpop.f32.mrb[2].mxu1 }
 0x142   :  { %v1061_v53 = vpack.c.bf16 %v5433_v52, %v5432_v50  ;;  %v744_v54 = vpop.f32.mrb[3].mxu1  ;;  %v6347_v52 = vld [vmem:[#allocation2 + $0x50] ss:$20 sps:$4 sm:$0xff]  }
 0x143   :  { %v1060_v55 = vpack.c.bf16 %v744_v54, %v741_v51  ;;  %v6348_v54 = vld [vmem:[#allocation2 + $0x7c] ss:$20 sps:$4 sm:$0xff]  }
 0x145   :  { %2148 = vmatpush1.bf16.msra.mxu1 %v1060_v55 }
 0x146   :  { %2149 = vmatprep.subr.bf16.mxu1 %v7844_v33 }
 0x147   :  { %v5436_v56 = vpop.f32.mrb[4].mxu1 }
 0x148   :  { %v757_v57 = vpop.f32.mrb[5].mxu1 }
 0x149   :  { %v5437_v58 = vpop.f32.mrb[6].mxu1  ;;  %2150 = vmatpush1.bf16.msra.mxu1 %v1061_v53 }
 0x14a   :  { %v1063_v59 = vpack.c.bf16 %v5437_v58, %v5436_v56  ;;  %v760_v60 = vpop.f32.mrb[7].mxu1  ;;  %2151 = vmatprep.subr.bf16.mxu1 %v7844_v33 }
 0x14b   :  { %v1062_v61 = vpack.c.bf16 %v760_v60, %v757_v57  ;;  %v6350_v60 = vld [vmem:[#allocation2 + $0x78] ss:$20 sps:$4 sm:$0xff]  }
 0x14d   :  { %2152 = vmatpush1.bf16.msra.mxu1 %v1062_v61 }
 0x14e   :  { %2153 = vmatprep.subr.bf16.mxu1 %v7844_v33 }
 0x14f   :  { %v5440_v62 = vpop.f32.mrb[8].mxu1 }
 0x150   :  { %v773_v63 = vpop.f32.mrb[9].mxu1 }
 0x151   :  { %v5441_v0 = vpop.f32.mrb[10].mxu1  ;;  %2154 = vmatpush1.bf16.msra.mxu1 %v1063_v59 }
 0x152   :  { %v1065_v1 = vpack.c.bf16 %v5441_v0, %v5440_v62  ;;  %v776_v2 = vpop.f32.mrb[11].mxu1  ;;  %2155 = vmatprep.subr.bf16.mxu1 %v7844_v33  ;;  %v6351_v62 = vld [vmem:[#allocation2 + $0xa4] ss:$20 sps:$4 sm:$0xff]  }
 0x153   :  { %v1064_v3 = vpack.c.bf16 %v776_v2, %v773_v63 }
 0x155   :  { %2156 = vmatpush1.bf16.msra.mxu1 %v1064_v3 }
 0x156   :  { %2157 = vmatprep.subr.bf16.mxu1 %v7844_v33 }
 0x157   :  { %v5444_v4 = vpop.f32.mrb[12].mxu1 }
 0x158   :  { %v789_v5 = vpop.f32.mrb[13].mxu1 }
 0x159   :  { %v5445_v6 = vpop.f32.mrb[14].mxu1  ;;  %2158 = vmatpush1.bf16.msra.mxu1 %v1065_v1 }
 0x15a   :  { %v1067_v7 = vpack.c.bf16 %v5445_v6, %v5444_v4  ;;  %v792_v8 = vpop.f32.mrb[15].mxu1  ;;  %2159 = vmatprep.subr.bf16.mxu1 %v7844_v33  ;;  %v6353_v4 = vld [vmem:[#allocation2 + $0xa0] ss:$20 sps:$4 sm:$0xff]  }
 0x15b   :  { %v1066_v9 = vpack.c.bf16 %v792_v8, %v789_v5  ;;  %v6354_v6 = vld [vmem:[#allocation2 + $0xcc] ss:$20 sps:$4 sm:$0xff]  }
 0x15d   :  { %2160 = vmatpush1.bf16.msra.mxu1 %v1066_v9 }
 0x15e   :  { %2161 = vmatprep.subr.bf16.mxu1 %v7844_v33 }
 0x15f   :  { %v5448_v10 = vpop.f32.mrb[16].mxu1 }
 0x160   :  { %v805_v11 = vpop.f32.mrb[17].mxu1 }
 0x161   :  { %v5449_v12 = vpop.f32.mrb[18].mxu1  ;;  %2162 = vmatpush1.bf16.msra.mxu1 %v1067_v7 }
 0x162   :  { %v1069_v13 = vpack.c.bf16 %v5449_v12, %v5448_v10  ;;  %v808_v14 = vpop.f32.mrb[19].mxu1  ;;  %2163 = vmatprep.subr.bf16.mxu1 %v7844_v33  ;;  %v6356_v12 = vld [vmem:[#allocation2 + $0xc8] ss:$20 sps:$4 sm:$0xff]  }
 0x163   :  { %v1068_v15 = vpack.c.bf16 %v808_v14, %v805_v11  ;;  %v6357_v14 = vld [vmem:[#allocation2 + $0xf4] ss:$20 sps:$4 sm:$0xff]  }
 0x165   :  { %2164 = vmatpush1.bf16.msra.mxu1 %v1068_v15 }
 0x166   :  { %2165 = vmatprep.subr.bf16.mxu1 %v7844_v33 }
 0x167   :  { %v5452_v16 = vpop.f32.mrb[20].mxu1 }
 0x168   :  { %v821_v17 = vpop.f32.mrb[21].mxu1 }
 0x169   :  { %v5453_v18 = vpop.f32.mrb[22].mxu1  ;;  %2166 = vmatpush1.bf16.msra.mxu1 %v1069_v13 }
 0x16a   :  { %v1071_v19 = vpack.c.bf16 %v5453_v18, %v5452_v16  ;;  %v824_v20 = vpop.f32.mrb[23].mxu1  ;;  %2167 = vmatprep.subr.bf16.mxu1 %v7844_v33 }
 0x16b   :  { %v1070_v21 = vpack.c.bf16 %v824_v20, %v821_v17  ;;  %v6359_v20 = vld [vmem:[#allocation2 + $0xf0] ss:$20 sps:$4 sm:$0xff]  }
 0x16d   :  { %2168 = vmatpush1.bf16.msra.mxu1 %v1070_v21 }
 0x16e   :  { %2169 = vmatprep.subr.bf16.mxu1 %v7844_v33 }
 0x16f   :  { %v5456_v22 = vpop.f32.mrb[24].mxu1 }
 0x170   :  { %v837_v23 = vpop.f32.mrb[25].mxu1 }
 0x171   :  { %v5457_v24 = vpop.f32.mrb[26].mxu1  ;;  %2170 = vmatpush1.bf16.msra.mxu1 %v1071_v19 }
 0x172   :  { %v1073_v25 = vpack.c.bf16 %v5457_v24, %v5456_v22  ;;  %v840_v26 = vpop.f32.mrb[27].mxu1  ;;  %2171 = vmatprep.subr.bf16.mxu1 %v7844_v33  ;;  %v6360_v22 = vld [vmem:[#allocation2 + $0x11c] ss:$20 sps:$4 sm:$0xff]  }
 0x173   :  { %v1072_v27 = vpack.c.bf16 %v840_v26, %v837_v23 }
 0x175   :  { %2172 = vmatpush1.bf16.msra.mxu1 %v1072_v27 }
 0x176   :  { %2173 = vmatprep.subr.bf16.mxu1 %v7844_v33 }
 0x177   :  { %v5460_v28 = vpop.f32.mrb[28].mxu1 }
 0x178   :  { %v853_v29 = vpop.f32.mrb[29].mxu1 }
 0x179   :  { %v5461_v30 = vpop.f32.mrb[30].mxu1  ;;  %2174 = vmatpush1.bf16.msra.mxu1 %v1073_v25 }
 0x17a   :  { %v1075_v31 = vpack.c.bf16 %v5461_v30, %v5460_v28  ;;  %v856_v32 = vpop.f32.mrb[31].mxu1  ;;  %2175 = vmatprep.subr.bf16.mxu1 %v7844_v33  ;;  %v6362_v28 = vld [vmem:[#allocation2 + $0x118] ss:$20 sps:$4 sm:$0xff]  }
 0x17b   :  { %v1074_v34 = vpack.c.bf16 %v856_v32, %v853_v29  ;;  %v6363_v30 = vld [vmem:[#allocation2 + $0x144] ss:$20 sps:$4 sm:$0xff]  }
 0x17d   :  { %2176 = vmatpush1.bf16.msra.mxu1 %v1074_v34 }
 0x17e   :  { %2177 = vmatprep.subr.bf16.mxu1 %v7844_v33 }
 0x17f   :  { %v5464_v35 = vpop.f32.mrb[32].mxu1 }
 0x180   :  { %v869_v37 = vpop.f32.mrb[33].mxu1 }
 0x181   :  { %2178 = vmatpush1.bf16.msra.mxu1 %v1075_v31  ;;  %v5465_v39 = vpop.f32.mrb[34].mxu1 }
 0x182   :  { %v1077_v40 = vpack.c.bf16 %v5465_v39, %v5464_v35  ;;  %v872_v41 = vpop.f32.mrb[35].mxu1  ;;  %2500 = vmatprep.subr.bf16.mxu1 %v7844_v33  ;;  %v6366_v39 = vld [vmem:[#allocation2 + $0x16c] ss:$20 sps:$4 sm:$0xff]  }
 0x183   :  { %v1076_v42 = vpack.c.bf16 %v872_v41, %v869_v37  ;;  %v6365_v37 = vld [vmem:[#allocation2 + $0x140] ss:$20 sps:$4 sm:$0xff]  }
 0x184   :  { %2180 = vmatmul.mubr.bf16.vlgmr.msra.gmra.mrb[80].mxu1 %v6339_v36 }
 0x185   :  { %2187 = vmatprep.mubr.bf16.mxu1 %v6342_v38  ;;  %2501 = vmatpush1.bf16.msra.mxu1 %v1076_v42 }
 0x186   :  { %2502 = vmatprep.subr.bf16.mxu1 %v7844_v33 }
 0x187   :  { %v5468_v43 = vpop.f32.mrb[36].mxu1 }
 0x188   :  { %v885_v45 = vpop.f32.mrb[37].mxu1 }
 0x189   :  { %2503 = vmatpush1.bf16.msra.mxu1 %v1077_v40  ;;  %v5469_v47 = vpop.f32.mrb[38].mxu1 }
 0x18a   :  { %v1079_v48 = vpack.c.bf16 %v5469_v47, %v5468_v43  ;;  %v888_v49 = vpop.f32.mrb[39].mxu1  ;;  %2504 = vmatprep.subr.bf16.mxu1 %v7844_v33  ;;  %v6369_v47 = vld [vmem:[#allocation2 + $0x194] ss:$20 sps:$4 sm:$0xff]  }
 0x18b   :  { %v1078_v50 = vpack.c.bf16 %v888_v49, %v885_v45  ;;  %v6368_v45 = vld [vmem:[#allocation2 + $0x168] ss:$20 sps:$4 sm:$0xff]  }
 0x18c   :  { %2188 = vmatmul.mubr.bf16.gmra.mrb[84].mxu1 %v6344_v44 }
 0x18d   :  { %2195 = vmatprep.mubr.bf16.mxu1 %v6345_v46  ;;  %2505 = vmatpush1.bf16.msra.mxu1 %v1078_v50 }
 0x18e   :  { %2506 = vmatprep.subr.bf16.mxu1 %v7844_v33 }
 0x18f   :  { %v5472_v51 = vpop.f32.mrb[40].mxu1 }
 0x190   :  { %v901_v53 = vpop.f32.mrb[41].mxu1 }
 0x191   :  { %2507 = vmatpush1.bf16.msra.mxu1 %v1079_v48  ;;  %v5473_v55 = vpop.f32.mrb[42].mxu1 }
 0x192   :  { %v1081_v56 = vpack.c.bf16 %v5473_v55, %v5472_v51  ;;  %v904_v57 = vpop.f32.mrb[43].mxu1  ;;  %2508 = vmatprep.subr.bf16.mxu1 %v7844_v33  ;;  %v6372_v55 = vld [vmem:[#allocation2 + $0x1bc] ss:$20 sps:$4 sm:$0xff]  }
 0x193   :  { %v1080_v58 = vpack.c.bf16 %v904_v57, %v901_v53  ;;  %v6371_v53 = vld [vmem:[#allocation2 + $0x190] ss:$20 sps:$4 sm:$0xff]  }
 0x194   :  { %2196 = vmatmul.mubr.bf16.gmra.mrb[88].mxu1 %v6347_v52 }
 0x195   :  { %2203 = vmatprep.mubr.bf16.mxu1 %v6348_v54  ;;  %2509 = vmatpush1.bf16.msra.mxu1 %v1080_v58 }
 0x196   :  { %2510 = vmatprep.subr.bf16.mxu1 %v7844_v33 }
 0x197   :  { %v5476_v59 = vpop.f32.mrb[44].mxu1 }
 0x198   :  { %v917_v61 = vpop.f32.mrb[45].mxu1 }
 0x199   :  { %2511 = vmatpush1.bf16.msra.mxu1 %v1081_v56  ;;  %v5477_v63 = vpop.f32.mrb[46].mxu1 }
 0x19a   :  { %v1083_v0 = vpack.c.bf16 %v5477_v63, %v5476_v59  ;;  %v920_v1 = vpop.f32.mrb[47].mxu1  ;;  %2512 = vmatprep.subr.bf16.mxu1 %v7844_v33  ;;  %v6375_v63 = vld [vmem:[#allocation2 + $0x1e4] ss:$20 sps:$4 sm:$0xff]  }
 0x19b   :  { %v1082_v2 = vpack.c.bf16 %v920_v1, %v917_v61  ;;  %v6374_v61 = vld [vmem:[#allocation2 + $0x1b8] ss:$20 sps:$4 sm:$0xff]  }
 0x19c   :  { %2204 = vmatmul.mubr.bf16.gmra.mrb[92].mxu1 %v6350_v60 }
 0x19d   :  { %2211 = vmatprep.mubr.bf16.mxu1 %v6351_v62  ;;  %2513 = vmatpush1.bf16.msra.mxu1 %v1082_v2 }
 0x19e   :  { %2514 = vmatprep.subr.bf16.mxu1 %v7844_v33 }
 0x19f   :  { %v5480_v3 = vpop.f32.mrb[48].mxu1 }
 0x1a0   :  { %v933_v5 = vpop.f32.mrb[49].mxu1 }
 0x1a1   :  { %v5481_v7 = vpop.f32.mrb[50].mxu1  ;;  %2515 = vmatpush1.bf16.msra.mxu1 %v1083_v0 }
 0x1a2   :  { %v1085_v8 = vpack.c.bf16 %v5481_v7, %v5480_v3  ;;  %v936_v9 = vpop.f32.mrb[51].mxu1  ;;  %2516 = vmatprep.subr.bf16.mxu1 %v7844_v33  ;;  %v6381_v7 = vld [vmem:[#allocation2 + $0x234] ss:$20 sps:$4 sm:$0xff]  }
 0x1a3   :  { %v1084_v10 = vpack.c.bf16 %v936_v9, %v933_v5  ;;  %v6378_v5 = vld [vmem:[#allocation2 + $0x20c] ss:$20 sps:$4 sm:$0xff]   ;;  %v6384_v9 = vld [vmem:[#allocation2 + $0x25c] ss:$20 sps:$4 sm:$0xff]  }
 0x1a4   :  { %2212 = vmatmul.mubr.bf16.gmra.mrb[96].mxu1 %v6353_v4  ;;  %v6377_v4 = vld [vmem:[#allocation2 + $0x1e0] ss:$20 sps:$4 sm:$0xff]  }
 0x1a5   :  { %2219 = vmatprep.mubr.bf16.mxu1 %v6354_v6  ;;  %2517 = vmatpush1.bf16.msra.mxu1 %v1084_v10  ;;  %v6380_v6 = vld [vmem:[#allocation2 + $0x208] ss:$20 sps:$4 sm:$0xff]   ;;  %v6386_v10 = vld [vmem:[#allocation2 + $0x258] ss:$20 sps:$4 sm:$0xff]  }
 0x1a6   :  { %2518 = vmatprep.subr.bf16.mxu1 %v7844_v33 }
 0x1a7   :  { %v5484_v11 = vpop.f32.mrb[52].mxu1 }
 0x1a8   :  { %v949_v13 = vpop.f32.mrb[53].mxu1 }
 0x1a9   :  { %v5485_v15 = vpop.f32.mrb[54].mxu1  ;;  %2519 = vmatpush1.bf16.msra.mxu1 %v1085_v8  ;;  %v6383_v8 = vld [vmem:[#allocation2 + $0x230] ss:$20 sps:$4 sm:$0xff]  }
 0x1aa   :  { %v1087_v16 = vpack.c.bf16 %v5485_v15, %v5484_v11  ;;  %v952_v17 = vpop.f32.mrb[55].mxu1  ;;  %2520 = vmatprep.subr.bf16.mxu1 %v7844_v33  ;;  %v6387_v11 = vld [vmem:[#allocation2 + $0x284] ss:$20 sps:$4 sm:$0xff]   ;;  %v6393_v15 = vld [vmem:[#allocation2 + $0x2d4] ss:$20 sps:$4 sm:$0xff]  }
 0x1ab   :  { %v1086_v18 = vpack.c.bf16 %v952_v17, %v949_v13  ;;  %v6390_v13 = vld [vmem:[#allocation2 + $0x2ac] ss:$20 sps:$4 sm:$0xff]   ;;  %v6396_v17 = vld [vmem:[#allocation2 + $0x2fc] ss:$20 sps:$4 sm:$0xff]  }
 0x1ac   :  { %2220 = vmatmul.mubr.bf16.gmra.mrb[100].mxu1 %v6356_v12  ;;  %v6389_v12 = vld [vmem:[#allocation2 + $0x280] ss:$20 sps:$4 sm:$0xff]  }
 0x1ad   :  { %2227 = vmatprep.mubr.bf16.mxu1 %v6357_v14  ;;  %2521 = vmatpush1.bf16.msra.mxu1 %v1086_v18  ;;  %v6392_v14 = vld [vmem:[#allocation2 + $0x2a8] ss:$20 sps:$4 sm:$0xff]   ;;  %v6398_v18 = vld [vmem:[#allocation2 + $0x2f8] ss:$20 sps:$4 sm:$0xff]  }
 0x1ae   :  { %2522 = vmatprep.subr.bf16.mxu1 %v7844_v33 }
 0x1af   :  { %v5488_v19 = vpop.f32.mrb[56].mxu1 }
 0x1b0   :  { %v965_v21 = vpop.f32.mrb[57].mxu1 }
 0x1b1   :  { %v5489_v23 = vpop.f32.mrb[58].mxu1  ;;  %2523 = vmatpush1.bf16.msra.mxu1 %v1087_v16  ;;  %v6395_v16 = vld [vmem:[#allocation2 + $0x2d0] ss:$20 sps:$4 sm:$0xff]  }
 0x1b2   :  { %v1089_v24 = vpack.c.bf16 %v5489_v23, %v5488_v19  ;;  %v968_v25 = vpop.f32.mrb[59].mxu1  ;;  %2524 = vmatprep.subr.bf16.mxu1 %v7844_v33  ;;  %v6399_v19 = vld [vmem:[#allocation2 + $0x324] ss:$20 sps:$4 sm:$0xff]   ;;  %v6405_v23 = vld [vmem:[#allocation2 + $0x374] ss:$20 sps:$4 sm:$0xff]  }
 0x1b3   :  { %v1088_v26 = vpack.c.bf16 %v968_v25, %v965_v21  ;;  %v6402_v21 = vld [vmem:[#allocation2 + $0x34c] ss:$20 sps:$4 sm:$0xff]   ;;  %v6408_v25 = vld [vmem:[#allocation2 + $0x39c] ss:$20 sps:$4 sm:$0xff]  }
 0x1b4   :  { %2228 = vmatmul.mubr.bf16.gmra.mrb[104].mxu1 %v6359_v20  ;;  %v6401_v20 = vld [vmem:[#allocation2 + $0x320] ss:$20 sps:$4 sm:$0xff]  }
 0x1b5   :  { %2235 = vmatprep.mubr.bf16.mxu1 %v6360_v22  ;;  %2525 = vmatpush1.bf16.msra.mxu1 %v1088_v26  ;;  %v6404_v22 = vld [vmem:[#allocation2 + $0x348] ss:$20 sps:$4 sm:$0xff]   ;;  %v6410_v26 = vld [vmem:[#allocation2 + $0x398] ss:$20 sps:$4 sm:$0xff]  }
 0x1b6   :  { %2526 = vmatprep.subr.bf16.mxu1 %v7844_v33 }
 0x1b7   :  { %v5492_v27 = vpop.f32.mrb[60].mxu1 }
 0x1b8   :  { %v981_v29 = vpop.f32.mrb[61].mxu1 }
 0x1b9   :  { %v5493_v31 = vpop.f32.mrb[62].mxu1  ;;  %2527 = vmatpush1.bf16.msra.mxu1 %v1089_v24  ;;  %v6407_v24 = vld [vmem:[#allocation2 + $0x370] ss:$20 sps:$4 sm:$0xff]  }
 0x1ba   :  { %v1091_v32 = vpack.c.bf16 %v5493_v31, %v5492_v27  ;;  %v984_v34 = vpop.f32.mrb[63].mxu1  ;;  %2528 = vmatprep.subr.bf16.mxu1 %v7844_v33  ;;  %v6411_v27 = vld [vmem:[#allocation2 + $0x3c4] ss:$20 sps:$4 sm:$0xff]  }
 0x1bb   :  { %v1090_v35 = vpack.c.bf16 %v984_v34, %v981_v29  ;;  %v6414_v29 = vld [vmem:[#allocation2 + $0x3ec] ss:$20 sps:$4 sm:$0xff]   ;;  %v6417_v34 = vld [vmem:[#allocation2 + $0x414] ss:$20 sps:$4 sm:$0xff]  }
 0x1bc   :  { %2236 = vmatmul.mubr.bf16.gmra.mrb[108].mxu1 %v6362_v28  ;;  %v6413_v28 = vld [vmem:[#allocation2 + $0x3c0] ss:$20 sps:$4 sm:$0xff]   ;;  %v6463_v31 = vld [vmem:[#allocation2 + $0x38] ss:$20 sps:$4 sm:$0xff]  }
 0x1bd   :  { %2243 = vmatprep.mubr.bf16.mxu1 %v6363_v30  ;;  %2529 = vmatpush1.bf16.msra.mxu1 %v1090_v35  ;;  %v6462_v30 = vld [vmem:[#allocation2 + $0x10] ss:$20 sps:$4 sm:$0xff]  }
 0x1be   :  { %2530 = vmatprep.subr.bf16.mxu1 %v7844_v33  ;;  %5526 = vmatprep.mubr.bf16.mxu0 %v6462_v30  ;;  %v6419_v35 = vld [vmem:[#allocation2 + $0x410] ss:$20 sps:$4 sm:$0xff]   ;;  %v6480_v30 = vld [vmem:[#allocation2 + $0xd4] ss:$20 sps:$4 sm:$0xff]  }
 0x1bf   :  { %v5496_v36 = vpop.f32.mrb[64].mxu1 }
 0x1c0   :  { %v997_v38 = vpop.f32.mrb[65].mxu1 }
 0x1c1   :  { %v5497_v40 = vpop.f32.mrb[66].mxu1  ;;  %2531 = vmatpush1.bf16.msra.mxu1 %v1091_v32  ;;  %v6416_v32 = vld [vmem:[#allocation2 + $0x3e8] ss:$20 sps:$4 sm:$0xff]  }
 0x1c2   :  { %v1093_v41 = vpack.c.bf16 %v5497_v40, %v5496_v36  ;;  %v1000_v42 = vpop.f32.mrb[67].mxu1  ;;  %v6420_v36 = vld [vmem:[#allocation2 + $0x43c] ss:$20 sps:$4 sm:$0xff]   ;;  %v6423_v40 = vld [vmem:[#allocation2 + $0x464] ss:$20 sps:$4 sm:$0xff]  }
 0x1c3   :  { %v1092_v43 = vpack.c.bf16 %v1000_v42, %v997_v38  ;;  %v6471_v38 = vld [vmem:[#allocation2 + $0x88] ss:$20 sps:$4 sm:$0xff]   ;;  %v6426_v42 = vld [vmem:[#allocation2 + $0x48c] ss:$20 sps:$4 sm:$0xff]  }
 0x1c4   :  { %2244 = vmatmul.mubr.bf16.gmra.mrb[112].mxu1 %v6365_v37  ;;  %v6470_v37 = vld [vmem:[#allocation2 + $0x60] ss:$20 sps:$4 sm:$0xff]  }
 0x1c5   :  { %2251 = vmatprep.mubr.bf16.mxu1 %v6366_v39  ;;  %5510 = vmatprep.subr.bf16.mxu0 %v1092_v43  ;;  %v6422_v39 = vld [vmem:[#allocation2 + $0x438] ss:$20 sps:$4 sm:$0xff]  }
 0x1c6   :  { %5511 = vmatpush3.bf16.msra.mxu0 %v1092_v43  ;;  %v6478_v43 = vld [vmem:[#allocation2 + $0xb0] ss:$20 sps:$4 sm:$0xff]  }
 0x1c7   :  { %v5500_v44 = vpop.f32.mrb[68].mxu1  ;;  %5512 = vmatprep.subr.bf16.mxu0 %v1093_v41 }
 0x1c8   :  { %v1013_v46 = vpop.f32.mrb[69].mxu1 }
 0x1c9   :  { %v5501_v48 = vpop.f32.mrb[70].mxu1 }
 0x1ca   :  { %v1095_v49 = vpack.c.bf16 %v5501_v48, %v5500_v44  ;;  %v1016_v50 = vpop.f32.mrb[71].mxu1  ;;  %5513 = vmatpush3.bf16.msra.mxu0 %v1093_v41  ;;  %v6425_v41 = vld [vmem:[#allocation2 + $0x460] ss:$20 sps:$4 sm:$0xff]   ;;  %v6479_v44 = vld [vmem:[#allocation2 + $0xd8] ss:$20 sps:$4 sm:$0xff]  }
 0x1cb   :  { %v1094_v51 = vpack.c.bf16 %v1016_v50, %v1013_v46  ;;  %v6429_v46 = vld [vmem:[#allocation2 + $0x4b4] ss:$20 sps:$4 sm:$0xff]   ;;  %v6432_v48 = vld [vmem:[#allocation2 + $0x4dc] ss:$20 sps:$4 sm:$0xff]  }
 0x1cc   :  { %2252 = vmatmul.mubr.bf16.gmra.mrb[116].mxu1 %v6368_v45  ;;  %v6428_v45 = vld [vmem:[#allocation2 + $0x488] ss:$20 sps:$4 sm:$0xff]  }
 0x1cd   :  { %2259 = vmatprep.mubr.bf16.mxu1 %v6369_v47  ;;  %5514 = vmatprep.subr.bf16.mxu0 %v1094_v51  ;;  %v6431_v47 = vld [vmem:[#allocation2 + $0x4b0] ss:$20 sps:$4 sm:$0xff]   ;;  %v6487_v50 = vld [vmem:[#allocation2 + $0x128] ss:$20 sps:$4 sm:$0xff]  }
 0x1ce   :  { %5515 = vmatpush3.bf16.msra.mxu0 %v1094_v51  ;;  %v6434_v51 = vld [vmem:[#allocation2 + $0x4d8] ss:$20 sps:$4 sm:$0xff]  }
 0x1cf   :  { %v5504_v52 = vpop.f32.mrb[72].mxu1  ;;  %5516 = vmatprep.subr.bf16.mxu0 %v1095_v49 }
 0x1d0   :  { %v1029_v54 = vpop.f32.mrb[73].mxu1 }
 0x1d1   :  { %v5505_v56 = vpop.f32.mrb[74].mxu1 }
 0x1d2   :  { %v1097_v57 = vpack.c.bf16 %v5505_v56, %v5504_v52  ;;  %v1032_v58 = vpop.f32.mrb[75].mxu1  ;;  %5517 = vmatpush3.bf16.msra.mxu0 %v1095_v49  ;;  %v6486_v49 = vld [vmem:[#allocation2 + $0x100] ss:$20 sps:$4 sm:$0xff]   ;;  %v6435_v52 = vld [vmem:[#allocation2 + $0x504] ss:$20 sps:$4 sm:$0xff]  }
 0x1d3   :  { %v1096_v59 = vpack.c.bf16 %v1032_v58, %v1029_v54  ;;  %v6438_v54 = vld [vmem:[#allocation2 + $0x52c] ss:$20 sps:$4 sm:$0xff]   ;;  %v6441_v58 = vld [vmem:[#allocation2 + $0x554] ss:$20 sps:$4 sm:$0xff]  }
 0x1d4   :  { %2260 = vmatmul.mubr.bf16.gmra.mrb[120].mxu1 %v6371_v53  ;;  %v6437_v53 = vld [vmem:[#allocation2 + $0x500] ss:$20 sps:$4 sm:$0xff]   ;;  %v6495_v56 = vld [vmem:[#allocation2 + $0x178] ss:$20 sps:$4 sm:$0xff]  }
 0x1d5   :  { %2267 = vmatprep.mubr.bf16.mxu1 %v6372_v55  ;;  %5518 = vmatprep.subr.bf16.mxu0 %v1096_v59  ;;  %v6494_v55 = vld [vmem:[#allocation2 + $0x150] ss:$20 sps:$4 sm:$0xff]  }
 0x1d6   :  { %5519 = vmatpush3.bf16.msra.mxu0 %v1096_v59  ;;  %v6443_v59 = vld [vmem:[#allocation2 + $0x550] ss:$20 sps:$4 sm:$0xff]  }
 0x1d7   :  { %v5508_v60 = vpop.f32.mrb[76].mxu1  ;;  %5520 = vmatprep.subr.bf16.mxu0 %v1097_v57 }
 0x1d8   :  { %v1045_v62 = vpop.f32.mrb[77].mxu1 }
 0x1d9   :  { %v5509_v0 = vpop.f32.mrb[78].mxu1 }
 0x1da   :  { %v1099_v1 = vpack.c.bf16 %v5509_v0, %v5508_v60  ;;  %v1048_v2 = vpop.f32.mrb[79].mxu1  ;;  %5521 = vmatpush3.bf16.msra.mxu0 %v1097_v57  ;;  %v6440_v57 = vld [vmem:[#allocation2 + $0x528] ss:$20 sps:$4 sm:$0xff]   ;;  %v6447_v0 = vld [vmem:[#allocation2 + $0x5a4] ss:$20 sps:$4 sm:$0xff]  }
 0x1db   :  { %v1098_v3 = vpack.c.bf16 %v1048_v2, %v1045_v62  ;;  %v6444_v60 = vld [vmem:[#allocation2 + $0x57c] ss:$20 sps:$4 sm:$0xff]   ;;  %v6450_v2 = vld [vmem:[#allocation2 + $0x5cc] ss:$20 sps:$4 sm:$0xff]  }
 0x1dc   :  { %2268 = vmatmul.mubr.bf16.gmra.mrb[124].mxu1 %v6374_v61  ;;  %v6502_v61 = vld [vmem:[#allocation2 + $0x1a0] ss:$20 sps:$4 sm:$0xff]   ;;  %v6503_v62 = vld [vmem:[#allocation2 + $0x1c8] ss:$20 sps:$4 sm:$0xff]  }
 0x1dd   :  { %2275 = vmatprep.mubr.bf16.mxu1 %v6375_v63  ;;  %5522 = vmatprep.subr.bf16.mxu0 %v1098_v3  ;;  %v6446_v63 = vld [vmem:[#allocation2 + $0x578] ss:$20 sps:$4 sm:$0xff]  }
 0x1de   :  { %5523 = vmatpush3.bf16.msra.mxu0 %v1098_v3  ;;  %v6510_v3 = vld [vmem:[#allocation2 + $0x1f0] ss:$20 sps:$4 sm:$0xff]  }
 0x1df   :  { %5524 = vmatprep.subr.bf16.mxu0 %v1099_v1 }
 0x1e2   :  { %5525 = vmatpush3.bf16.msra.mxu0 %v1099_v1  ;;  %v6449_v1 = vld [vmem:[#allocation2 + $0x5a0] ss:$20 sps:$4 sm:$0xff]  }
 0x1e4   :  { %2276 = vmatmul.mubr.bf16.gmra.mrb[128].mxu1 %v6377_v4  ;;  %v6511_v4 = vld [vmem:[#allocation2 + $0x218] ss:$20 sps:$4 sm:$0xff]  }
 0x1e5   :  { %2283 = vmatprep.mubr.bf16.mxu1 %v6378_v5  ;;  %5527 = vmatmul.mubr.bf16.vlgmr.msra.gmra.mrb[0].mxu0 %v6463_v31  ;;  %v6452_v5 = vld [vmem:[#allocation2 + $0x5c8] ss:$20 sps:$4 sm:$0xff]   ;;  %v6546_v31 = vld [vmem:[#allocation2 + $0x3d0] ss:$20 sps:$4 sm:$0xff]  }
 0x1e6   :  { %5530 = vmatprep.mubr.bf16.mxu0 %v6470_v37  ;;  %v6552_v37 = vld [vmem:[#allocation2 + $0x448] ss:$20 sps:$4 sm:$0xff]  }
 0x1ec   :  { %2284 = vmatmul.mubr.bf16.gmra.mrb[132].mxu1 %v6380_v6  ;;  %v6453_v6 = vld [vmem:[#allocation2 + $0x5f4] ss:$20 sps:$4 sm:$0xff]  }
 0x1ed   :  { %2291 = vmatprep.mubr.bf16.mxu1 %v6381_v7  ;;  %5531 = vmatmul.mubr.bf16.gmra.mrb[4].mxu0 %v6471_v38  ;;  %v6455_v7 = vld [vmem:[#allocation2 + $0x5f0] ss:$20 sps:$4 sm:$0xff]   ;;  %v6485_v38 = vld [vmem:[#allocation2 + $0xf8] ss:$20 sps:$4 sm:$0xff]  }
 0x1ee   :  { %5534 = vmatprep.mubr.bf16.mxu0 %v6478_v43  ;;  %v6491_v43 = vld [vmem:[#allocation2 + $0x14c] ss:$20 sps:$4 sm:$0xff]  }
 0x1f4   :  { %2292 = vmatmul.mubr.bf16.gmra.mrb[136].mxu1 %v6383_v8  ;;  %v6456_v8 = vld [vmem:[#allocation2 + $0x61c] ss:$20 sps:$4 sm:$0xff]  }
 0x1f5   :  { %2299 = vmatprep.mubr.bf16.mxu1 %v6384_v9  ;;  %5535 = vmatmul.mubr.bf16.gmra.mrb[8].mxu0 %v6479_v44  ;;  %v6518_v9 = vld [vmem:[#allocation2 + $0x240] ss:$20 sps:$4 sm:$0xff]  }
 0x1f6   :  { %5538 = vmatprep.mubr.bf16.mxu0 %v6486_v49  ;;  %v6561_v44 = vld [vmem:[#allocation2 + $0x4c0] ss:$20 sps:$4 sm:$0xff]   ;;  %v6567_v49 = vld [vmem:[#allocation2 + $0x538] ss:$20 sps:$4 sm:$0xff]  }
 0x1fc   :  { %2300 = vmatmul.mubr.bf16.gmra.mrb[140].mxu1 %v6386_v10  ;;  %v6519_v10 = vld [vmem:[#allocation2 + $0x268] ss:$20 sps:$4 sm:$0xff]  }
 0x1fd   :  { %2307 = vmatprep.mubr.bf16.mxu1 %v6387_v11  ;;  %5539 = vmatmul.mubr.bf16.gmra.mrb[12].mxu0 %v6487_v50  ;;  %v6458_v11 = vld [vmem:[#allocation2 + $0x618] ss:$20 sps:$4 sm:$0xff]   ;;  %v6568_v50 = vld [vmem:[#allocation8] sm:$0xff]  }
 0x1fe   :  { %5542 = vmatprep.mubr.bf16.mxu0 %v6494_v55  ;;  %5606 = vmatprep.subr.bf16.mxu0 %v6568_v50  ;;  %v6574_v55 = vld [vmem:[#allocation2 + $0x588] ss:$20 sps:$4 sm:$0xff]  }
 0x1ff   :  { %5607 = vmatpush3.bf16.msra.mxu0 %v6568_v50 }
 0x204   :  { %2308 = vmatmul.mubr.bf16.gmra.mrb[144].mxu1 %v6389_v12  ;;  %v6461_v12 = vld [vmem:[#allocation2 + $0xc] ss:$20 sps:$4 sm:$0xff]  }
 0x205   :  { %2315 = vmatprep.mubr.bf16.mxu1 %v6390_v13  ;;  %5543 = vmatmul.mubr.bf16.gmra.mrb[16].mxu0 %v6495_v56  ;;  %v6459_v13 = vld [vmem:[#allocation2 + $0x8] ss:$20 sps:$4 sm:$0xff]   ;;  %v6575_v56 = vld [vmem:[#allocation8 + $0x10] sm:$0xff]  }
 0x206   :  { %5546 = vmatprep.mubr.bf16.mxu0 %v6502_v61  ;;  %v6581_v61 = vld [vmem:[#allocation2 + $0x5d8] ss:$20 sps:$4 sm:$0xff]  }
 0x20c   :  { %2316 = vmatmul.mubr.bf16.gmra.mrb[148].mxu1 %v6392_v14  ;;  %v6464_v14 = vld [vmem:[#allocation2 + $0x34] ss:$20 sps:$4 sm:$0xff]  }
 0x20d   :  { %2323 = vmatprep.mubr.bf16.mxu1 %v6393_v15  ;;  %5547 = vmatmul.mubr.bf16.gmra.mrb[20].mxu0 %v6503_v62  ;;  %v6526_v15 = vld [vmem:[#allocation2 + $0x290] ss:$20 sps:$4 sm:$0xff]  }
 0x20e   :  { %5550 = vmatprep.mubr.bf16.mxu0 %v6510_v3  ;;  %v6582_v62 = vld [vmem:[#allocation8 + $0x20] sm:$0xff]  }
 0x214   :  { %2324 = vmatmul.mubr.bf16.gmra.mrb[152].mxu1 %v6395_v16  ;;  %v6527_v16 = vld [vmem:[#allocation2 + $0x2b8] ss:$20 sps:$4 sm:$0xff]  }
 0x215   :  { %2331 = vmatprep.mubr.bf16.mxu1 %v6396_v17  ;;  %5551 = vmatmul.mubr.bf16.gmra.mrb[24].mxu0 %v6511_v4  ;;  %v6466_v17 = vld [vmem:[#allocation2 + $0x30] ss:$20 sps:$4 sm:$0xff]   ;;  %v6586_v4 = vld [vmem:[#allocation8 + $0x28] sm:$0xff]  }
 0x216   :  { %5554 = vmatprep.mubr.bf16.mxu0 %v6518_v9  ;;  %v6509_v9 = vld [vmem:[#allocation2 + $0x1e8] ss:$20 sps:$4 sm:$0xff]  }
 0x21c   :  { %2332 = vmatmul.mubr.bf16.gmra.mrb[156].mxu1 %v6398_v18  ;;  %v6467_v18 = vld [vmem:[#allocation2 + $0x5c] ss:$20 sps:$4 sm:$0xff]  }
 0x21d   :  { %2339 = vmatprep.mubr.bf16.mxu1 %v6399_v19  ;;  %5555 = vmatmul.mubr.bf16.gmra.mrb[28].mxu0 %v6519_v10  ;;  %v6531_v19 = vld [vmem:[#allocation2 + $0x2e0] ss:$20 sps:$4 sm:$0xff]  }
 0x21e   :  { %5558 = vmatprep.mubr.bf16.mxu0 %v6526_v15  ;;  %v6512_v10 = vld [vmem:[#allocation2 + $0x214] ss:$20 sps:$4 sm:$0xff]  }
 0x224   :  { %2340 = vmatmul.mubr.bf16.gmra.mrb[160].mxu1 %v6401_v20  ;;  %v6532_v20 = vld [vmem:[#allocation2 + $0x308] ss:$20 sps:$4 sm:$0xff]  }
 0x225   :  { %2347 = vmatprep.mubr.bf16.mxu1 %v6402_v21  ;;  %5559 = vmatmul.mubr.bf16.gmra.mrb[32].mxu0 %v6527_v16  ;;  %v6469_v21 = vld [vmem:[#allocation2 + $0x58] ss:$20 sps:$4 sm:$0xff]  }
 0x226   :  { %5562 = vmatprep.mubr.bf16.mxu0 %v6531_v19  ;;  %v6520_v19 = vld [vmem:[#allocation2 + $0x264] ss:$20 sps:$4 sm:$0xff]  }
 0x22c   :  { %2348 = vmatmul.mubr.bf16.gmra.mrb[164].mxu1 %v6404_v22  ;;  %v6472_v22 = vld [vmem:[#allocation2 + $0x84] ss:$20 sps:$4 sm:$0xff]  }
 0x22d   :  { %2355 = vmatprep.mubr.bf16.mxu1 %v6405_v23  ;;  %5563 = vmatmul.mubr.bf16.gmra.mrb[36].mxu0 %v6532_v20  ;;  %v6536_v23 = vld [vmem:[#allocation2 + $0x330] ss:$20 sps:$4 sm:$0xff]   ;;  %v6522_v20 = vld [vmem:[#allocation2 + $0x260] ss:$20 sps:$4 sm:$0xff]  }
 0x22e   :  { %5566 = vmatprep.mubr.bf16.mxu0 %v6536_v23 }
 0x234   :  { %2356 = vmatmul.mubr.bf16.gmra.mrb[168].mxu1 %v6407_v24  ;;  %v6537_v24 = vld [vmem:[#allocation2 + $0x358] ss:$20 sps:$4 sm:$0xff]  }
 0x235   :  { %2363 = vmatprep.mubr.bf16.mxu1 %v6408_v25  ;;  %5567 = vmatmul.mubr.bf16.gmra.mrb[40].mxu0 %v6537_v24  ;;  %v6474_v25 = vld [vmem:[#allocation2 + $0x80] ss:$20 sps:$4 sm:$0xff]  }
 0x23c   :  { %2364 = vmatmul.mubr.bf16.gmra.mrb[172].mxu1 %v6410_v26  ;;  %v6475_v26 = vld [vmem:[#allocation2 + $0xac] ss:$20 sps:$4 sm:$0xff]  }
 0x23d   :  { %2371 = vmatprep.mubr.bf16.mxu1 %v6411_v27  ;;  %v6541_v27 = vld [vmem:[#allocation2 + $0x380] ss:$20 sps:$4 sm:$0xff]  }
 0x23e   :  { %5570 = vmatprep.mubr.bf16.mxu0 %v6541_v27  ;;  %v6528_v27 = vld [vmem:[#allocation2 + $0x2b4] ss:$20 sps:$4 sm:$0xff]  }
 0x244   :  { %2372 = vmatmul.mubr.bf16.gmra.mrb[176].mxu1 %v6413_v28  ;;  %v6542_v28 = vld [vmem:[#allocation2 + $0x3a8] ss:$20 sps:$4 sm:$0xff]  }
 0x245   :  { %2379 = vmatprep.mubr.bf16.mxu1 %v6414_v29  ;;  %5571 = vmatmul.mubr.bf16.gmra.mrb[44].mxu0 %v6542_v28  ;;  %v6477_v29 = vld [vmem:[#allocation2 + $0xa8] ss:$20 sps:$4 sm:$0xff]   ;;  %v6530_v28 = vld [vmem:[#allocation2 + $0x2b0] ss:$20 sps:$4 sm:$0xff]  }
 0x246   :  { %5574 = vmatprep.mubr.bf16.mxu0 %v6546_v31 }
 0x24c   :  { %2380 = vmatmul.mubr.bf16.gmra.mrb[180].mxu1 %v6416_v32  ;;  %v6547_v32 = vld [vmem:[#allocation2 + $0x3f8] ss:$20 sps:$4 sm:$0xff]  }
 0x24d   :  { %2387 = vmatprep.mubr.bf16.mxu1 %v6417_v34  ;;  %5575 = vmatmul.mubr.bf16.gmra.mrb[48].mxu0 %v6547_v32  ;;  %v6482_v34 = vld [vmem:[#allocation2 + $0xd0] ss:$20 sps:$4 sm:$0xff]  }
 0x254   :  { %2388 = vmatmul.mubr.bf16.gmra.mrb[184].mxu1 %v6419_v35  ;;  %v6483_v35 = vld [vmem:[#allocation2 + $0xfc] ss:$20 sps:$4 sm:$0xff]  }
 0x255   :  { %2395 = vmatprep.mubr.bf16.mxu1 %v6420_v36  ;;  %v6551_v36 = vld [vmem:[#allocation2 + $0x420] ss:$20 sps:$4 sm:$0xff]  }
 0x256   :  { %5578 = vmatprep.mubr.bf16.mxu0 %v6551_v36  ;;  %v6538_v36 = vld [vmem:[#allocation2 + $0x304] ss:$20 sps:$4 sm:$0xff]  }
 0x257   :  { %5579 = vmatmul.mubr.bf16.gmra.mrb[52].mxu0 %v6552_v37  ;;  %v6540_v37 = vld [vmem:[#allocation2 + $0x300] ss:$20 sps:$4 sm:$0xff]  }
 0x25c   :  { %2396 = vmatmul.mubr.bf16.gmra.mrb[188].mxu1 %v6422_v39  ;;  %v6488_v39 = vld [vmem:[#allocation2 + $0x124] ss:$20 sps:$4 sm:$0xff]  }
 0x25d   :  { %2403 = vmatprep.mubr.bf16.mxu1 %v6423_v40  ;;  %v6556_v40 = vld [vmem:[#allocation2 + $0x470] ss:$20 sps:$4 sm:$0xff]  }
 0x25e   :  { %5582 = vmatprep.mubr.bf16.mxu0 %v6556_v40 }
 0x264   :  { %2404 = vmatmul.mubr.bf16.gmra.mrb[192].mxu1 %v6425_v41  ;;  %v6557_v41 = vld [vmem:[#allocation2 + $0x498] ss:$20 sps:$4 sm:$0xff]  }
 0x265   :  { %2411 = vmatprep.mubr.bf16.mxu1 %v6426_v42  ;;  %5583 = vmatmul.mubr.bf16.gmra.mrb[56].mxu0 %v6557_v41  ;;  %v6490_v42 = vld [vmem:[#allocation2 + $0x120] ss:$20 sps:$4 sm:$0xff]  }
 0x266   :  { %5586 = vmatprep.mubr.bf16.mxu0 %v6561_v44  ;;  %v6548_v44 = vld [vmem:[#allocation2 + $0x354] ss:$20 sps:$4 sm:$0xff]  }
 0x26c   :  { %2412 = vmatmul.mubr.bf16.gmra.mrb[196].mxu1 %v6428_v45  ;;  %v6562_v45 = vld [vmem:[#allocation2 + $0x4e8] ss:$20 sps:$4 sm:$0xff]  }
 0x26d   :  { %2419 = vmatprep.mubr.bf16.mxu1 %v6429_v46  ;;  %5587 = vmatmul.mubr.bf16.gmra.mrb[60].mxu0 %v6562_v45  ;;  %v6493_v46 = vld [vmem:[#allocation2 + $0x148] ss:$20 sps:$4 sm:$0xff]   ;;  %v6550_v45 = vld [vmem:[#allocation2 + $0x350] ss:$20 sps:$4 sm:$0xff]  }
 0x274   :  { %2420 = vmatmul.mubr.bf16.gmra.mrb[200].mxu1 %v6431_v47  ;;  %v6496_v47 = vld [vmem:[#allocation2 + $0x174] ss:$20 sps:$4 sm:$0xff]  }
 0x275   :  { %2427 = vmatprep.mubr.bf16.mxu1 %v6432_v48  ;;  %v6566_v48 = vld [vmem:[#allocation2 + $0x510] ss:$20 sps:$4 sm:$0xff]  }
 0x276   :  { %5590 = vmatprep.mubr.bf16.mxu0 %v6566_v48 }
 0x277   :  { %5591 = vmatmul.mubr.bf16.gmra.mrb[64].mxu0 %v6567_v49 }
 0x27c   :  { %2428 = vmatmul.mubr.bf16.gmra.mrb[204].mxu1 %v6434_v51  ;;  %v6498_v51 = vld [vmem:[#allocation2 + $0x170] ss:$20 sps:$4 sm:$0xff]  }
 0x27d   :  { %2435 = vmatprep.mubr.bf16.mxu1 %v6435_v52  ;;  %v6499_v52 = vld [vmem:[#allocation2 + $0x19c] ss:$20 sps:$4 sm:$0xff]  }
 0x284   :  { %2436 = vmatmul.mubr.bf16.gmra.mrb[208].mxu1 %v6437_v53  ;;  %v6572_v53 = vld [vmem:[#allocation8 + $0x8] sm:$0xff]  }
 0x285   :  { %2443 = vmatprep.mubr.bf16.mxu1 %v6438_v54  ;;  %5608 = vmatprep.subr.bf16.mxu0 %v6572_v53  ;;  %v6573_v54 = vld [vmem:[#allocation2 + $0x560] ss:$20 sps:$4 sm:$0xff]  }
 0x286   :  { %5609 = vmatpush3.bf16.msra.mxu0 %v6572_v53  ;;  %5594 = vmatprep.mubr.bf16.mxu0 %v6573_v54  ;;  %v6560_v53 = vld [vmem:[#allocation2 + $0x3a0] ss:$20 sps:$4 sm:$0xff]  }
 0x287   :  { %5610 = vmatprep.subr.bf16.mxu0 %v6575_v56  ;;  %5595 = vmatmul.mubr.bf16.gmra.mrb[68].mxu0 %v6574_v55  ;;  %v6563_v55 = vld [vmem:[#allocation2 + $0x3cc] ss:$20 sps:$4 sm:$0xff]  }
 0x28a   :  { %5611 = vmatpush3.bf16.msra.mxu0 %v6575_v56 }
 0x28c   :  { %2444 = vmatmul.mubr.bf16.gmra.mrb[212].mxu1 %v6440_v57  ;;  %v6501_v57 = vld [vmem:[#allocation2 + $0x198] ss:$20 sps:$4 sm:$0xff]  }
 0x28d   :  { %2451 = vmatprep.mubr.bf16.mxu1 %v6441_v58  ;;  %v6504_v58 = vld [vmem:[#allocation2 + $0x1c4] ss:$20 sps:$4 sm:$0xff]  }
 0x294   :  { %2452 = vmatmul.mubr.bf16.gmra.mrb[216].mxu1 %v6443_v59  ;;  %v6579_v59 = vld [vmem:[#allocation8 + $0x18] sm:$0xff]  }
 0x295   :  { %2459 = vmatprep.mubr.bf16.mxu1 %v6444_v60  ;;  %5612 = vmatprep.subr.bf16.mxu0 %v6579_v59  ;;  %v6580_v60 = vld [vmem:[#allocation2 + $0x5b0] ss:$20 sps:$4 sm:$0xff]  }
 0x296   :  { %5613 = vmatpush3.bf16.msra.mxu0 %v6579_v59  ;;  %5598 = vmatprep.mubr.bf16.mxu0 %v6580_v60  ;;  %v6565_v59 = vld [vmem:[#allocation2 + $0x3c8] ss:$20 sps:$4 sm:$0xff]  }
 0x297   :  { %5599 = vmatmul.mubr.bf16.gmra.mrb[72].mxu0 %v6581_v61  ;;  %5614 = vmatprep.subr.bf16.mxu0 %v6582_v62  ;;  %v6569_v60 = vld [vmem:[#allocation2 + $0x3f4] ss:$20 sps:$4 sm:$0xff]   ;;  %v6571_v61 = vld [vmem:[#allocation2 + $0x3f0] ss:$20 sps:$4 sm:$0xff]  }
 0x29a   :  { %5615 = vmatpush3.bf16.msra.mxu0 %v6582_v62 }
 0x29b   :  { %5616 = vmatprep.subr.bf16.mxu0 %v6586_v4 }
 0x29c   :  { %2460 = vmatmul.mubr.bf16.gmra.mrb[220].mxu1 %v6446_v63  ;;  %v6506_v63 = vld [vmem:[#allocation2 + $0x1c0] ss:$20 sps:$4 sm:$0xff]  }
 0x29d   :  { %2467 = vmatprep.mubr.bf16.mxu1 %v6447_v0 }
 0x29e   :  { %5617 = vmatpush3.bf16.msra.mxu0 %v6586_v4 }
 0x2a4   :  { %2468 = vmatmul.mubr.bf16.gmra.mrb[224].mxu1 %v6449_v1  ;;  %v6507_v1 = vld [vmem:[#allocation2 + $0x1ec] ss:$20 sps:$4 sm:$0xff]  }
 0x2a5   :  { %2475 = vmatprep.mubr.bf16.mxu1 %v6450_v2 }
 0x2ac   :  { %2476 = vmatmul.mubr.bf16.gmra.mrb[228].mxu1 %v6452_v5 }
 0x2ad   :  { %2483 = vmatprep.mubr.bf16.mxu1 %v6453_v6  ;;  %v6587_v6 = vld [vmem:[#allocation2 + $0x600] ss:$20 sps:$4 sm:$0xff]  }
 0x2ae   :  { %5602 = vmatprep.mubr.bf16.mxu0 %v6587_v6 }
 0x2b4   :  { %2484 = vmatmul.mubr.bf16.gmra.mrb[232].mxu1 %v6455_v7  ;;  %v6588_v7 = vld [vmem:[#allocation2 + $0x628] ss:$20 sps:$4 sm:$0xff]  }
 0x2b5   :  { %2491 = vmatprep.mubr.bf16.mxu1 %v6456_v8  ;;  %v6589_v8 = vld [vmem:[#allocation8 + $0x30] sm:$0xff]   ;;  %5603 = vmatmul.mubr.bf16.gmra.mrb[76].mxu0 %v6588_v7  ;;  %v6578_v7 = vld [vmem:[#allocation2 + $0x418] ss:$20 sps:$4 sm:$0xff]  }
 0x2b6   :  { %5618 = vmatprep.subr.bf16.mxu0 %v6589_v8 }
 0x2b7   :  { %5619 = vmatpush3.bf16.msra.mxu0 %v6589_v8  ;;  %v6583_v8 = vld [vmem:[#allocation2 + $0x444] ss:$20 sps:$4 sm:$0xff]  }
 0x2b8   :  { %v7119_v0 = vpop.f32.mrb[0].mxu0 }
 0x2b9   :  { %v7121_v2 = vpop.f32.mrb[1].mxu0 }
 0x2ba   :  { %v7123_v3 = vpop.f32.mrb[2].mxu0 }
 0x2bb   :  { %v7125_v5 = vpop.f32.mrb[3].mxu0 }
 0x2bc   :  { %2492 = vmatmul.mubr.bf16.gmra.mrb[236].mxu1 %v6458_v11  ;;  %v6593_v11 = vld [vmem:[#allocation8 + $0x38] sm:$0xff]  }
 0x2bd   :  { %2532 = vmatprep.mubr.bf16.mxu1 %v6461_v12  ;;  %5620 = vmatprep.subr.bf16.mxu0 %v6593_v11  ;;  %v6514_v12 = vld [vmem:[#allocation2 + $0x210] ss:$20 sps:$4 sm:$0xff]  }
 0x2be   :  { %5621 = vmatpush3.bf16.msra.mxu0 %v6593_v11 }
 0x2bf   :  { %3790 = vmatprep.subr.bf16.mxu0 %v7844_v33 }
 0x2c4   :  { %2533 = vmatmul.mubr.bf16.vlgmr.msra.gmra.mrb[80].mxu1 %v6459_v13  ;;  %v7128_v13 = vpop.f32.mrb[4].mxu0 }
 0x2c5   :  { %2540 = vmatprep.mubr.bf16.mxu1 %v6464_v14  ;;  %v6515_v14 = vld [vmem:[#allocation2 + $0x23c] ss:$20 sps:$4 sm:$0xff]   ;;  %v7130_v15 = vpop.f32.mrb[5].mxu0 }
 0x2c6   :  { %v7132_v16 = vpop.f32.mrb[6].mxu0 }
 0x2cc   :  { %2541 = vmatmul.mubr.bf16.gmra.mrb[84].mxu1 %v6466_v17  ;;  %v7134_v17 = vpop.f32.mrb[7].mxu0 }
 0x2cd   :  { %2548 = vmatprep.mubr.bf16.mxu1 %v6467_v18  ;;  %v6517_v18 = vld [vmem:[#allocation2 + $0x238] ss:$20 sps:$4 sm:$0xff]  }
 0x2d4   :  { %2549 = vmatmul.mubr.bf16.gmra.mrb[88].mxu1 %v6469_v21  ;;  %v7136_v21 = vpop.f32.mrb[8].mxu0 }
 0x2d5   :  { %2556 = vmatprep.mubr.bf16.mxu1 %v6472_v22  ;;  %v6523_v22 = vld [vmem:[#allocation2 + $0x28c] ss:$20 sps:$4 sm:$0xff]   ;;  %v7138_v23 = vpop.f32.mrb[9].mxu0 }
 0x2d6   :  { %v7140_v24 = vpop.f32.mrb[10].mxu0 }
 0x2dc   :  { %2557 = vmatmul.mubr.bf16.gmra.mrb[92].mxu1 %v6474_v25  ;;  %v7142_v25 = vpop.f32.mrb[11].mxu0 }
 0x2dd   :  { %2564 = vmatprep.mubr.bf16.mxu1 %v6475_v26  ;;  %v6525_v26 = vld [vmem:[#allocation2 + $0x288] ss:$20 sps:$4 sm:$0xff]  }
 0x2e4   :  { %2565 = vmatmul.mubr.bf16.gmra.mrb[96].mxu1 %v6477_v29  ;;  %v7144_v29 = vpop.f32.mrb[12].mxu0 }
 0x2e5   :  { %2572 = vmatprep.mubr.bf16.mxu1 %v6480_v30  ;;  %v6533_v30 = vld [vmem:[#allocation2 + $0x2dc] ss:$20 sps:$4 sm:$0xff]   ;;  %v7146_v31 = vpop.f32.mrb[13].mxu0 }
 0x2e6   :  { %v7148_v32 = vpop.f32.mrb[14].mxu0 }
 0x2ec   :  { %2573 = vmatmul.mubr.bf16.gmra.mrb[100].mxu1 %v6482_v34  ;;  %v7150_v34 = vpop.f32.mrb[15].mxu0 }
 0x2ed   :  { %2580 = vmatprep.mubr.bf16.mxu1 %v6483_v35  ;;  %v6535_v35 = vld [vmem:[#allocation2 + $0x2d8] ss:$20 sps:$4 sm:$0xff]  }
 0x2f4   :  { %2581 = vmatmul.mubr.bf16.gmra.mrb[104].mxu1 %v6485_v38  ;;  %v7152_v38 = vpop.f32.mrb[16].mxu0 }
 0x2f5   :  { %2588 = vmatprep.mubr.bf16.mxu1 %v6488_v39  ;;  %v6543_v39 = vld [vmem:[#allocation2 + $0x32c] ss:$20 sps:$4 sm:$0xff]   ;;  %v7154_v40 = vpop.f32.mrb[17].mxu0 }
 0x2f6   :  { %v7156_v41 = vpop.f32.mrb[18].mxu0 }
 0x2fc   :  { %2589 = vmatmul.mubr.bf16.gmra.mrb[108].mxu1 %v6490_v42  ;;  %v7158_v42 = vpop.f32.mrb[19].mxu0 }
 0x2fd   :  { %2596 = vmatprep.mubr.bf16.mxu1 %v6491_v43  ;;  %v6545_v43 = vld [vmem:[#allocation2 + $0x328] ss:$20 sps:$4 sm:$0xff]  }
 0x304   :  { %2597 = vmatmul.mubr.bf16.gmra.mrb[112].mxu1 %v6493_v46  ;;  %v7160_v46 = vpop.f32.mrb[20].mxu0 }
 0x305   :  { %2604 = vmatprep.mubr.bf16.mxu1 %v6496_v47  ;;  %v6553_v47 = vld [vmem:[#allocation2 + $0x37c] ss:$20 sps:$4 sm:$0xff]   ;;  %v7162_v48 = vpop.f32.mrb[21].mxu0 }
 0x306   :  { %v7164_v49 = vpop.f32.mrb[22].mxu0 }
 0x307   :  { %v7166_v50 = vpop.f32.mrb[23].mxu0 }
 0x308   :  { %v7168_v54 = vpop.f32.mrb[24].mxu0 }
 0x309   :  { %v7170_v56 = vpop.f32.mrb[25].mxu0 }
 0x30c   :  { %2605 = vmatmul.mubr.bf16.gmra.mrb[116].mxu1 %v6498_v51  ;;  %v6555_v51 = vld [vmem:[#allocation2 + $0x378] ss:$20 sps:$4 sm:$0xff]  }
 0x30d   :  { %2612 = vmatprep.mubr.bf16.mxu1 %v6499_v52  ;;  %v6558_v52 = vld [vmem:[#allocation2 + $0x3a4] ss:$20 sps:$4 sm:$0xff]  }
 0x314   :  { %2613 = vmatmul.mubr.bf16.gmra.mrb[120].mxu1 %v6501_v57  ;;  %v7172_v57 = vpop.f32.mrb[26].mxu0 }
 0x315   :  { %2620 = vmatprep.mubr.bf16.mxu1 %v6504_v58  ;;  %v7174_v58 = vpop.f32.mrb[27].mxu0 }
 0x316   :  { %v7176_v62 = vpop.f32.mrb[28].mxu0 }
 0x31c   :  { %2621 = vmatmul.mubr.bf16.gmra.mrb[124].mxu1 %v6506_v63  ;;  %v6576_v63 = vld [vmem:[#allocation2 + $0x41c] ss:$20 sps:$4 sm:$0xff]  }
 0x31d   :  { %2628 = vmatprep.mubr.bf16.mxu1 %v6507_v1  ;;  %v7178_v1 = vpop.f32.mrb[29].mxu0 }
 0x31e   :  { %v7180_v4 = vpop.f32.mrb[30].mxu0 }
 0x31f   :  { %v7182_v6 = vpop.f32.mrb[31].mxu0 }
 0x324   :  { %2629 = vmatmul.mubr.bf16.gmra.mrb[128].mxu1 %v6509_v9  ;;  %v7187_v9 = vld [vmem:[%s7839_s3] ss:$0 sm:$0xff] }
 0x325   :  { %2636 = vmatprep.mubr.bf16.mxu1 %v6512_v10 }
 0x32c   :  { %2637 = vmatmul.mubr.bf16.gmra.mrb[132].mxu1 %v6514_v12 }
 0x32d   :  { %2644 = vmatprep.mubr.bf16.mxu1 %v6515_v14  ;;  %v6585_v14 = vld [vmem:[#allocation2 + $0x440] ss:$20 sps:$4 sm:$0xff]  }
 0x334   :  { %2645 = vmatmul.mubr.bf16.gmra.mrb[136].mxu1 %v6517_v18  ;;  %v7190_v18 = vpop.f32.mrb[32].mxu0 }
 0x335   :  { %2652 = vmatprep.mubr.bf16.mxu1 %v6520_v19 }
 0x33c   :  { %2653 = vmatmul.mubr.bf16.gmra.mrb[140].mxu1 %v6522_v20  ;;  %v6590_v20 = vld [vmem:[#allocation2 + $0x46c] ss:$20 sps:$4 sm:$0xff]  }
 0x33d   :  { %2660 = vmatprep.mubr.bf16.mxu1 %v6523_v22  ;;  %v7192_v22 = vpop.f32.mrb[33].mxu0 }
 0x344   :  { %2661 = vmatmul.mubr.bf16.gmra.mrb[144].mxu1 %v6525_v26 }
 0x345   :  { %2668 = vmatprep.mubr.bf16.mxu1 %v6528_v27 }
 0x34c   :  { %2669 = vmatmul.mubr.bf16.gmra.mrb[148].mxu1 %v6530_v28 }
 0x34d   :  { %2676 = vmatprep.mubr.bf16.mxu1 %v6533_v30  ;;  %v7196_v30 = vpop.f32.mrb[34].mxu0 }
 0x354   :  { %2677 = vmatmul.mubr.bf16.gmra.mrb[152].mxu1 %v6535_v35  ;;  %v7198_v35 = vpop.f32.mrb[35].mxu0 }
 0x355   :  { %2684 = vmatprep.mubr.bf16.mxu1 %v6538_v36 }
 0x35c   :  { %2685 = vmatmul.mubr.bf16.gmra.mrb[156].mxu1 %v6540_v37 }
 0x35d   :  { %2692 = vmatprep.mubr.bf16.mxu1 %v6543_v39 }
 0x364   :  { %2693 = vmatmul.mubr.bf16.gmra.mrb[160].mxu1 %v6545_v43 }
 0x365   :  { %2700 = vmatprep.mubr.bf16.mxu1 %v6548_v44 }
 0x36c   :  { %2701 = vmatmul.mubr.bf16.gmra.mrb[164].mxu1 %v6550_v45  ;;  %v6592_v45 = vld [vmem:[#allocation2 + $0x468] ss:$20 sps:$4 sm:$0xff]  }
 0x36d   :  { %2708 = vmatprep.mubr.bf16.mxu1 %v6553_v47 }
 0x374   :  { %2709 = vmatmul.mubr.bf16.gmra.mrb[168].mxu1 %v6555_v51 }
 0x375   :  { %2716 = vmatprep.mubr.bf16.mxu1 %v6558_v52 }
 0x37c   :  { %2717 = vmatmul.mubr.bf16.gmra.mrb[172].mxu1 %v6560_v53 }
 0x37d   :  { %2724 = vmatprep.mubr.bf16.mxu1 %v6563_v55 }
 0x384   :  { %2725 = vmatmul.mubr.bf16.gmra.mrb[176].mxu1 %v6565_v59 }
 0x385   :  { %2732 = vmatprep.mubr.bf16.mxu1 %v6569_v60 }
 0x38c   :  { %2733 = vmatmul.mubr.bf16.gmra.mrb[180].mxu1 %v6571_v61 }
 0x38d   :  { %2740 = vmatprep.mubr.bf16.mxu1 %v6576_v63  ;;  %v6596_v63 = vld [vmem:[#allocation2 + $0x490] ss:$20 sps:$4 sm:$0xff]  }
 0x394   :  { %2741 = vmatmul.mubr.bf16.gmra.mrb[184].mxu1 %v6578_v7  ;;  %v7206_v7 = vpop.f32.mrb[36].mxu0 }
 0x395   :  { %2748 = vmatprep.mubr.bf16.mxu1 %v6583_v8 }
 0x397   :  { %v2534_v10 = vpop.f32.mrb[80].mxu1 }
 0x398   :  { %v5798_v11 = vadd.f32 %v7187_v9, %v2534_v10  ;;  %v2536_v12 = vpop.f32.mrb[81].mxu1  ;;  %v7208_v10 = vpop.f32.mrb[37].mxu0 }
 0x399   :  { %v2537_v19 = vpop.f32.mrb[82].mxu1 }
 0x39a   :  { %v5799_v26 = vadd.f32 %v7187_v9, %v2537_v19  ;;  %v2888_v27 = vadd.f32 %v5798_v11, %v7121_v2  ;;  %v2539_v28 = vpop.f32.mrb[83].mxu1  ;;  %v6594_v2 = vld [vmem:[#allocation2 + $0x494] ss:$20 sps:$4 sm:$0xff]  }
 0x39c   :  { %3206 = vst [vmem:[#allocation11] sm:$0xff] %v2888_v27  ;;  %v2891_v36 = vadd.f32 %v5799_v26, %v7125_v5  ;;  %2749 = vmatmul.mubr.bf16.gmra.mrb[188].mxu1 %v6585_v14  ;;  %v7212_v14 = vpop.f32.mrb[38].mxu0 }
 0x39d   :  { %2756 = vmatprep.mubr.bf16.mxu1 %v6590_v20  ;;  %v7214_v19 = vpop.f32.mrb[39].mxu0 }
 0x39e   :  { %3207 = vst [vmem:[#allocation11 + $0x8] sm:$0xff] %v2891_v36  ;;  %v3286_v37 = vpack.c.bf16 %v2891_v36, %v2888_v27 }
 0x39f   :  { %v2542_v39 = vpop.f32.mrb[84].mxu1 }
 0x3a0   :  { %v5800_v43 = vadd.f32 %v7187_v9, %v2542_v39  ;;  %v2544_v44 = vpop.f32.mrb[85].mxu1  ;;  %5622 = vmatprep.mubr.bf16.mxu0 %v3286_v37  ;;  %v6599_v37 = vld [vmem:[#allocation2 + $0x4b8] ss:$20 sps:$4 sm:$0xff]  }
 0x3a1   :  { %v2545_v47 = vpop.f32.mrb[86].mxu1 }
 0x3a2   :  { %v2896_v51 = vadd.f32 %v5800_v43, %v7119_v0  ;;  %v5801_v52 = vadd.f32 %v7187_v9, %v2545_v47  ;;  %v2547_v53 = vpop.f32.mrb[87].mxu1  ;;  %v6597_v0 = vld [vmem:[#allocation2 + $0x4bc] ss:$20 sps:$4 sm:$0xff]  }
 0x3a3   :  { %v6602_v53 = vld [vmem:[#allocation2 + $0x4e0] ss:$20 sps:$4 sm:$0xff]  }
 0x3a4   :  { %3208 = vst [vmem:[#allocation11 + $0x10] sm:$0xff] %v2896_v51  ;;  %v2899_v5 = vadd.f32 %v5801_v52, %v7123_v3  ;;  %2757 = vmatmul.mubr.bf16.gmra.mrb[192].mxu1 %v6592_v45 }
 0x3a5   :  { %2764 = vmatprep.mubr.bf16.mxu1 %v6594_v2 }
 0x3a6   :  { %3209 = vst [vmem:[#allocation11 + $0x18] sm:$0xff] %v2899_v5  ;;  %v3287_v55 = vpack.c.bf16 %v2899_v5, %v2896_v51  ;;  %v7222_v5 = vpop.f32.mrb[40].mxu0 }
 0x3a7   :  { %v2550_v59 = vpop.f32.mrb[88].mxu1 }
 0x3a8   :  { %v5802_v60 = vadd.f32 %v7187_v9, %v2550_v59  ;;  %v2552_v61 = vpop.f32.mrb[89].mxu1  ;;  %5623 = vmatmul.mubr.bf16.vlgmr.msra.gmra.mrb[80].mxu0 %v3287_v55  ;;  %v7224_v59 = vpop.f32.mrb[41].mxu0 }
 0x3a9   :  { %v2553_v8 = vpop.f32.mrb[90].mxu1 }
 0x3aa   :  { %v5803_v11 = vadd.f32 %v7187_v9, %v2553_v8  ;;  %v2904_v3 = vadd.f32 %v5802_v60, %v7130_v15  ;;  %v2555_v12 = vpop.f32.mrb[91].mxu1  ;;  %v6600_v15 = vld [vmem:[#allocation2 + $0x4e4] ss:$20 sps:$4 sm:$0xff]  }
 0x3ac   :  { %3210 = vst [vmem:[#allocation11 + $0x20] sm:$0xff] %v2904_v3  ;;  %v2907_v20 = vadd.f32 %v5803_v11, %v7134_v17  ;;  %2765 = vmatmul.mubr.bf16.gmra.mrb[196].mxu1 %v6596_v63  ;;  %v7228_v63 = vpop.f32.mrb[42].mxu0 }
 0x3ad   :  { %2772 = vmatprep.mubr.bf16.mxu1 %v6597_v0  ;;  %v7230_v8 = vpop.f32.mrb[43].mxu0 }
 0x3ae   :  { %3211 = vst [vmem:[#allocation11 + $0x28] sm:$0xff] %v2907_v20  ;;  %v3288_v26 = vpack.c.bf16 %v2907_v20, %v2904_v3 }
 0x3af   :  { %v2558_v27 = vpop.f32.mrb[92].mxu1 }
 0x3b0   :  { %v5804_v28 = vadd.f32 %v7187_v9, %v2558_v27  ;;  %v2560_v36 = vpop.f32.mrb[93].mxu1  ;;  %5626 = vmatprep.mubr.bf16.mxu0 %v3288_v26  ;;  %v6605_v26 = vld [vmem:[#allocation2 + $0x508] ss:$20 sps:$4 sm:$0xff]  }
 0x3b1   :  { %v2561_v39 = vpop.f32.mrb[94].mxu1 }
 0x3b2   :  { %v2912_v43 = vadd.f32 %v5804_v28, %v7128_v13  ;;  %v5805_v44 = vadd.f32 %v7187_v9, %v2561_v39  ;;  %v2563_v45 = vpop.f32.mrb[95].mxu1  ;;  %v6603_v13 = vld [vmem:[#allocation2 + $0x50c] ss:$20 sps:$4 sm:$0xff]  }
 0x3b3   :  { %v6608_v45 = vld [vmem:[#allocation2 + $0x530] ss:$20 sps:$4 sm:$0xff]  }
 0x3b4   :  { %3212 = vst [vmem:[#allocation11 + $0x30] sm:$0xff] %v2912_v43  ;;  %v2915_v17 = vadd.f32 %v5805_v44, %v7132_v16  ;;  %2773 = vmatmul.mubr.bf16.gmra.mrb[200].mxu1 %v6599_v37 }
 0x3b5   :  { %2780 = vmatprep.mubr.bf16.mxu1 %v6600_v15 }
 0x3b6   :  { %3213 = vst [vmem:[#allocation11 + $0x38] sm:$0xff] %v2915_v17  ;;  %v3289_v47 = vpack.c.bf16 %v2915_v17, %v2912_v43  ;;  %v7238_v17 = vpop.f32.mrb[44].mxu0 }
 0x3b7   :  { %v2566_v2 = vpop.f32.mrb[96].mxu1 }
 0x3b8   :  { %v5806_v51 = vadd.f32 %v7187_v9, %v2566_v2  ;;  %v2568_v52 = vpop.f32.mrb[97].mxu1  ;;  %5627 = vmatmul.mubr.bf16.gmra.mrb[84].mxu0 %v3289_v47  ;;  %v7240_v2 = vpop.f32.mrb[45].mxu0 }
 0x3b9   :  { %v2569_v55 = vpop.f32.mrb[98].mxu1 }
 0x3ba   :  { %v5807_v60 = vadd.f32 %v7187_v9, %v2569_v55  ;;  %v2920_v16 = vadd.f32 %v5806_v51, %v7138_v23  ;;  %v2571_v61 = vpop.f32.mrb[99].mxu1  ;;  %v6606_v23 = vld [vmem:[#allocation2 + $0x534] ss:$20 sps:$4 sm:$0xff]  }
 0x3bc   :  { %3214 = vst [vmem:[#allocation11 + $0x40] sm:$0xff] %v2920_v16  ;;  %v2923_v0 = vadd.f32 %v5807_v60, %v7142_v25  ;;  %2781 = vmatmul.mubr.bf16.gmra.mrb[204].mxu1 %v6602_v53  ;;  %v7244_v53 = vpop.f32.mrb[46].mxu0 }
 0x3bd   :  { %2788 = vmatprep.mubr.bf16.mxu1 %v6603_v13  ;;  %v7246_v55 = vpop.f32.mrb[47].mxu0 }
 0x3be   :  { %3215 = vst [vmem:[#allocation11 + $0x48] sm:$0xff] %v2923_v0  ;;  %v3290_v11 = vpack.c.bf16 %v2923_v0, %v2920_v16 }
 0x3bf   :  { %v2574_v3 = vpop.f32.mrb[100].mxu1 }
 0x3c0   :  { %v5808_v12 = vadd.f32 %v7187_v9, %v2574_v3  ;;  %v2576_v20 = vpop.f32.mrb[101].mxu1  ;;  %5630 = vmatprep.mubr.bf16.mxu0 %v3290_v11  ;;  %v6611_v11 = vld [vmem:[#allocation2 + $0x558] ss:$20 sps:$4 sm:$0xff]  }
 0x3c1   :  { %v2577_v27 = vpop.f32.mrb[102].mxu1 }
 0x3c2   :  { %v2928_v28 = vadd.f32 %v5808_v12, %v7136_v21  ;;  %v5809_v36 = vadd.f32 %v7187_v9, %v2577_v27  ;;  %v2579_v37 = vpop.f32.mrb[103].mxu1  ;;  %v6609_v21 = vld [vmem:[#allocation2 + $0x55c] ss:$20 sps:$4 sm:$0xff]  }
 0x3c3   :  { %v6614_v37 = vld [vmem:[#allocation2 + $0x580] ss:$20 sps:$4 sm:$0xff]  }
 0x3c4   :  { %3216 = vst [vmem:[#allocation11 + $0x50] sm:$0xff] %v2928_v28  ;;  %v2931_v25 = vadd.f32 %v5809_v36, %v7140_v24  ;;  %2789 = vmatmul.mubr.bf16.gmra.mrb[208].mxu1 %v6605_v26 }
 0x3c5   :  { %2796 = vmatprep.mubr.bf16.mxu1 %v6606_v23 }
 0x3c6   :  { %3217 = vst [vmem:[#allocation11 + $0x58] sm:$0xff] %v2931_v25  ;;  %v3291_v39 = vpack.c.bf16 %v2931_v25, %v2928_v28  ;;  %v7254_v25 = vpop.f32.mrb[48].mxu0 }
 0x3c7   :  { %v2582_v15 = vpop.f32.mrb[104].mxu1 }
 0x3c8   :  { %v5810_v43 = vadd.f32 %v7187_v9, %v2582_v15  ;;  %v2584_v44 = vpop.f32.mrb[105].mxu1  ;;  %5631 = vmatmul.mubr.bf16.gmra.mrb[88].mxu0 %v3291_v39  ;;  %v7256_v15 = vpop.f32.mrb[49].mxu0 }
 0x3c9   :  { %v2585_v47 = vpop.f32.mrb[106].mxu1 }
 0x3ca   :  { %v5811_v51 = vadd.f32 %v7187_v9, %v2585_v47  ;;  %v2936_v24 = vadd.f32 %v5810_v43, %v7146_v31  ;;  %v2587_v52 = vpop.f32.mrb[107].mxu1  ;;  %v6612_v31 = vld [vmem:[#allocation2 + $0x584] ss:$20 sps:$4 sm:$0xff]  }
 0x3cc   :  { %3218 = vst [vmem:[#allocation11 + $0x60] sm:$0xff] %v2936_v24  ;;  %v2939_v13 = vadd.f32 %v5811_v51, %v7150_v34  ;;  %2797 = vmatmul.mubr.bf16.gmra.mrb[212].mxu1 %v6608_v45  ;;  %v7260_v45 = vpop.f32.mrb[50].mxu0 }
 0x3cd   :  { %2804 = vmatprep.mubr.bf16.mxu1 %v6609_v21  ;;  %v7262_v47 = vpop.f32.mrb[51].mxu0 }
 0x3ce   :  { %3219 = vst [vmem:[#allocation11 + $0x68] sm:$0xff] %v2939_v13  ;;  %v3292_v60 = vpack.c.bf16 %v2939_v13, %v2936_v24  ;;  %v7265_v52 = vpop.f32.mrb[52].mxu0 }
 0x3cf   :  { %v2590_v16 = vpop.f32.mrb[108].mxu1 }
 0x3d0   :  { %v5812_v61 = vadd.f32 %v7187_v9, %v2590_v16  ;;  %v2592_v0 = vpop.f32.mrb[109].mxu1  ;;  %5634 = vmatprep.mubr.bf16.mxu0 %v3292_v60  ;;  %v7268_v16 = vpop.f32.mrb[53].mxu0 }
 0x3d1   :  { %v2593_v3 = vpop.f32.mrb[110].mxu1  ;;  %v6618_v0 = vld [vmem:[#allocation2 + $0x5d4] ss:$20 sps:$4 sm:$0xff]  }
 0x3d2   :  { %v2944_v12 = vadd.f32 %v5812_v61, %v7144_v29  ;;  %v5813_v20 = vadd.f32 %v7187_v9, %v2593_v3  ;;  %v2595_v26 = vpop.f32.mrb[111].mxu1  ;;  %v6615_v29 = vld [vmem:[#allocation2 + $0x5ac] ss:$20 sps:$4 sm:$0xff]  }
 0x3d4   :  { %3220 = vst [vmem:[#allocation11 + $0x70] sm:$0xff] %v2944_v12  ;;  %v2947_v34 = vadd.f32 %v5813_v20, %v7148_v32  ;;  %2805 = vmatmul.mubr.bf16.gmra.mrb[216].mxu1 %v6611_v11  ;;  %v7270_v11 = vpop.f32.mrb[54].mxu0 }
 0x3d5   :  { %2812 = vmatprep.mubr.bf16.mxu1 %v6612_v31 }
 0x3d6   :  { %3221 = vst [vmem:[#allocation11 + $0x78] sm:$0xff] %v2947_v34  ;;  %v3293_v27 = vpack.c.bf16 %v2947_v34, %v2944_v12  ;;  %v7274_v12 = vpop.f32.mrb[55].mxu0 }
 0x3d7   :  { %v2598_v23 = vpop.f32.mrb[112].mxu1  ;;  %v7276_v20 = vpop.f32.mrb[56].mxu0 }
 0x3d8   :  { %v5814_v28 = vadd.f32 %v7187_v9, %v2598_v23  ;;  %v2600_v36 = vpop.f32.mrb[113].mxu1  ;;  %5635 = vmatmul.mubr.bf16.gmra.mrb[92].mxu0 %v3293_v27  ;;  %v7279_v34 = vpop.f32.mrb[57].mxu0 }
 0x3d9   :  { %v2601_v39 = vpop.f32.mrb[114].mxu1  ;;  %v7281_v27 = vpop.f32.mrb[58].mxu0 }
 0x3da   :  { %v5815_v43 = vadd.f32 %v7187_v9, %v2601_v39  ;;  %v2952_v32 = vadd.f32 %v5814_v28, %v7154_v40  ;;  %v2603_v44 = vpop.f32.mrb[115].mxu1  ;;  %v6617_v40 = vld [vmem:[#allocation2 + $0x5a8] ss:$20 sps:$4 sm:$0xff]   ;;  %v7283_v28 = vpop.f32.mrb[59].mxu0 }
 0x3db   :  { %v7285_v36 = vpop.f32.mrb[60].mxu0 }
 0x3dc   :  { %3222 = vst [vmem:[#allocation11 + $0x80] sm:$0xff] %v2952_v32  ;;  %v2955_v21 = vadd.f32 %v5815_v43, %v7158_v42  ;;  %2813 = vmatmul.mubr.bf16.gmra.mrb[220].mxu1 %v6614_v37  ;;  %v7288_v43 = vpop.f32.mrb[61].mxu0 }
 0x3dd   :  { %2820 = vmatprep.mubr.bf16.mxu1 %v6615_v29  ;;  %v6620_v29 = vld [vmem:[#allocation2 + $0x5d0] ss:$20 sps:$4 sm:$0xff]   ;;  %v7290_v44 = vpop.f32.mrb[62].mxu0 }
 0x3de   :  { %3223 = vst [vmem:[#allocation11 + $0x88] sm:$0xff] %v2955_v21  ;;  %v3294_v51 = vpack.c.bf16 %v2955_v21, %v2952_v32  ;;  %v6621_v32 = vld [vmem:[#allocation2 + $0x5fc] ss:$20 sps:$4 sm:$0xff]  }
 0x3df   :  { %v2606_v24 = vpop.f32.mrb[116].mxu1 }
 0x3e0   :  { %v5816_v13 = vadd.f32 %v7187_v9, %v2606_v24  ;;  %v2608_v60 = vpop.f32.mrb[117].mxu1  ;;  %5638 = vmatprep.mubr.bf16.mxu0 %v3294_v51 }
 0x3e1   :  { %v2609_v61 = vpop.f32.mrb[118].mxu1 }
 0x3e2   :  { %v2960_v42 = vadd.f32 %v5816_v13, %v7152_v38  ;;  %v5817_v3 = vadd.f32 %v7187_v9, %v2609_v61  ;;  %v2611_v31 = vpop.f32.mrb[119].mxu1  ;;  %v7294_v13 = vpop.f32.mrb[63].mxu0 }
 0x3e3   :  { %v7296_v60 = vpop.f32.mrb[64].mxu0 }
 0x3e4   :  { %3224 = vst [vmem:[#allocation11 + $0x90] sm:$0xff] %v2960_v42  ;;  %v2963_v26 = vadd.f32 %v5817_v3, %v7156_v41  ;;  %2821 = vmatmul.mubr.bf16.gmra.mrb[224].mxu1 %v6617_v40  ;;  %v7299_v61 = vpop.f32.mrb[65].mxu0 }
 0x3e5   :  { %2828 = vmatprep.mubr.bf16.mxu1 %v6618_v0  ;;  %v7301_v0 = vpop.f32.mrb[66].mxu0 }
 0x3e6   :  { %3225 = vst [vmem:[#allocation11 + $0x98] sm:$0xff] %v2963_v26  ;;  %v3295_v23 = vpack.c.bf16 %v2963_v26, %v2960_v42  ;;  %v7303_v3 = vpop.f32.mrb[67].mxu0 }
 0x3e7   :  { %v2614_v38 = vpop.f32.mrb[120].mxu1 }
 0x3e8   :  { %v5818_v37 = vadd.f32 %v7187_v9, %v2614_v38  ;;  %v2616_v39 = vpop.f32.mrb[121].mxu1  ;;  %5639 = vmatmul.mubr.bf16.gmra.mrb[96].mxu0 %v3295_v23  ;;  %v6623_v38 = vld [vmem:[#allocation2 + $0x5f8] ss:$20 sps:$4 sm:$0xff]  }
 0x3e9   :  { %v2617_v41 = vpop.f32.mrb[122].mxu1  ;;  %v6624_v39 = vld [vmem:[#allocation2 + $0x624] ss:$20 sps:$4 sm:$0xff]  }
 0x3ea   :  { %v5819_v21 = vadd.f32 %v7187_v9, %v2617_v41  ;;  %v2968_v51 = vadd.f32 %v5818_v37, %v7162_v48  ;;  %v2619_v24 = vpop.f32.mrb[123].mxu1  ;;  %v7305_v48 = vpop.f32.mrb[68].mxu0 }
 0x3eb   :  { %v7308_v37 = vpop.f32.mrb[69].mxu0 }
 0x3ec   :  { %3226 = vst [vmem:[#allocation11 + $0xa0] sm:$0xff] %v2968_v51  ;;  %v2971_v40 = vadd.f32 %v5819_v21, %v7166_v50  ;;  %2829 = vmatmul.mubr.bf16.gmra.mrb[228].mxu1 %v6620_v29  ;;  %v7310_v29 = vpop.f32.mrb[70].mxu0 }
 0x3ed   :  { %2836 = vmatprep.mubr.bf16.mxu1 %v6621_v32  ;;  %7846 = vst [vmem:[#allocation18_spill] sm:$0xff] %v7310_v29 }
 0x3ee   :  { %3227 = vst [vmem:[#allocation11 + $0xa8] sm:$0xff] %v2971_v40  ;;  %v3296_v42 = vpack.c.bf16 %v2971_v40, %v2968_v51  ;;  %v7314_v51 = vpop.f32.mrb[71].mxu0 }
 0x3ef   :  { %v2622_v31 = vpop.f32.mrb[124].mxu1  ;;  %v7316_v24 = vpop.f32.mrb[72].mxu0 }
 0x3f0   :  { %v5820_v26 = vadd.f32 %v7187_v9, %v2622_v31  ;;  %v2624_v23 = vpop.f32.mrb[125].mxu1  ;;  %5642 = vmatprep.mubr.bf16.mxu0 %v3296_v42  ;;  %7847 = vst [vmem:[#allocation19_spill] sm:$0xff] %v7316_v24  ;;  %v7319_v42 = vpop.f32.mrb[73].mxu0  ;;  %v6626_v24 = vld [vmem:[#allocation2 + $0x620] ss:$20 sps:$4 sm:$0xff]  }
 0x3f1   :  { %v2625_v50 = vpop.f32.mrb[126].mxu1  ;;  %v7321_v31 = vpop.f32.mrb[74].mxu0 }
 0x3f2   :  { %v2976_v41 = vadd.f32 %v5820_v26, %v7160_v46  ;;  %v5821_v32 = vadd.f32 %v7187_v9, %v2625_v50  ;;  %v2627_v21 = vpop.f32.mrb[127].mxu1  ;;  %7848 = vst [vmem:[#allocation20_spill] sm:$0xff] %v7321_v31  ;;  %v7323_v33 = vpop.f32.mrb[75].mxu0 }
 0x3f3   :  { %v7325_v26 = vpop.f32.mrb[76].mxu0 }
 0x3f4   :  { %3228 = vst [vmem:[#allocation11 + $0xb0] sm:$0xff] %v2976_v41  ;;  %v2979_v40 = vadd.f32 %v5821_v32, %v7164_v49  ;;  %2837 = vmatmul.mubr.bf16.gmra.mrb[232].mxu1 %v6623_v38  ;;  %7849 = vst [vmem:[#allocation21_spill] sm:$0xff] %v7325_v26  ;;  %v7328_v29 = vpop.f32.mrb[77].mxu0 }
 0x3f5   :  { %2844 = vmatprep.mubr.bf16.mxu1 %v6624_v39  ;;  %7850 = vst [vmem:[#allocation22_spill] sm:$0xff] %v7328_v29  ;;  %v7330_v38 = vpop.f32.mrb[78].mxu0 }
 0x3f6   :  { %3229 = vst [vmem:[#allocation11 + $0xb8] sm:$0xff] %v2979_v40  ;;  %v3297_v23 = vpack.c.bf16 %v2979_v40, %v2976_v41  ;;  %7851 = vst [vmem:[#allocation23_spill] sm:$0xff] %v7330_v38  ;;  %v7334_v40 = vpop.f32.mrb[79].mxu0 }
 0x3f7   :  { %v2630_v46 = vpop.f32.mrb[128].mxu1 }
 0x3f8   :  { %v5822_v50 = vadd.f32 %v7187_v9, %v2630_v46  ;;  %v2632_v21 = vpop.f32.mrb[129].mxu1  ;;  %5643 = vmatmul.mubr.bf16.gmra.mrb[100].mxu0 %v3297_v23  ;;  %v6627_v46 = vld [vmem:[#allocation2 + $0x10] ss:$20 sps:$4 sm:$0xff]  }
 0x3f9   :  { %v2633_v49 = vpop.f32.mrb[130].mxu1 }
 0x3fa   :  { %v5823_v39 = vadd.f32 %v7187_v9, %v2633_v49  ;;  %v2984_v32 = vadd.f32 %v5822_v50, %v7170_v56  ;;  %v2635_v41 = vpop.f32.mrb[131].mxu1 }
 0x3fc   :  { %3230 = vst [vmem:[#allocation11 + $0xc0] sm:$0xff] %v2984_v32  ;;  %v2987_v26 = vadd.f32 %v5823_v39, %v7174_v58  ;;  %2845 = vmatmul.mubr.bf16.gmra.mrb[236].mxu1 %v6626_v24 }
 0x3fd   :  { %5718 = vmatprep.mubr.bf16.mxu1 %v6627_v46 }
 0x3fe   :  { %3231 = vst [vmem:[#allocation11 + $0xc8] sm:$0xff] %v2987_v26  ;;  %v3298_v23 = vpack.c.bf16 %v2987_v26, %v2984_v32 }
 0x3ff   :  { %v2638_v21 = vpop.f32.mrb[132].mxu1 }
 0x400   :  { %v5824_v29 = vadd.f32 %v7187_v9, %v2638_v21  ;;  %v2640_v31 = vpop.f32.mrb[133].mxu1  ;;  %5646 = vmatprep.mubr.bf16.mxu0 %v3298_v23 }
 0x401   :  { %v2641_v38 = vpop.f32.mrb[134].mxu1 }
 0x402   :  { %v2992_v49 = vadd.f32 %v5824_v29, %v7168_v54  ;;  %v5825_v56 = vadd.f32 %v7187_v9, %v2641_v38  ;;  %v2643_v50 = vpop.f32.mrb[135].mxu1 }
 0x404   :  { %3232 = vst [vmem:[#allocation11 + $0xd0] sm:$0xff] %v2992_v49  ;;  %v2995_v41 = vadd.f32 %v5825_v56, %v7172_v57 }
 0x406   :  { %3233 = vst [vmem:[#allocation11 + $0xd8] sm:$0xff] %v2995_v41  ;;  %v3299_v58 = vpack.c.bf16 %v2995_v41, %v2992_v49 }
 0x407   :  { %v2646_v24 = vpop.f32.mrb[136].mxu1 }
 0x408   :  { %v5826_v39 = vadd.f32 %v7187_v9, %v2646_v24  ;;  %v2648_v26 = vpop.f32.mrb[137].mxu1  ;;  %5647 = vmatmul.mubr.bf16.gmra.mrb[104].mxu0 %v3299_v58 }
 0x409   :  { %v2649_v32 = vpop.f32.mrb[138].mxu1 }
 0x40a   :  { %v5827_v31 = vadd.f32 %v7187_v9, %v2649_v32  ;;  %v3000_v46 = vadd.f32 %v5826_v39, %v7178_v1  ;;  %v2651_v23 = vpop.f32.mrb[139].mxu1 }
 0x40c   :  { %3234 = vst [vmem:[#allocation11 + $0xe0] sm:$0xff] %v3000_v46  ;;  %v3003_v54 = vadd.f32 %v5827_v31, %v7182_v6 }
 0x40e   :  { %3235 = vst [vmem:[#allocation11 + $0xe8] sm:$0xff] %v3003_v54  ;;  %v3300_v29 = vpack.c.bf16 %v3003_v54, %v3000_v46 }
 0x40f   :  { %v2654_v38 = vpop.f32.mrb[140].mxu1 }
 0x410   :  { %v5828_v57 = vadd.f32 %v7187_v9, %v2654_v38  ;;  %v2656_v21 = vpop.f32.mrb[141].mxu1  ;;  %5650 = vmatprep.mubr.bf16.mxu0 %v3300_v29 }
 0x411   :  { %v2657_v49 = vpop.f32.mrb[142].mxu1 }
 0x412   :  { %v3008_v56 = vadd.f32 %v5828_v57, %v7176_v62  ;;  %v5829_v50 = vadd.f32 %v7187_v9, %v2657_v49  ;;  %v2659_v41 = vpop.f32.mrb[143].mxu1 }
 0x414   :  { %3236 = vst [vmem:[#allocation11 + $0xf0] sm:$0xff] %v3008_v56  ;;  %v3011_v1 = vadd.f32 %v5829_v50, %v7180_v4 }
 0x416   :  { %3237 = vst [vmem:[#allocation11 + $0xf8] sm:$0xff] %v3011_v1  ;;  %v3301_v58 = vpack.c.bf16 %v3011_v1, %v3008_v56 }
 0x417   :  { %v2662_v24 = vpop.f32.mrb[144].mxu1 }
 0x418   :  { %v5830_v6 = vadd.f32 %v7187_v9, %v2662_v24  ;;  %v2664_v39 = vpop.f32.mrb[145].mxu1  ;;  %5651 = vmatmul.mubr.bf16.gmra.mrb[108].mxu0 %v3301_v58 }
 0x419   :  { %v2665_v26 = vpop.f32.mrb[146].mxu1 }
 0x41a   :  { %v5831_v32 = vadd.f32 %v7187_v9, %v2665_v26  ;;  %v3016_v31 = vadd.f32 %v5830_v6, %v7192_v22  ;;  %v2667_v46 = vpop.f32.mrb[147].mxu1 }
 0x41c   :  { %3238 = vst [vmem:[#allocation11 + $0x100] sm:$0xff] %v3016_v31  ;;  %v3019_v62 = vadd.f32 %v5831_v32, %v7198_v35 }
 0x41e   :  { %3239 = vst [vmem:[#allocation11 + $0x108] sm:$0xff] %v3019_v62  ;;  %v3302_v23 = vpack.c.bf16 %v3019_v62, %v3016_v31 }
 0x41f   :  { %v2670_v54 = vpop.f32.mrb[148].mxu1 }
 0x420   :  { %v5832_v4 = vadd.f32 %v7187_v9, %v2670_v54  ;;  %v2672_v29 = vpop.f32.mrb[149].mxu1  ;;  %5654 = vmatprep.mubr.bf16.mxu0 %v3302_v23 }
 0x421   :  { %v2673_v38 = vpop.f32.mrb[150].mxu1 }
 0x422   :  { %v3024_v57 = vadd.f32 %v5832_v4, %v7190_v18  ;;  %v5833_v21 = vadd.f32 %v7187_v9, %v2673_v38  ;;  %v2675_v49 = vpop.f32.mrb[151].mxu1 }
 0x424   :  { %3240 = vst [vmem:[#allocation11 + $0x110] sm:$0xff] %v3024_v57  ;;  %v3027_v22 = vadd.f32 %v5833_v21, %v7196_v30 }
 0x426   :  { %3241 = vst [vmem:[#allocation11 + $0x118] sm:$0xff] %v3027_v22  ;;  %v3303_v56 = vpack.c.bf16 %v3027_v22, %v3024_v57 }
 0x427   :  { %v2678_v50 = vpop.f32.mrb[152].mxu1 }
 0x428   :  { %v5834_v35 = vadd.f32 %v7187_v9, %v2678_v50  ;;  %v2680_v41 = vpop.f32.mrb[153].mxu1  ;;  %5655 = vmatmul.mubr.bf16.gmra.mrb[112].mxu0 %v3303_v56 }
 0x429   :  { %v2681_v1 = vpop.f32.mrb[154].mxu1 }
 0x42a   :  { %v5835_v58 = vadd.f32 %v7187_v9, %v2681_v1  ;;  %v3032_v24 = vadd.f32 %v5834_v35, %v7208_v10  ;;  %v2683_v6 = vpop.f32.mrb[155].mxu1 }
 0x42c   :  { %3242 = vst [vmem:[#allocation11 + $0x120] sm:$0xff] %v3032_v24  ;;  %v3035_v18 = vadd.f32 %v5835_v58, %v7214_v19 }
 0x42e   :  { %3243 = vst [vmem:[#allocation11 + $0x128] sm:$0xff] %v3035_v18  ;;  %v3304_v39 = vpack.c.bf16 %v3035_v18, %v3032_v24 }
 0x42f   :  { %v2686_v26 = vpop.f32.mrb[156].mxu1 }
 0x430   :  { %v5836_v30 = vadd.f32 %v7187_v9, %v2686_v26  ;;  %v2688_v32 = vpop.f32.mrb[157].mxu1  ;;  %5658 = vmatprep.mubr.bf16.mxu0 %v3304_v39 }
 0x431   :  { %v2689_v31 = vpop.f32.mrb[158].mxu1 }
 0x432   :  { %v3040_v46 = vadd.f32 %v5836_v30, %v7206_v7  ;;  %v5837_v62 = vadd.f32 %v7187_v9, %v2689_v31  ;;  %v2691_v23 = vpop.f32.mrb[159].mxu1 }
 0x434   :  { %3244 = vst [vmem:[#allocation11 + $0x130] sm:$0xff] %v3040_v46  ;;  %v3043_v10 = vadd.f32 %v5837_v62, %v7212_v14 }
 0x436   :  { %3245 = vst [vmem:[#allocation11 + $0x138] sm:$0xff] %v3043_v10  ;;  %v3305_v54 = vpack.c.bf16 %v3043_v10, %v3040_v46 }
 0x437   :  { %v2694_v4 = vpop.f32.mrb[160].mxu1 }
 0x438   :  { %v5838_v19 = vadd.f32 %v7187_v9, %v2694_v4  ;;  %v2696_v29 = vpop.f32.mrb[161].mxu1  ;;  %5659 = vmatmul.mubr.bf16.gmra.mrb[116].mxu0 %v3305_v54 }
 0x439   :  { %v2697_v38 = vpop.f32.mrb[162].mxu1 }
 0x43a   :  { %v5839_v57 = vadd.f32 %v7187_v9, %v2697_v38  ;;  %v3048_v21 = vadd.f32 %v5838_v19, %v7224_v59  ;;  %v2699_v49 = vpop.f32.mrb[163].mxu1 }
 0x43c   :  { %3246 = vst [vmem:[#allocation11 + $0x140] sm:$0xff] %v3048_v21  ;;  %v3051_v7 = vadd.f32 %v5839_v57, %v7230_v8 }
 0x43e   :  { %3247 = vst [vmem:[#allocation11 + $0x148] sm:$0xff] %v3051_v7  ;;  %v3306_v22 = vpack.c.bf16 %v3051_v7, %v3048_v21 }
 0x43f   :  { %v2702_v56 = vpop.f32.mrb[164].mxu1 }
 0x440   :  { %v5840_v14 = vadd.f32 %v7187_v9, %v2702_v56  ;;  %v2704_v50 = vpop.f32.mrb[165].mxu1  ;;  %5662 = vmatprep.mubr.bf16.mxu0 %v3306_v22 }
 0x441   :  { %v2705_v35 = vpop.f32.mrb[166].mxu1 }
 0x442   :  { %v3056_v41 = vadd.f32 %v5840_v14, %v7222_v5  ;;  %v5841_v1 = vadd.f32 %v7187_v9, %v2705_v35  ;;  %v2707_v58 = vpop.f32.mrb[167].mxu1 }
 0x444   :  { %3248 = vst [vmem:[#allocation11 + $0x150] sm:$0xff] %v3056_v41  ;;  %v3059_v59 = vadd.f32 %v5841_v1, %v7228_v63 }
 0x446   :  { %3249 = vst [vmem:[#allocation11 + $0x158] sm:$0xff] %v3059_v59  ;;  %v3307_v24 = vpack.c.bf16 %v3059_v59, %v3056_v41 }
 0x447   :  { %v2710_v6 = vpop.f32.mrb[168].mxu1 }
 0x448   :  { %v5842_v8 = vadd.f32 %v7187_v9, %v2710_v6  ;;  %v2712_v18 = vpop.f32.mrb[169].mxu1  ;;  %5663 = vmatmul.mubr.bf16.gmra.mrb[120].mxu0 %v3307_v24 }
 0x449   :  { %v2713_v39 = vpop.f32.mrb[170].mxu1 }
 0x44a   :  { %v5843_v26 = vadd.f32 %v7187_v9, %v2713_v39  ;;  %v3064_v30 = vadd.f32 %v5842_v8, %v7240_v2  ;;  %v2715_v32 = vpop.f32.mrb[171].mxu1 }
 0x44c   :  { %3250 = vst [vmem:[#allocation11 + $0x160] sm:$0xff] %v3064_v30  ;;  %v3067_v5 = vadd.f32 %v5843_v26, %v7246_v55 }
 0x44e   :  { %3251 = vst [vmem:[#allocation11 + $0x168] sm:$0xff] %v3067_v5  ;;  %v3308_v31 = vpack.c.bf16 %v3067_v5, %v3064_v30 }
 0x44f   :  { %v2718_v46 = vpop.f32.mrb[172].mxu1 }
 0x450   :  { %v5844_v63 = vadd.f32 %v7187_v9, %v2718_v46  ;;  %v2720_v62 = vpop.f32.mrb[173].mxu1  ;;  %5666 = vmatprep.mubr.bf16.mxu0 %v3308_v31 }
 0x451   :  { %v2721_v23 = vpop.f32.mrb[174].mxu1 }
 0x452   :  { %v3072_v10 = vadd.f32 %v5844_v63, %v7238_v17  ;;  %v5845_v54 = vadd.f32 %v7187_v9, %v2721_v23  ;;  %v2723_v4 = vpop.f32.mrb[175].mxu1 }
 0x454   :  { %3252 = vst [vmem:[#allocation11 + $0x170] sm:$0xff] %v3072_v10  ;;  %v3075_v2 = vadd.f32 %v5845_v54, %v7244_v53 }
 0x456   :  { %3253 = vst [vmem:[#allocation11 + $0x178] sm:$0xff] %v3075_v2  ;;  %v3309_v19 = vpack.c.bf16 %v3075_v2, %v3072_v10 }
 0x457   :  { %v2726_v29 = vpop.f32.mrb[176].mxu1 }
 0x458   :  { %v5846_v55 = vadd.f32 %v7187_v9, %v2726_v29  ;;  %v2728_v38 = vpop.f32.mrb[177].mxu1  ;;  %5667 = vmatmul.mubr.bf16.gmra.mrb[124].mxu0 %v3309_v19 }
 0x459   :  { %v2729_v57 = vpop.f32.mrb[178].mxu1 }
 0x45a   :  { %v5847_v21 = vadd.f32 %v7187_v9, %v2729_v57  ;;  %v3080_v49 = vadd.f32 %v5846_v55, %v7256_v15  ;;  %v2731_v7 = vpop.f32.mrb[179].mxu1 }
 0x45c   :  { %3254 = vst [vmem:[#allocation11 + $0x180] sm:$0xff] %v3080_v49  ;;  %v3083_v17 = vadd.f32 %v5847_v21, %v7262_v47 }
 0x45e   :  { %3255 = vst [vmem:[#allocation11 + $0x188] sm:$0xff] %v3083_v17  ;;  %v3310_v22 = vpack.c.bf16 %v3083_v17, %v3080_v49 }
 0x45f   :  { %v2734_v56 = vpop.f32.mrb[180].mxu1 }
 0x460   :  { %v5848_v53 = vadd.f32 %v7187_v9, %v2734_v56  ;;  %v2736_v14 = vpop.f32.mrb[181].mxu1  ;;  %5670 = vmatprep.mubr.bf16.mxu0 %v3310_v22 }
 0x461   :  { %v2737_v50 = vpop.f32.mrb[182].mxu1 }
 0x462   :  { %v3088_v35 = vadd.f32 %v5848_v53, %v7254_v25  ;;  %v5849_v41 = vadd.f32 %v7187_v9, %v2737_v50  ;;  %v2739_v1 = vpop.f32.mrb[183].mxu1 }
 0x464   :  { %3256 = vst [vmem:[#allocation11 + $0x190] sm:$0xff] %v3088_v35  ;;  %v3091_v15 = vadd.f32 %v5849_v41, %v7260_v45 }
 0x466   :  { %3257 = vst [vmem:[#allocation11 + $0x198] sm:$0xff] %v3091_v15  ;;  %v3311_v58 = vpack.c.bf16 %v3091_v15, %v3088_v35 }
 0x467   :  { %v2742_v59 = vpop.f32.mrb[184].mxu1 }
 0x468   :  { %v5850_v47 = vadd.f32 %v7187_v9, %v2742_v59  ;;  %v2744_v24 = vpop.f32.mrb[185].mxu1  ;;  %5671 = vmatmul.mubr.bf16.gmra.mrb[128].mxu0 %v3311_v58 }
 0x469   :  { %v2745_v6 = vpop.f32.mrb[186].mxu1 }
 0x46a   :  { %v3096_v8 = vadd.f32 %v5850_v47, %v7268_v16  ;;  %v5851_v18 = vadd.f32 %v7187_v9, %v2745_v6  ;;  %v2747_v39 = vpop.f32.mrb[187].mxu1 }
 0x46c   :  { %3258 = vst [vmem:[#allocation11 + $0x1a0] sm:$0xff] %v3096_v8  ;;  %v3099_v25 = vadd.f32 %v5851_v18, %v7274_v12 }
 0x46e   :  { %3259 = vst [vmem:[#allocation11 + $0x1a8] sm:$0xff] %v3099_v25  ;;  %v3312_v26 = vpack.c.bf16 %v3099_v25, %v3096_v8 }
 0x46f   :  { %v2750_v30 = vpop.f32.mrb[188].mxu1 }
 0x470   :  { %v5852_v45 = vadd.f32 %v7187_v9, %v2750_v30  ;;  %v2752_v32 = vpop.f32.mrb[189].mxu1  ;;  %5674 = vmatprep.mubr.bf16.mxu0 %v3312_v26 }
 0x471   :  { %v2753_v5 = vpop.f32.mrb[190].mxu1 }
 0x472   :  { %v3104_v31 = vadd.f32 %v5852_v45, %v7265_v52  ;;  %v5853_v46 = vadd.f32 %v7187_v9, %v2753_v5  ;;  %v2755_v63 = vpop.f32.mrb[191].mxu1 }
 0x474   :  { %3260 = vst [vmem:[#allocation11 + $0x1b0] sm:$0xff] %v3104_v31  ;;  %v3107_v16 = vadd.f32 %v5853_v46, %v7270_v11 }
 0x476   :  { %3261 = vst [vmem:[#allocation11 + $0x1b8] sm:$0xff] %v3107_v16  ;;  %v3313_v62 = vpack.c.bf16 %v3107_v16, %v3104_v31 }
 0x477   :  { %v2758_v23 = vpop.f32.mrb[192].mxu1 }
 0x478   :  { %v5854_v12 = vadd.f32 %v7187_v9, %v2758_v23  ;;  %v2760_v10 = vpop.f32.mrb[193].mxu1  ;;  %5675 = vmatmul.mubr.bf16.gmra.mrb[132].mxu0 %v3313_v62 }
 0x479   :  { %v2761_v54 = vpop.f32.mrb[194].mxu1 }
 0x47a   :  { %v3112_v4 = vadd.f32 %v5854_v12, %v7279_v34  ;;  %v5855_v2 = vadd.f32 %v7187_v9, %v2761_v54  ;;  %v2763_v19 = vpop.f32.mrb[195].mxu1 }
 0x47b   :  { %v5624_v52 = vpop.f32.mrb[80].mxu0 }
 0x47c   :  { %3262 = vst [vmem:[#allocation11 + $0x1c0] sm:$0xff] %v3112_v4  ;;  %v3115_v29 = vadd.f32 %v5855_v2, %v7283_v28  ;;  %v3424_v55 = vpop.f32.mrb[81].mxu0  ;;  %v7852_v28 = vmov 0  }
 0x47d   :  { %v5625_v38 = vpop.f32.mrb[82].mxu0 }
 0x47e   :  { %3263 = vst [vmem:[#allocation11 + $0x1c8] sm:$0xff] %v3115_v29  ;;  %v3744_v11 = vpack.c.bf16 %v5625_v38, %v5624_v52  ;;  %v3427_v57 = vpop.f32.mrb[83].mxu0  ;;  %v3314_v21 = vpack.c.bf16 %v3115_v29, %v3112_v4 }
 0x47f   :  { %v3743_v49 = vpack.c.bf16 %v3427_v57, %v3424_v55  ;;  %v2766_v7 = vpop.f32.mrb[196].mxu1  ;;  %v7424_v57 = vld [vmem:[%s7839_s3] ss:$0 sm:$0xff] }
 0x480   :  { %v5856_v17 = vadd.f32 %v7187_v9, %v2766_v7  ;;  %v2768_v22 = vpop.f32.mrb[197].mxu1  ;;  %5678 = vmatprep.mubr.bf16.mxu0 %v3314_v21 }
 0x481   :  { %v2769_v34 = vpop.f32.mrb[198].mxu1  ;;  %3791 = vmatpush1.bf16.msra.mxu0 %v3743_v49 }
 0x482   :  { %v3120_v56 = vadd.f32 %v5856_v17, %v7276_v20  ;;  %v5857_v53 = vadd.f32 %v7187_v9, %v2769_v34  ;;  %v2771_v14 = vpop.f32.mrb[199].mxu1  ;;  %3792 = vmatprep.subr.bf16.mxu0 %v7852_v28 }
 0x484   :  { %3264 = vst [vmem:[#allocation11 + $0x1d0] sm:$0xff] %v3120_v56  ;;  %v3123_v50 = vadd.f32 %v5857_v53, %v7281_v27 }
 0x485   :  { %3793 = vmatpush1.bf16.msra.mxu0 %v3744_v11 }
 0x486   :  { %3265 = vst [vmem:[#allocation11 + $0x1d8] sm:$0xff] %v3123_v50  ;;  %v3315_v35 = vpack.c.bf16 %v3123_v50, %v3120_v56  ;;  %3794 = vmatprep.subr.bf16.mxu0 %v7852_v28 }
 0x487   :  { %v2774_v41 = vpop.f32.mrb[200].mxu1 }
 0x488   :  { %v5858_v1 = vadd.f32 %v7187_v9, %v2774_v41  ;;  %v2776_v15 = vpop.f32.mrb[201].mxu1  ;;  %5679 = vmatmul.mubr.bf16.gmra.mrb[136].mxu0 %v3315_v35 }
 0x489   :  { %v2777_v58 = vpop.f32.mrb[202].mxu1 }
 0x48a   :  { %v3128_v20 = vadd.f32 %v5858_v1, %v7288_v43  ;;  %v5859_v59 = vadd.f32 %v7187_v9, %v2777_v58  ;;  %v2779_v47 = vpop.f32.mrb[203].mxu1 }
 0x48b   :  { %v5628_v24 = vpop.f32.mrb[84].mxu0 }
 0x48c   :  { %3266 = vst [vmem:[#allocation11 + $0x1e0] sm:$0xff] %v3128_v20  ;;  %v3131_v27 = vadd.f32 %v5859_v59, %v7294_v13  ;;  %v3440_v6 = vpop.f32.mrb[85].mxu0 }
 0x48d   :  { %v5629_v8 = vpop.f32.mrb[86].mxu0 }
 0x48e   :  { %3267 = vst [vmem:[#allocation11 + $0x1e8] sm:$0xff] %v3131_v27  ;;  %v3746_v18 = vpack.c.bf16 %v5629_v8, %v5628_v24  ;;  %v3443_v39 = vpop.f32.mrb[87].mxu0  ;;  %v3316_v25 = vpack.c.bf16 %v3131_v27, %v3128_v20 }
 0x48f   :  { %v3745_v26 = vpack.c.bf16 %v3443_v39, %v3440_v6  ;;  %v2782_v30 = vpop.f32.mrb[204].mxu1 }
 0x490   :  { %v5860_v45 = vadd.f32 %v7187_v9, %v2782_v30  ;;  %v2784_v32 = vpop.f32.mrb[205].mxu1  ;;  %5682 = vmatprep.mubr.bf16.mxu0 %v3316_v25 }
 0x491   :  { %v2785_v43 = vpop.f32.mrb[206].mxu1  ;;  %3795 = vmatpush1.bf16.msra.mxu0 %v3745_v26 }
 0x492   :  { %v3136_v5 = vadd.f32 %v5860_v45, %v7285_v36  ;;  %v5861_v31 = vadd.f32 %v7187_v9, %v2785_v43  ;;  %v2787_v46 = vpop.f32.mrb[207].mxu1  ;;  %3796 = vmatprep.subr.bf16.mxu0 %v7852_v28 }
 0x494   :  { %3268 = vst [vmem:[#allocation11 + $0x1f0] sm:$0xff] %v3136_v5  ;;  %v3139_v13 = vadd.f32 %v5861_v31, %v7290_v44 }
 0x495   :  { %3797 = vmatpush1.bf16.msra.mxu0 %v3746_v18 }
 0x496   :  { %3269 = vst [vmem:[#allocation11 + $0x1f8] sm:$0xff] %v3139_v13  ;;  %v3317_v63 = vpack.c.bf16 %v3139_v13, %v3136_v5  ;;  %3798 = vmatprep.subr.bf16.mxu0 %v7852_v28 }
 0x497   :  { %v2790_v16 = vpop.f32.mrb[208].mxu1 }
 0x498   :  { %v5862_v62 = vadd.f32 %v7187_v9, %v2790_v16  ;;  %v2792_v23 = vpop.f32.mrb[209].mxu1  ;;  %5683 = vmatmul.mubr.bf16.gmra.mrb[140].mxu0 %v3317_v63 }
 0x499   :  { %v2793_v12 = vpop.f32.mrb[210].mxu1 }
 0x49a   :  { %v3144_v36 = vadd.f32 %v5862_v62, %v7299_v61  ;;  %v5863_v10 = vadd.f32 %v7187_v9, %v2793_v12  ;;  %v2795_v54 = vpop.f32.mrb[211].mxu1 }
 0x49b   :  { %v5632_v4 = vpop.f32.mrb[88].mxu0 }
 0x49c   :  { %3270 = vst [vmem:[#allocation11 + $0x200] sm:$0xff] %v3144_v36  ;;  %v3147_v44 = vadd.f32 %v5863_v10, %v7303_v3  ;;  %v3456_v2 = vpop.f32.mrb[89].mxu0 }
 0x49d   :  { %v5633_v19 = vpop.f32.mrb[90].mxu0 }
 0x49e   :  { %3271 = vst [vmem:[#allocation11 + $0x208] sm:$0xff] %v3147_v44  ;;  %v3748_v52 = vpack.c.bf16 %v5633_v19, %v5632_v4  ;;  %v3459_v29 = vpop.f32.mrb[91].mxu0  ;;  %v3318_v55 = vpack.c.bf16 %v3147_v44, %v3144_v36  ;;  %v7854_v44 = vld [vmem:[#allocation19_spill] sm:$0xff] }
 0x49f   :  { %v3747_v38 = vpack.c.bf16 %v3459_v29, %v3456_v2  ;;  %v2798_v11 = vpop.f32.mrb[212].mxu1 }
 0x4a0   :  { %v5864_v9 = vadd.f32 %v7424_v57, %v2798_v11  ;;  %v2800_v61 = vpop.f32.mrb[213].mxu1  ;;  %5686 = vmatprep.mubr.bf16.mxu0 %v3318_v55 }
 0x4a1   :  { %v2801_v21 = vpop.f32.mrb[214].mxu1  ;;  %3799 = vmatpush1.bf16.msra.mxu0 %v3747_v38 }
 0x4a2   :  { %v3152_v3 = vadd.f32 %v5864_v9, %v7296_v60  ;;  %v5865_v49 = vadd.f32 %v7424_v57, %v2801_v21  ;;  %v2803_v7 = vpop.f32.mrb[215].mxu1  ;;  %3800 = vmatprep.subr.bf16.mxu0 %v7852_v28  ;;  %v7856_v21 = vld [vmem:[#allocation22_spill] sm:$0xff] }
 0x4a4   :  { %3272 = vst [vmem:[#allocation11 + $0x210] sm:$0xff] %v3152_v3  ;;  %v3155_v17 = vadd.f32 %v5865_v49, %v7301_v0 }
 0x4a5   :  { %3801 = vmatpush1.bf16.msra.mxu0 %v3748_v52 }
 0x4a6   :  { %3273 = vst [vmem:[#allocation11 + $0x218] sm:$0xff] %v3155_v17  ;;  %v3319_v22 = vpack.c.bf16 %v3155_v17, %v3152_v3  ;;  %3802 = vmatprep.subr.bf16.mxu0 %v7852_v28 }
 0x4a7   :  { %v2806_v34 = vpop.f32.mrb[216].mxu1 }
 0x4a8   :  { %v5866_v56 = vadd.f32 %v7424_v57, %v2806_v34  ;;  %v2808_v53 = vpop.f32.mrb[217].mxu1  ;;  %5687 = vmatmul.mubr.bf16.gmra.mrb[144].mxu0 %v3319_v22 }
 0x4a9   :  { %v2809_v14 = vpop.f32.mrb[218].mxu1 }
 0x4aa   :  { %v3160_v60 = vadd.f32 %v5866_v56, %v7308_v37  ;;  %v5867_v50 = vadd.f32 %v7424_v57, %v2809_v14  ;;  %v2811_v35 = vpop.f32.mrb[219].mxu1 }
 0x4ab   :  { %v5636_v41 = vpop.f32.mrb[92].mxu0 }
 0x4ac   :  { %3274 = vst [vmem:[#allocation11 + $0x220] sm:$0xff] %v3160_v60  ;;  %v3163_v0 = vadd.f32 %v5867_v50, %v7314_v51  ;;  %v3472_v1 = vpop.f32.mrb[93].mxu0  ;;  %v7853_v51 = vld [vmem:[#allocation18_spill] sm:$0xff] }
 0x4ad   :  { %v5637_v15 = vpop.f32.mrb[94].mxu0 }
 0x4ae   :  { %3275 = vst [vmem:[#allocation11 + $0x228] sm:$0xff] %v3163_v0  ;;  %v3750_v58 = vpack.c.bf16 %v5637_v15, %v5636_v41  ;;  %v3475_v20 = vpop.f32.mrb[95].mxu0  ;;  %v3320_v59 = vpack.c.bf16 %v3163_v0, %v3160_v60  ;;  %v7857_v15 = vld [vmem:[#allocation21_spill] sm:$0xff] }
 0x4af   :  { %v3749_v47 = vpack.c.bf16 %v3475_v20, %v3472_v1  ;;  %v2814_v24 = vpop.f32.mrb[220].mxu1 }
 0x4b0   :  { %v5868_v27 = vadd.f32 %v7424_v57, %v2814_v24  ;;  %v2816_v6 = vpop.f32.mrb[221].mxu1  ;;  %5690 = vmatprep.mubr.bf16.mxu0 %v3320_v59 }
 0x4b1   :  { %v2817_v37 = vpop.f32.mrb[222].mxu1  ;;  %3803 = vmatpush1.bf16.msra.mxu0 %v3749_v47 }
 0x4b2   :  { %v3168_v8 = vadd.f32 %v5868_v27, %v7305_v48  ;;  %v5869_v18 = vadd.f32 %v7424_v57, %v2817_v37  ;;  %v2819_v39 = vpop.f32.mrb[223].mxu1  ;;  %3804 = vmatprep.subr.bf16.mxu0 %v7852_v28  ;;  %v6629_v27 = vld [vmem:[#allocation2 + $0x4] ss:$20 sps:$4 sm:$0xff]  }
 0x4b4   :  { %3276 = vst [vmem:[#allocation11 + $0x230] sm:$0xff] %v3168_v8  ;;  %v3171_v25 = vadd.f32 %v5869_v18, %v7853_v51 }
 0x4b5   :  { %3805 = vmatpush1.bf16.msra.mxu0 %v3750_v58 }
 0x4b6   :  { %3277 = vst [vmem:[#allocation11 + $0x238] sm:$0xff] %v3171_v25  ;;  %v3321_v26 = vpack.c.bf16 %v3171_v25, %v3168_v8  ;;  %3806 = vmatprep.subr.bf16.mxu0 %v7852_v28 }
 0x4b7   :  { %v2822_v30 = vpop.f32.mrb[224].mxu1 }
 0x4b8   :  { %v5870_v45 = vadd.f32 %v7424_v57, %v2822_v30  ;;  %v2824_v32 = vpop.f32.mrb[225].mxu1  ;;  %5691 = vmatmul.mubr.bf16.gmra.mrb[148].mxu0 %v3321_v26 }
 0x4b9   :  { %v2825_v43 = vpop.f32.mrb[226].mxu1 }
 0x4ba   :  { %v3176_v48 = vadd.f32 %v5870_v45, %v7319_v42  ;;  %v5871_v5 = vadd.f32 %v7424_v57, %v2825_v43  ;;  %v2827_v31 = vpop.f32.mrb[227].mxu1  ;;  %v6630_v43 = vld [vmem:[#allocation2] ss:$20 sps:$4 sm:$0xff]  }
 0x4bb   :  { %v5640_v46 = vpop.f32.mrb[96].mxu0 }
 0x4bc   :  { %3278 = vst [vmem:[#allocation11 + $0x240] sm:$0xff] %v3176_v48  ;;  %v3179_v13 = vadd.f32 %v5871_v5, %v7323_v33  ;;  %v3488_v63 = vpop.f32.mrb[97].mxu0  ;;  %v7855_v33 = vld [vmem:[#allocation20_spill] sm:$0xff] }
 0x4bd   :  { %v5641_v16 = vpop.f32.mrb[98].mxu0 }
 0x4be   :  { %3279 = vst [vmem:[#allocation11 + $0x248] sm:$0xff] %v3179_v13  ;;  %v3752_v62 = vpack.c.bf16 %v5641_v16, %v5640_v46  ;;  %v3491_v23 = vpop.f32.mrb[99].mxu0  ;;  %v3322_v12 = vpack.c.bf16 %v3179_v13, %v3176_v48  ;;  %v6631_v48 = vld [vmem:[#allocation2 + $0x2c] ss:$20 sps:$4 sm:$0xff]  }
 0x4bf   :  { %v3751_v36 = vpack.c.bf16 %v3491_v23, %v3488_v63  ;;  %v2830_v10 = vpop.f32.mrb[228].mxu1  ;;  %v6633_v23 = vld [vmem:[#allocation2 + $0x54] ss:$20 sps:$4 sm:$0xff]  }
 0x4c0   :  { %v5872_v54 = vadd.f32 %v7424_v57, %v2830_v10  ;;  %v2832_v4 = vpop.f32.mrb[229].mxu1  ;;  %5694 = vmatprep.mubr.bf16.mxu0 %v3322_v12  ;;  %v6634_v12 = vld [vmem:[#allocation2 + $0x50] ss:$20 sps:$4 sm:$0xff]  }
 0x4c1   :  { %v2833_v42 = vpop.f32.mrb[230].mxu1  ;;  %3807 = vmatpush1.bf16.msra.mxu0 %v3751_v36  ;;  %v6635_v36 = vld [vmem:[#allocation2 + $0x7c] ss:$20 sps:$4 sm:$0xff]  }
 0x4c2   :  { %v3184_v2 = vadd.f32 %v5872_v54, %v7854_v44  ;;  %v5873_v19 = vadd.f32 %v7424_v57, %v2833_v42  ;;  %v2835_v52 = vpop.f32.mrb[231].mxu1  ;;  %3808 = vmatprep.subr.bf16.mxu0 %v7852_v28 }
 0x4c3   :  { %v6637_v52 = vld [vmem:[#allocation2 + $0xa4] ss:$20 sps:$4 sm:$0xff]  }
 0x4c4   :  { %3280 = vst [vmem:[#allocation11 + $0x250] sm:$0xff] %v3184_v2  ;;  %v3187_v29 = vadd.f32 %v5873_v19, %v7855_v33  ;;  %v6636_v19 = vld [vmem:[#allocation2 + $0x78] ss:$20 sps:$4 sm:$0xff]   ;;  %v6638_v33 = vld [vmem:[#allocation2 + $0xa0] ss:$20 sps:$4 sm:$0xff]  }
 0x4c5   :  { %3809 = vmatpush1.bf16.msra.mxu0 %v3752_v62  ;;  %v6632_v62 = vld [vmem:[#allocation2 + $0x28] ss:$20 sps:$4 sm:$0xff]  }
 0x4c6   :  { %3281 = vst [vmem:[#allocation11 + $0x258] sm:$0xff] %v3187_v29  ;;  %v3323_v55 = vpack.c.bf16 %v3187_v29, %v3184_v2  ;;  %3810 = vmatprep.subr.bf16.mxu0 %v7852_v28  ;;  %v6639_v29 = vld [vmem:[#allocation2 + $0xcc] ss:$20 sps:$4 sm:$0xff]  }
 0x4c7   :  { %v2838_v38 = vpop.f32.mrb[232].mxu1 }
 0x4c8   :  { %v5874_v11 = vadd.f32 %v7424_v57, %v2838_v38  ;;  %v2840_v9 = vpop.f32.mrb[233].mxu1  ;;  %5695 = vmatmul.mubr.bf16.gmra.mrb[152].mxu0 %v3323_v55 }
 0x4c9   :  { %v2841_v61 = vpop.f32.mrb[234].mxu1 }
 0x4ca   :  { %v3192_v3 = vadd.f32 %v5874_v11, %v7856_v21  ;;  %v5875_v49 = vadd.f32 %v7424_v57, %v2841_v61  ;;  %v2843_v7 = vpop.f32.mrb[235].mxu1 }
 0x4cb   :  { %v5644_v17 = vpop.f32.mrb[100].mxu0  ;;  %v6642_v7 = vld [vmem:[#allocation2 + $0xf0] ss:$20 sps:$4 sm:$0xff]  }
 0x4cc   :  { %3282 = vst [vmem:[#allocation11 + $0x260] sm:$0xff] %v3192_v3  ;;  %v3195_v22 = vadd.f32 %v5875_v49, %v7334_v40  ;;  %v3504_v34 = vpop.f32.mrb[101].mxu0  ;;  %v7858_v40 = vld [vmem:[#allocation23_spill] sm:$0xff] }
 0x4cd   :  { %v5645_v56 = vpop.f32.mrb[102].mxu0  ;;  %v6641_v49 = vld [vmem:[#allocation2 + $0xf4] ss:$20 sps:$4 sm:$0xff]  }
 0x4ce   :  { %3283 = vst [vmem:[#allocation11 + $0x268] sm:$0xff] %v3195_v22  ;;  %v3754_v53 = vpack.c.bf16 %v5645_v56, %v5644_v17  ;;  %v3507_v14 = vpop.f32.mrb[103].mxu0  ;;  %v3324_v60 = vpack.c.bf16 %v3195_v22, %v3192_v3  ;;  %v6640_v3 = vld [vmem:[#allocation2 + $0xc8] ss:$20 sps:$4 sm:$0xff]  }
 0x4cf   :  { %v3753_v50 = vpack.c.bf16 %v3507_v14, %v3504_v34  ;;  %v2846_v35 = vpop.f32.mrb[236].mxu1  ;;  %v6643_v17 = vld [vmem:[#allocation2 + $0x11c] ss:$20 sps:$4 sm:$0xff]  }
 0x4d0   :  { %v5876_v41 = vadd.f32 %v7424_v57, %v2846_v35  ;;  %v2848_v0 = vpop.f32.mrb[237].mxu1  ;;  %5698 = vmatprep.mubr.bf16.mxu0 %v3324_v60  ;;  %v6645_v35 = vld [vmem:[#allocation2 + $0x144] ss:$20 sps:$4 sm:$0xff]  }
 0x4d1   :  { %v2849_v1 = vpop.f32.mrb[238].mxu1  ;;  %3811 = vmatpush1.bf16.msra.mxu0 %v3753_v50  ;;  %v6644_v50 = vld [vmem:[#allocation2 + $0x118] ss:$20 sps:$4 sm:$0xff]  }
 0x4d2   :  { %v3200_v58 = vadd.f32 %v5876_v41, %v7857_v15  ;;  %v5877_v20 = vadd.f32 %v7424_v57, %v2849_v1  ;;  %v2851_v59 = vpop.f32.mrb[239].mxu1  ;;  %3812 = vmatprep.subr.bf16.mxu0 %v7852_v28  ;;  %v6646_v41 = vld [vmem:[#allocation2 + $0x140] ss:$20 sps:$4 sm:$0xff]  }
 0x4d3   :  { %v6647_v0 = vld [vmem:[#allocation2 + $0x16c] ss:$20 sps:$4 sm:$0xff]  }
 0x4d4   :  { %3284 = vst [vmem:[#allocation11 + $0x270] sm:$0xff] %v3200_v58  ;;  %v3203_v47 = vadd.f32 %v5877_v20, %v7858_v40 }
 0x4d5   :  { %3813 = vmatpush1.bf16.msra.mxu0 %v3754_v53 }
 0x4d6   :  { %3285 = vst [vmem:[#allocation11 + $0x278] sm:$0xff] %v3203_v47  ;;  %v3325_v24 = vpack.c.bf16 %v3203_v47, %v3200_v58  ;;  %3814 = vmatprep.subr.bf16.mxu0 %v7852_v28  ;;  %v6648_v47 = vld [vmem:[#allocation2 + $0x168] ss:$20 sps:$4 sm:$0xff]  }
 0x4d8   :  { %5699 = vmatmul.mubr.bf16.gmra.mrb[156].mxu0 %v3325_v24  ;;  %v6649_v24 = vld [vmem:[#allocation2 + $0x194] ss:$20 sps:$4 sm:$0xff]  }
 0x4d9   :  { %3822 = vmatprep.mubr.bf16.mxu0 %v6629_v27  ;;  %v6650_v27 = vld [vmem:[#allocation2 + $0x190] ss:$20 sps:$4 sm:$0xff]  }
 0x4db   :  { %v5648_v6 = vpop.f32.mrb[104].mxu0 }
 0x4dc   :  { %v3520_v37 = vpop.f32.mrb[105].mxu0 }
 0x4dd   :  { %v5649_v8 = vpop.f32.mrb[106].mxu0 }
 0x4de   :  { %v3756_v18 = vpack.c.bf16 %v5649_v8, %v5648_v6  ;;  %v3523_v39 = vpop.f32.mrb[107].mxu0  ;;  %v6651_v6 = vld [vmem:[#allocation2 + $0x1bc] ss:$20 sps:$4 sm:$0xff]  }
 0x4df   :  { %v3755_v57 = vpack.c.bf16 %v3523_v39, %v3520_v37 }
 0x4e1   :  { %3815 = vmatpush1.bf16.msra.mxu0 %v3755_v57 }
 0x4e2   :  { %3816 = vmatprep.subr.bf16.mxu0 %v7852_v28 }
 0x4e5   :  { %3817 = vmatpush1.bf16.msra.mxu0 %v3756_v18 }
 0x4e6   :  { %3818 = vmatprep.subr.bf16.mxu0 %v7852_v28 }
 0x4eb   :  { %v5652_v51 = vpop.f32.mrb[108].mxu0 }
 0x4ec   :  { %v3536_v25 = vpop.f32.mrb[109].mxu0 }
 0x4ed   :  { %v5653_v26 = vpop.f32.mrb[110].mxu0 }
 0x4ee   :  { %v3758_v30 = vpack.c.bf16 %v5653_v26, %v5652_v51  ;;  %v3539_v45 = vpop.f32.mrb[111].mxu0  ;;  %v6653_v26 = vld [vmem:[#allocation2 + $0x1e4] ss:$20 sps:$4 sm:$0xff]  }
 0x4ef   :  { %v3757_v32 = vpack.c.bf16 %v3539_v45, %v3536_v25  ;;  %v6652_v25 = vld [vmem:[#allocation2 + $0x1b8] ss:$20 sps:$4 sm:$0xff]  }
 0x4f0   :  { %v6655_v45 = vld [vmem:[#allocation2 + $0x20c] ss:$20 sps:$4 sm:$0xff]  }
 0x4f1   :  { %3819 = vmatpush1.bf16.msra.mxu0 %v3757_v32 }
 0x4f2   :  { %3820 = vmatprep.subr.bf16.mxu0 %v7852_v28 }
 0x4f5   :  { %3821 = vmatpush1.bf16.msra.mxu0 %v3758_v30  ;;  %v6654_v30 = vld [vmem:[#allocation2 + $0x1e0] ss:$20 sps:$4 sm:$0xff]  }
 0x4f6   :  { %4143 = vmatprep.subr.bf16.mxu0 %v7852_v28 }
 0x4f8   :  { %3823 = vmatmul.mubr.bf16.vlgmr.msra.gmra.mrb[160].mxu0 %v6630_v43 }
 0x4f9   :  { %3830 = vmatprep.mubr.bf16.mxu0 %v6631_v48 }
 0x4fb   :  { %v5656_v5 = vpop.f32.mrb[112].mxu0 }
 0x4fc   :  { %v3552_v31 = vpop.f32.mrb[113].mxu0 }
 0x4fd   :  { %v5657_v46 = vpop.f32.mrb[114].mxu0 }
 0x4fe   :  { %v3760_v13 = vpack.c.bf16 %v5657_v46, %v5656_v5  ;;  %v3555_v63 = vpop.f32.mrb[115].mxu0 }
 0x4ff   :  { %v3759_v16 = vpack.c.bf16 %v3555_v63, %v3552_v31  ;;  %v6657_v63 = vld [vmem:[#allocation2 + $0x234] ss:$20 sps:$4 sm:$0xff]  }
 0x500   :  { %3831 = vmatmul.mubr.bf16.gmra.mrb[164].mxu0 %v6632_v62  ;;  %v6659_v62 = vld [vmem:[#allocation2 + $0x25c] ss:$20 sps:$4 sm:$0xff]  }
 0x501   :  { %4144 = vmatpush1.bf16.msra.mxu0 %v3759_v16  ;;  %3838 = vmatprep.mubr.bf16.mxu0 %v6633_v23  ;;  %v6658_v16 = vld [vmem:[#allocation2 + $0x230] ss:$20 sps:$4 sm:$0xff]  }
 0x502   :  { %4145 = vmatprep.subr.bf16.mxu0 %v7852_v28 }
 0x505   :  { %4146 = vmatpush1.bf16.msra.mxu0 %v3760_v13  ;;  %v6656_v13 = vld [vmem:[#allocation2 + $0x208] ss:$20 sps:$4 sm:$0xff]  }
 0x506   :  { %4147 = vmatprep.subr.bf16.mxu0 %v7852_v28 }
 0x508   :  { %3839 = vmatmul.mubr.bf16.gmra.mrb[168].mxu0 %v6634_v12 }
 0x509   :  { %3846 = vmatprep.mubr.bf16.mxu0 %v6635_v36 }
 0x50b   :  { %v5660_v10 = vpop.f32.mrb[116].mxu0 }
 0x50c   :  { %v3568_v54 = vpop.f32.mrb[117].mxu0 }
 0x50d   :  { %v5661_v4 = vpop.f32.mrb[118].mxu0 }
 0x50e   :  { %v3762_v42 = vpack.c.bf16 %v5661_v4, %v5660_v10  ;;  %v3571_v44 = vpop.f32.mrb[119].mxu0 }
 0x50f   :  { %v3761_v2 = vpack.c.bf16 %v3571_v44, %v3568_v54  ;;  %v6661_v44 = vld [vmem:[#allocation2 + $0x284] ss:$20 sps:$4 sm:$0xff]  }
 0x510   :  { %3847 = vmatmul.mubr.bf16.gmra.mrb[172].mxu0 %v6636_v19  ;;  %v6663_v19 = vld [vmem:[#allocation2 + $0x2ac] ss:$20 sps:$4 sm:$0xff]  }
 0x511   :  { %4148 = vmatpush1.bf16.msra.mxu0 %v3761_v2  ;;  %3854 = vmatprep.mubr.bf16.mxu0 %v6637_v52  ;;  %v6662_v2 = vld [vmem:[#allocation2 + $0x280] ss:$20 sps:$4 sm:$0xff]  }
 0x512   :  { %4149 = vmatprep.subr.bf16.mxu0 %v7852_v28 }
 0x515   :  { %4150 = vmatpush1.bf16.msra.mxu0 %v3762_v42  ;;  %v6660_v42 = vld [vmem:[#allocation2 + $0x258] ss:$20 sps:$4 sm:$0xff]  }
 0x516   :  { %4151 = vmatprep.subr.bf16.mxu0 %v7852_v28 }
 0x518   :  { %3855 = vmatmul.mubr.bf16.gmra.mrb[176].mxu0 %v6638_v33 }
 0x519   :  { %3862 = vmatprep.mubr.bf16.mxu0 %v6639_v29 }
 0x51b   :  { %v5664_v55 = vpop.f32.mrb[120].mxu0 }
 0x51c   :  { %v3584_v38 = vpop.f32.mrb[121].mxu0 }
 0x51d   :  { %v5665_v11 = vpop.f32.mrb[122].mxu0 }
 0x51e   :  { %v3764_v9 = vpack.c.bf16 %v5665_v11, %v5664_v55  ;;  %v3587_v61 = vpop.f32.mrb[123].mxu0 }
 0x51f   :  { %v3763_v21 = vpack.c.bf16 %v3587_v61, %v3584_v38  ;;  %v6665_v61 = vld [vmem:[#allocation2 + $0x2d4] ss:$20 sps:$4 sm:$0xff]  }
 0x520   :  { %3863 = vmatmul.mubr.bf16.gmra.mrb[180].mxu0 %v6640_v3 }
 0x521   :  { %4152 = vmatpush1.bf16.msra.mxu0 %v3763_v21  ;;  %3870 = vmatprep.mubr.bf16.mxu0 %v6641_v49  ;;  %v6667_v21 = vld [vmem:[#allocation2 + $0x2fc] ss:$20 sps:$4 sm:$0xff]  }
 0x522   :  { %4153 = vmatprep.subr.bf16.mxu0 %v7852_v28 }
 0x525   :  { %4154 = vmatpush1.bf16.msra.mxu0 %v3764_v9  ;;  %v6664_v9 = vld [vmem:[#allocation2 + $0x2a8] ss:$20 sps:$4 sm:$0xff]  }
 0x526   :  { %4155 = vmatprep.subr.bf16.mxu0 %v7852_v28 }
 0x528   :  { %3871 = vmatmul.mubr.bf16.gmra.mrb[184].mxu0 %v6642_v7 }
 0x529   :  { %3878 = vmatprep.mubr.bf16.mxu0 %v6643_v17 }
 0x52b   :  { %v5668_v22 = vpop.f32.mrb[124].mxu0 }
 0x52c   :  { %v3600_v34 = vpop.f32.mrb[125].mxu0 }
 0x52d   :  { %v5669_v56 = vpop.f32.mrb[126].mxu0 }
 0x52e   :  { %v3766_v53 = vpack.c.bf16 %v5669_v56, %v5668_v22  ;;  %v3603_v14 = vpop.f32.mrb[127].mxu0  ;;  %v6668_v56 = vld [vmem:[#allocation2 + $0x2f8] ss:$20 sps:$4 sm:$0xff]  }
 0x52f   :  { %v3765_v60 = vpack.c.bf16 %v3603_v14, %v3600_v34  ;;  %v6670_v14 = vld [vmem:[#allocation2 + $0x320] ss:$20 sps:$4 sm:$0xff]  }
 0x530   :  { %3879 = vmatmul.mubr.bf16.gmra.mrb[188].mxu0 %v6644_v50 }
 0x531   :  { %4156 = vmatpush1.bf16.msra.mxu0 %v3765_v60  ;;  %3886 = vmatprep.mubr.bf16.mxu0 %v6645_v35  ;;  %v6671_v60 = vld [vmem:[#allocation2 + $0x34c] ss:$20 sps:$4 sm:$0xff]  }
 0x532   :  { %4157 = vmatprep.subr.bf16.mxu0 %v7852_v28 }
 0x535   :  { %4158 = vmatpush1.bf16.msra.mxu0 %v3766_v53  ;;  %v6669_v53 = vld [vmem:[#allocation2 + $0x324] ss:$20 sps:$4 sm:$0xff]  }
 0x536   :  { %4159 = vmatprep.subr.bf16.mxu0 %v7852_v28 }
 0x538   :  { %3887 = vmatmul.mubr.bf16.gmra.mrb[192].mxu0 %v6646_v41 }
 0x539   :  { %3894 = vmatprep.mubr.bf16.mxu0 %v6647_v0 }
 0x53b   :  { %v5672_v1 = vpop.f32.mrb[128].mxu0 }
 0x53c   :  { %v3616_v15 = vpop.f32.mrb[129].mxu0 }
 0x53d   :  { %v5673_v58 = vpop.f32.mrb[130].mxu0 }
 0x53e   :  { %v3768_v20 = vpack.c.bf16 %v5673_v58, %v5672_v1  ;;  %v3619_v59 = vpop.f32.mrb[131].mxu0  ;;  %v6672_v58 = vld [vmem:[#allocation2 + $0x348] ss:$20 sps:$4 sm:$0xff]  }
 0x53f   :  { %v3767_v40 = vpack.c.bf16 %v3619_v59, %v3616_v15  ;;  %v6674_v59 = vld [vmem:[#allocation2 + $0x370] ss:$20 sps:$4 sm:$0xff]  }
 0x540   :  { %3895 = vmatmul.mubr.bf16.gmra.mrb[196].mxu0 %v6648_v47 }
 0x541   :  { %4160 = vmatpush1.bf16.msra.mxu0 %v3767_v40  ;;  %3902 = vmatprep.mubr.bf16.mxu0 %v6649_v24  ;;  %v6675_v40 = vld [vmem:[#allocation2 + $0x39c] ss:$20 sps:$4 sm:$0xff]  }
 0x542   :  { %4161 = vmatprep.subr.bf16.mxu0 %v7852_v28 }
 0x545   :  { %4162 = vmatpush1.bf16.msra.mxu0 %v3768_v20  ;;  %v6673_v20 = vld [vmem:[#allocation2 + $0x374] ss:$20 sps:$4 sm:$0xff]  }
 0x546   :  { %4163 = vmatprep.subr.bf16.mxu0 %v7852_v28 }
 0x548   :  { %3903 = vmatmul.mubr.bf16.gmra.mrb[200].mxu0 %v6650_v27 }
 0x549   :  { %3910 = vmatprep.mubr.bf16.mxu0 %v6651_v6 }
 0x54b   :  { %v5676_v37 = vpop.f32.mrb[132].mxu0 }
 0x54c   :  { %v3632_v8 = vpop.f32.mrb[133].mxu0 }
 0x54d   :  { %v5677_v18 = vpop.f32.mrb[134].mxu0 }
 0x54e   :  { %v3770_v39 = vpack.c.bf16 %v5677_v18, %v5676_v37  ;;  %v3635_v57 = vpop.f32.mrb[135].mxu0  ;;  %v6676_v18 = vld [vmem:[#allocation2 + $0x398] ss:$20 sps:$4 sm:$0xff]  }
 0x54f   :  { %v3769_v51 = vpack.c.bf16 %v3635_v57, %v3632_v8  ;;  %v6678_v57 = vld [vmem:[#allocation2 + $0x3c0] ss:$20 sps:$4 sm:$0xff]  }
 0x550   :  { %3911 = vmatmul.mubr.bf16.gmra.mrb[204].mxu0 %v6652_v25  ;;  %v6680_v25 = vld [vmem:[#allocation2 + $0x38] ss:$20 sps:$4 sm:$0xff]  }
 0x551   :  { %4164 = vmatpush1.bf16.msra.mxu0 %v3769_v51  ;;  %3918 = vmatprep.mubr.bf16.mxu0 %v6653_v26  ;;  %v6679_v51 = vld [vmem:[#allocation2 + $0x3ec] ss:$20 sps:$4 sm:$0xff]  }
 0x552   :  { %4165 = vmatprep.subr.bf16.mxu0 %v7852_v28  ;;  %v6681_v26 = vld [vmem:[#allocation2 + $0x60] ss:$20 sps:$4 sm:$0xff]  }
 0x555   :  { %4166 = vmatpush1.bf16.msra.mxu0 %v3770_v39  ;;  %v6677_v39 = vld [vmem:[#allocation2 + $0x3c4] ss:$20 sps:$4 sm:$0xff]  }
 0x556   :  { %4167 = vmatprep.subr.bf16.mxu0 %v7852_v28 }
 0x558   :  { %3919 = vmatmul.mubr.bf16.gmra.mrb[208].mxu0 %v6654_v30  ;;  %v6682_v30 = vld [vmem:[#allocation2 + $0x3e8] ss:$20 sps:$4 sm:$0xff]  }
 0x559   :  { %3926 = vmatprep.mubr.bf16.mxu0 %v6655_v45  ;;  %v6683_v45 = vld [vmem:[#allocation2 + $0x414] ss:$20 sps:$4 sm:$0xff]  }
 0x55b   :  { %v5680_v32 = vpop.f32.mrb[136].mxu0 }
 0x55c   :  { %v3648_v43 = vpop.f32.mrb[137].mxu0 }
 0x55d   :  { %v5681_v48 = vpop.f32.mrb[138].mxu0 }
 0x55e   :  { %v3772_v5 = vpack.c.bf16 %v5681_v48, %v5680_v32  ;;  %v3651_v31 = vpop.f32.mrb[139].mxu0  ;;  %v6684_v32 = vld [vmem:[#allocation2 + $0x88] ss:$20 sps:$4 sm:$0xff]   ;;  %v6686_v48 = vld [vmem:[#allocation2 + $0x410] ss:$20 sps:$4 sm:$0xff]  }
 0x55f   :  { %v3771_v46 = vpack.c.bf16 %v3651_v31, %v3648_v43  ;;  %v6685_v43 = vld [vmem:[#allocation2 + $0xb0] ss:$20 sps:$4 sm:$0xff]   ;;  %v6688_v31 = vld [vmem:[#allocation2 + $0xd8] ss:$20 sps:$4 sm:$0xff]  }
 0x560   :  { %3927 = vmatmul.mubr.bf16.gmra.mrb[212].mxu0 %v6656_v13  ;;  %v6690_v13 = vld [vmem:[#allocation2 + $0x438] ss:$20 sps:$4 sm:$0xff]  }
 0x561   :  { %4168 = vmatpush1.bf16.msra.mxu0 %v3771_v46  ;;  %3934 = vmatprep.mubr.bf16.mxu0 %v6657_v63  ;;  %v6689_v46 = vld [vmem:[#allocation2 + $0x100] ss:$20 sps:$4 sm:$0xff]   ;;  %v6691_v63 = vld [vmem:[#allocation2 + $0x464] ss:$20 sps:$4 sm:$0xff]  }
 0x562   :  { %4169 = vmatprep.subr.bf16.mxu0 %v7852_v28 }
 0x565   :  { %4170 = vmatpush1.bf16.msra.mxu0 %v3772_v5  ;;  %v6687_v5 = vld [vmem:[#allocation2 + $0x43c] ss:$20 sps:$4 sm:$0xff]  }
 0x566   :  { %4171 = vmatprep.subr.bf16.mxu0 %v7852_v28 }
 0x568   :  { %3935 = vmatmul.mubr.bf16.gmra.mrb[216].mxu0 %v6658_v16  ;;  %v6692_v16 = vld [vmem:[#allocation2 + $0x128] ss:$20 sps:$4 sm:$0xff]  }
 0x569   :  { %3942 = vmatprep.mubr.bf16.mxu0 %v6659_v62  ;;  %v6693_v62 = vld [vmem:[#allocation2 + $0x150] ss:$20 sps:$4 sm:$0xff]  }
 0x56b   :  { %v5684_v23 = vpop.f32.mrb[140].mxu0 }
 0x56c   :  { %v3664_v12 = vpop.f32.mrb[141].mxu0 }
 0x56d   :  { %v5685_v36 = vpop.f32.mrb[142].mxu0 }
 0x56e   :  { %v3774_v10 = vpack.c.bf16 %v5685_v36, %v5684_v23  ;;  %v3667_v54 = vpop.f32.mrb[143].mxu0  ;;  %v6694_v23 = vld [vmem:[#allocation2 + $0x460] ss:$20 sps:$4 sm:$0xff]   ;;  %v6696_v36 = vld [vmem:[#allocation2 + $0x178] ss:$20 sps:$4 sm:$0xff]  }
 0x56f   :  { %v3773_v4 = vpack.c.bf16 %v3667_v54, %v3664_v12  ;;  %v6695_v12 = vld [vmem:[#allocation2 + $0x48c] ss:$20 sps:$4 sm:$0xff]   ;;  %v6698_v54 = vld [vmem:[#allocation2 + $0x488] ss:$20 sps:$4 sm:$0xff]  }
 0x570   :  { %3943 = vmatmul.mubr.bf16.gmra.mrb[220].mxu0 %v6660_v42  ;;  %v6700_v42 = vld [vmem:[#allocation2 + $0x1c8] ss:$20 sps:$4 sm:$0xff]  }
 0x571   :  { %4172 = vmatpush1.bf16.msra.mxu0 %v3773_v4  ;;  %3950 = vmatprep.mubr.bf16.mxu0 %v6661_v44  ;;  %v6699_v4 = vld [vmem:[#allocation2 + $0x4b4] ss:$20 sps:$4 sm:$0xff]   ;;  %v6701_v44 = vld [vmem:[#allocation2 + $0x1f0] ss:$20 sps:$4 sm:$0xff]  }
 0x572   :  { %4173 = vmatprep.subr.bf16.mxu0 %v7852_v28  ;;  %v6666_v28 = vld [vmem:[#allocation2 + $0x2d0] ss:$20 sps:$4 sm:$0xff]  }
 0x575   :  { %4174 = vmatpush1.bf16.msra.mxu0 %v3774_v10  ;;  %v6697_v10 = vld [vmem:[#allocation2 + $0x1a0] ss:$20 sps:$4 sm:$0xff]  }
 0x578   :  { %3951 = vmatmul.mubr.bf16.gmra.mrb[224].mxu0 %v6662_v2  ;;  %v6702_v2 = vld [vmem:[#allocation2 + $0x4b0] ss:$20 sps:$4 sm:$0xff]  }
 0x579   :  { %3958 = vmatprep.mubr.bf16.mxu0 %v6663_v19  ;;  %v6703_v19 = vld [vmem:[#allocation2 + $0x4dc] ss:$20 sps:$4 sm:$0xff]  }
 0x57b   :  { %v5688_v52 = vpop.f32.mrb[144].mxu0 }
 0x57c   :  { %v3680_v33 = vpop.f32.mrb[145].mxu0 }
 0x57d   :  { %v5689_v29 = vpop.f32.mrb[146].mxu0 }
 0x57e   :  { %v3776_v55 = vpack.c.bf16 %v5689_v29, %v5688_v52  ;;  %v3683_v38 = vpop.f32.mrb[147].mxu0  ;;  %v6704_v52 = vld [vmem:[#allocation2 + $0x218] ss:$20 sps:$4 sm:$0xff]  }
 0x57f   :  { %v3775_v11 = vpack.c.bf16 %v3683_v38, %v3680_v33  ;;  %v6705_v33 = vld [vmem:[#allocation2 + $0x240] ss:$20 sps:$4 sm:$0xff]   ;;  %v6706_v29 = vld [vmem:[#allocation2 + $0x4d8] ss:$20 sps:$4 sm:$0xff]   ;;  %v6708_v38 = vld [vmem:[#allocation2 + $0x268] ss:$20 sps:$4 sm:$0xff]  }
 0x580   :  { %3959 = vmatmul.mubr.bf16.gmra.mrb[228].mxu0 %v6664_v9  ;;  %v6710_v9 = vld [vmem:[#allocation2 + $0x500] ss:$20 sps:$4 sm:$0xff]  }
 0x581   :  { %5702 = vmatprep.subr.bf16.mxu1 %v3775_v11  ;;  %3966 = vmatprep.mubr.bf16.mxu0 %v6665_v61  ;;  %v6711_v61 = vld [vmem:[#allocation2 + $0x52c] ss:$20 sps:$4 sm:$0xff]  }
 0x582   :  { %5703 = vmatpush3.bf16.msra.mxu1 %v3775_v11  ;;  %v6709_v11 = vld [vmem:[#allocation2 + $0x290] ss:$20 sps:$4 sm:$0xff]  }
 0x583   :  { %5704 = vmatprep.subr.bf16.mxu1 %v3776_v55 }
 0x586   :  { %5705 = vmatpush3.bf16.msra.mxu1 %v3776_v55  ;;  %v6707_v55 = vld [vmem:[#allocation2 + $0x504] ss:$20 sps:$4 sm:$0xff]  }
 0x588   :  { %3967 = vmatmul.mubr.bf16.gmra.mrb[232].mxu0 %v6666_v28  ;;  %v6712_v28 = vld [vmem:[#allocation2 + $0x2b8] ss:$20 sps:$4 sm:$0xff]  }
 0x589   :  { %3974 = vmatprep.mubr.bf16.mxu0 %v6667_v21  ;;  %v6713_v21 = vld [vmem:[#allocation2 + $0x2e0] ss:$20 sps:$4 sm:$0xff]  }
 0x58b   :  { %v5692_v3 = vpop.f32.mrb[148].mxu0 }
 0x58c   :  { %v3696_v49 = vpop.f32.mrb[149].mxu0 }
 0x58d   :  { %v5693_v7 = vpop.f32.mrb[150].mxu0 }
 0x58e   :  { %v3778_v17 = vpack.c.bf16 %v5693_v7, %v5692_v3  ;;  %v3699_v22 = vpop.f32.mrb[151].mxu0  ;;  %v6714_v3 = vld [vmem:[#allocation2 + $0x528] ss:$20 sps:$4 sm:$0xff]  }
 0x58f   :  { %v3777_v34 = vpack.c.bf16 %v3699_v22, %v3696_v49  ;;  %v6715_v49 = vld [vmem:[#allocation2 + $0x554] ss:$20 sps:$4 sm:$0xff]   ;;  %v6718_v22 = vld [vmem:[#allocation2 + $0x550] ss:$20 sps:$4 sm:$0xff]  }
 0x590   :  { %3975 = vmatmul.mubr.bf16.gmra.mrb[236].mxu0 %v6668_v56  ;;  %v6716_v7 = vld [vmem:[#allocation2 + $0x308] ss:$20 sps:$4 sm:$0xff]   ;;  %v6720_v56 = vld [vmem:[#allocation2 + $0x358] ss:$20 sps:$4 sm:$0xff]  }
 0x591   :  { %5706 = vmatprep.subr.bf16.mxu1 %v3777_v34  ;;  %3982 = vmatprep.mubr.bf16.mxu0 %v6669_v53  ;;  %v6721_v53 = vld [vmem:[#allocation2 + $0x380] ss:$20 sps:$4 sm:$0xff]  }
 0x592   :  { %5707 = vmatpush3.bf16.msra.mxu1 %v3777_v34  ;;  %v6719_v34 = vld [vmem:[#allocation2 + $0x57c] ss:$20 sps:$4 sm:$0xff]  }
 0x593   :  { %5708 = vmatprep.subr.bf16.mxu1 %v3778_v17 }
 0x596   :  { %5709 = vmatpush3.bf16.msra.mxu1 %v3778_v17  ;;  %v6717_v17 = vld [vmem:[#allocation2 + $0x330] ss:$20 sps:$4 sm:$0xff]  }
 0x598   :  { %3983 = vmatmul.mubr.bf16.gmra.mrb[240].mxu0 %v6670_v14  ;;  %v6722_v14 = vld [vmem:[#allocation2 + $0x578] ss:$20 sps:$4 sm:$0xff]  }
 0x599   :  { %3990 = vmatprep.mubr.bf16.mxu0 %v6671_v60  ;;  %v6723_v60 = vld [vmem:[#allocation2 + $0x5a4] ss:$20 sps:$4 sm:$0xff]  }
 0x59b   :  { %v5696_v50 = vpop.f32.mrb[152].mxu0 }
 0x59c   :  { %v3712_v35 = vpop.f32.mrb[153].mxu0 }
 0x59d   :  { %v5697_v41 = vpop.f32.mrb[154].mxu0 }
 0x59e   :  { %v3780_v0 = vpack.c.bf16 %v5697_v41, %v5696_v50  ;;  %v3715_v1 = vpop.f32.mrb[155].mxu0  ;;  %v6724_v50 = vld [vmem:[#allocation2 + $0x3a8] ss:$20 sps:$4 sm:$0xff]   ;;  %v6726_v41 = vld [vmem:[#allocation2 + $0x5a0] ss:$20 sps:$4 sm:$0xff]  }
 0x59f   :  { %v3779_v15 = vpack.c.bf16 %v3715_v1, %v3712_v35  ;;  %v6725_v35 = vld [vmem:[#allocation2 + $0x3d0] ss:$20 sps:$4 sm:$0xff]   ;;  %v6728_v1 = vld [vmem:[#allocation2 + $0x3f8] ss:$20 sps:$4 sm:$0xff]  }
 0x5a0   :  { %3991 = vmatmul.mubr.bf16.gmra.mrb[244].mxu0 %v6672_v58  ;;  %v6730_v58 = vld [vmem:[#allocation2 + $0x5c8] ss:$20 sps:$4 sm:$0xff]  }
 0x5a1   :  { %5710 = vmatprep.subr.bf16.mxu1 %v3779_v15  ;;  %3998 = vmatprep.mubr.bf16.mxu0 %v6673_v20  ;;  %v6731_v20 = vld [vmem:[#allocation2 + $0x5f4] ss:$20 sps:$4 sm:$0xff]  }
 0x5a2   :  { %5711 = vmatpush3.bf16.msra.mxu1 %v3779_v15  ;;  %v6729_v15 = vld [vmem:[#allocation2 + $0x420] ss:$20 sps:$4 sm:$0xff]  }
 0x5a3   :  { %5712 = vmatprep.subr.bf16.mxu1 %v3780_v0 }
 0x5a6   :  { %5713 = vmatpush3.bf16.msra.mxu1 %v3780_v0  ;;  %v6727_v0 = vld [vmem:[#allocation2 + $0x5cc] ss:$20 sps:$4 sm:$0xff]  }
 0x5a8   :  { %3999 = vmatmul.mubr.bf16.gmra.mrb[248].mxu0 %v6674_v59  ;;  %v6732_v59 = vld [vmem:[#allocation2 + $0x448] ss:$20 sps:$4 sm:$0xff]  }
 0x5a9   :  { %4006 = vmatprep.mubr.bf16.mxu0 %v6675_v40  ;;  %v6733_v40 = vld [vmem:[#allocation2 + $0x470] ss:$20 sps:$4 sm:$0xff]  }
 0x5ab   :  { %v5700_v47 = vpop.f32.mrb[156].mxu0 }
 0x5ac   :  { %v3728_v24 = vpop.f32.mrb[157].mxu0 }
 0x5ad   :  { %v5701_v27 = vpop.f32.mrb[158].mxu0 }
 0x5ae   :  { %v3782_v6 = vpack.c.bf16 %v5701_v27, %v5700_v47  ;;  %v3731_v37 = vpop.f32.mrb[159].mxu0  ;;  %v6734_v47 = vld [vmem:[#allocation2 + $0x5f0] ss:$20 sps:$4 sm:$0xff]   ;;  %v6736_v27 = vld [vmem:[#allocation2 + $0x498] ss:$20 sps:$4 sm:$0xff]  }
 0x5af   :  { %v3781_v8 = vpack.c.bf16 %v3731_v37, %v3728_v24  ;;  %v6735_v24 = vld [vmem:[#allocation2 + $0x61c] ss:$20 sps:$4 sm:$0xff]   ;;  %v6738_v37 = vld [vmem:[#allocation2 + $0x618] ss:$20 sps:$4 sm:$0xff]  }
 0x5b0   :  { %4007 = vmatmul.mubr.bf16.gmra.mrb[252].mxu0 %v6676_v18  ;;  %v6740_v18 = vld [vmem:[#allocation2 + $0x4e8] ss:$20 sps:$4 sm:$0xff]  }
 0x5b1   :  { %5714 = vmatprep.subr.bf16.mxu1 %v3781_v8  ;;  %4014 = vmatprep.mubr.bf16.mxu0 %v6677_v39  ;;  %v6741_v39 = vld [vmem:[#allocation2 + $0x510] ss:$20 sps:$4 sm:$0xff]  }
 0x5b2   :  { %5715 = vmatpush3.bf16.msra.mxu1 %v3781_v8  ;;  %v6739_v8 = vld [vmem:[#allocation2 + $0xc] ss:$20 sps:$4 sm:$0xff]  }
 0x5b3   :  { %5716 = vmatprep.subr.bf16.mxu1 %v3782_v6 }
 0x5b6   :  { %5717 = vmatpush3.bf16.msra.mxu1 %v3782_v6  ;;  %v6737_v6 = vld [vmem:[#allocation2 + $0x4c0] ss:$20 sps:$4 sm:$0xff]  }
 0x5b8   :  { %4015 = vmatmul.mubr.bf16.gmra.mrb[0].mxu0 %v6678_v57  ;;  %v6742_v57 = vld [vmem:[#allocation2 + $0x8] ss:$20 sps:$4 sm:$0xff]  }
 0x5b9   :  { %4022 = vmatprep.mubr.bf16.mxu0 %v6679_v51  ;;  %5719 = vmatmul.mubr.bf16.vlgmr.msra.gmra.mrb[240].mxu1 %v6680_v25  ;;  %v6743_v51 = vld [vmem:[#allocation2 + $0x34] ss:$20 sps:$4 sm:$0xff]   ;;  %v6744_v25 = vld [vmem:[#allocation2 + $0x538] ss:$20 sps:$4 sm:$0xff]  }
 0x5ba   :  { %5722 = vmatprep.mubr.bf16.mxu1 %v6681_v26  ;;  %v6745_v26 = vld [vmem:[#allocation2 + $0x560] ss:$20 sps:$4 sm:$0xff]  }
 0x5c0   :  { %4023 = vmatmul.mubr.bf16.gmra.mrb[4].mxu0 %v6682_v30  ;;  %v6746_v30 = vld [vmem:[#allocation2 + $0x30] ss:$20 sps:$4 sm:$0xff]  }
 0x5c1   :  { %4030 = vmatprep.mubr.bf16.mxu0 %v6683_v45  ;;  %5723 = vmatmul.mubr.bf16.gmra.mrb[244].mxu1 %v6684_v32  ;;  %v6747_v45 = vld [vmem:[#allocation2 + $0x5c] ss:$20 sps:$4 sm:$0xff]  }
 0x5c2   :  { %5726 = vmatprep.mubr.bf16.mxu1 %v6685_v43  ;;  %v6748_v32 = vld [vmem:[#allocation2 + $0x588] ss:$20 sps:$4 sm:$0xff]   ;;  %v6749_v43 = vld [vmem:[#allocation2 + $0x5b0] ss:$20 sps:$4 sm:$0xff]  }
 0x5c8   :  { %4031 = vmatmul.mubr.bf16.gmra.mrb[8].mxu0 %v6686_v48  ;;  %v6750_v48 = vld [vmem:[#allocation2 + $0x58] ss:$20 sps:$4 sm:$0xff]  }
 0x5c9   :  { %4038 = vmatprep.mubr.bf16.mxu0 %v6687_v5  ;;  %5727 = vmatmul.mubr.bf16.gmra.mrb[248].mxu1 %v6688_v31  ;;  %v6751_v5 = vld [vmem:[#allocation2 + $0x84] ss:$20 sps:$4 sm:$0xff]  }
 0x5ca   :  { %5730 = vmatprep.mubr.bf16.mxu1 %v6689_v46  ;;  %v6752_v31 = vld [vmem:[#allocation2 + $0x5d8] ss:$20 sps:$4 sm:$0xff]   ;;  %v6753_v46 = vld [vmem:[#allocation2 + $0x600] ss:$20 sps:$4 sm:$0xff]  }
 0x5d0   :  { %4039 = vmatmul.mubr.bf16.gmra.mrb[12].mxu0 %v6690_v13  ;;  %v6754_v13 = vld [vmem:[#allocation2 + $0x80] ss:$20 sps:$4 sm:$0xff]  }
 0x5d1   :  { %4046 = vmatprep.mubr.bf16.mxu0 %v6691_v63  ;;  %5731 = vmatmul.mubr.bf16.gmra.mrb[252].mxu1 %v6692_v16  ;;  %v6755_v63 = vld [vmem:[#allocation2 + $0xac] ss:$20 sps:$4 sm:$0xff]   ;;  %v6756_v16 = vld [vmem:[#allocation2 + $0x628] ss:$20 sps:$4 sm:$0xff]  }
 0x5d2   :  { %5734 = vmatprep.mubr.bf16.mxu1 %v6693_v62  ;;  %v6757_v62 = vld [vmem:[#allocation2 + $0xa8] ss:$20 sps:$4 sm:$0xff]  }
 0x5d8   :  { %4047 = vmatmul.mubr.bf16.gmra.mrb[16].mxu0 %v6694_v23  ;;  %v6758_v23 = vld [vmem:[#allocation2 + $0xd4] ss:$20 sps:$4 sm:$0xff]  }
 0x5d9   :  { %4054 = vmatprep.mubr.bf16.mxu0 %v6695_v12  ;;  %5735 = vmatmul.mubr.bf16.gmra.mrb[0].mxu1 %v6696_v36  ;;  %v6759_v12 = vld [vmem:[#allocation2 + $0xd0] ss:$20 sps:$4 sm:$0xff]  }
 0x5da   :  { %5738 = vmatprep.mubr.bf16.mxu1 %v6697_v10  ;;  %v6760_v36 = vld [vmem:[#allocation2 + $0xfc] ss:$20 sps:$4 sm:$0xff]   ;;  %v6761_v10 = vld [vmem:[#allocation2 + $0xf8] ss:$20 sps:$4 sm:$0xff]  }
 0x5e0   :  { %4055 = vmatmul.mubr.bf16.gmra.mrb[20].mxu0 %v6698_v54  ;;  %v6762_v54 = vld [vmem:[#allocation2 + $0x124] ss:$20 sps:$4 sm:$0xff]  }
 0x5e1   :  { %4062 = vmatprep.mubr.bf16.mxu0 %v6699_v4  ;;  %5739 = vmatmul.mubr.bf16.gmra.mrb[4].mxu1 %v6700_v42  ;;  %v6763_v4 = vld [vmem:[#allocation2 + $0x120] ss:$20 sps:$4 sm:$0xff]  }
 0x5e2   :  { %5742 = vmatprep.mubr.bf16.mxu1 %v6701_v44  ;;  %v6764_v42 = vld [vmem:[#allocation2 + $0x14c] ss:$20 sps:$4 sm:$0xff]   ;;  %v6765_v44 = vld [vmem:[#allocation2 + $0x148] ss:$20 sps:$4 sm:$0xff]  }
 0x5e8   :  { %4063 = vmatmul.mubr.bf16.gmra.mrb[24].mxu0 %v6702_v2  ;;  %v6766_v2 = vld [vmem:[#allocation2 + $0x174] ss:$20 sps:$4 sm:$0xff]  }
 0x5e9   :  { %4070 = vmatprep.mubr.bf16.mxu0 %v6703_v19  ;;  %5743 = vmatmul.mubr.bf16.gmra.mrb[8].mxu1 %v6704_v52  ;;  %v6767_v19 = vld [vmem:[#allocation2 + $0x170] ss:$20 sps:$4 sm:$0xff]  }
 0x5ea   :  { %5746 = vmatprep.mubr.bf16.mxu1 %v6705_v33  ;;  %v6768_v52 = vld [vmem:[#allocation2 + $0x19c] ss:$20 sps:$4 sm:$0xff]   ;;  %v6769_v33 = vld [vmem:[#allocation2 + $0x198] ss:$20 sps:$4 sm:$0xff]  }
 0x5f0   :  { %4071 = vmatmul.mubr.bf16.gmra.mrb[28].mxu0 %v6706_v29  ;;  %v6770_v29 = vld [vmem:[#allocation2 + $0x1c4] ss:$20 sps:$4 sm:$0xff]  }
 0x5f1   :  { %4078 = vmatprep.mubr.bf16.mxu0 %v6707_v55  ;;  %5747 = vmatmul.mubr.bf16.gmra.mrb[12].mxu1 %v6708_v38 }
 0x5f2   :  { %5750 = vmatprep.mubr.bf16.mxu1 %v6709_v11 }
 0x5f8   :  { %4079 = vmatmul.mubr.bf16.gmra.mrb[32].mxu0 %v6710_v9 }
 0x5f9   :  { %4086 = vmatprep.mubr.bf16.mxu0 %v6711_v61  ;;  %5751 = vmatmul.mubr.bf16.gmra.mrb[16].mxu1 %v6712_v28  ;;  %v6771_v61 = vld [vmem:[#allocation2 + $0x1c0] ss:$20 sps:$4 sm:$0xff]  }
 0x5fa   :  { %5754 = vmatprep.mubr.bf16.mxu1 %v6713_v21  ;;  %v6772_v28 = vld [vmem:[#allocation2 + $0x1ec] ss:$20 sps:$4 sm:$0xff]   ;;  %v6773_v21 = vld [vmem:[#allocation2 + $0x1e8] ss:$20 sps:$4 sm:$0xff]  }
 0x600   :  { %4087 = vmatmul.mubr.bf16.gmra.mrb[36].mxu0 %v6714_v3  ;;  %v6774_v3 = vld [vmem:[#allocation2 + $0x214] ss:$20 sps:$4 sm:$0xff]  }
 0x601   :  { %4094 = vmatprep.mubr.bf16.mxu0 %v6715_v49  ;;  %5755 = vmatmul.mubr.bf16.gmra.mrb[20].mxu1 %v6716_v7 }
 0x602   :  { %5758 = vmatprep.mubr.bf16.mxu1 %v6717_v17 }
 0x608   :  { %4095 = vmatmul.mubr.bf16.gmra.mrb[40].mxu0 %v6718_v22 }
 0x609   :  { %4102 = vmatprep.mubr.bf16.mxu0 %v6719_v34  ;;  %5759 = vmatmul.mubr.bf16.gmra.mrb[24].mxu1 %v6720_v56  ;;  %v6775_v34 = vld [vmem:[#allocation2 + $0x210] ss:$20 sps:$4 sm:$0xff]  }
 0x60a   :  { %5762 = vmatprep.mubr.bf16.mxu1 %v6721_v53  ;;  %v6776_v56 = vld [vmem:[#allocation2 + $0x23c] ss:$20 sps:$4 sm:$0xff]   ;;  %v6777_v53 = vld [vmem:[#allocation2 + $0x238] ss:$20 sps:$4 sm:$0xff]  }
 0x610   :  { %4103 = vmatmul.mubr.bf16.gmra.mrb[44].mxu0 %v6722_v14  ;;  %v6778_v14 = vld [vmem:[#allocation2 + $0x264] ss:$20 sps:$4 sm:$0xff]  }
 0x611   :  { %4110 = vmatprep.mubr.bf16.mxu0 %v6723_v60  ;;  %5763 = vmatmul.mubr.bf16.gmra.mrb[28].mxu1 %v6724_v50 }
 0x612   :  { %5766 = vmatprep.mubr.bf16.mxu1 %v6725_v35 }
 0x618   :  { %4111 = vmatmul.mubr.bf16.gmra.mrb[48].mxu0 %v6726_v41 }
 0x619   :  { %4118 = vmatprep.mubr.bf16.mxu0 %v6727_v0  ;;  %5767 = vmatmul.mubr.bf16.gmra.mrb[32].mxu1 %v6728_v1  ;;  %v6779_v0 = vld [vmem:[#allocation2 + $0x260] ss:$20 sps:$4 sm:$0xff]  }
 0x61a   :  { %5770 = vmatprep.mubr.bf16.mxu1 %v6729_v15  ;;  %v6780_v1 = vld [vmem:[#allocation2 + $0x28c] ss:$20 sps:$4 sm:$0xff]   ;;  %v6781_v15 = vld [vmem:[#allocation2 + $0x288] ss:$20 sps:$4 sm:$0xff]  }
 0x620   :  { %4119 = vmatmul.mubr.bf16.gmra.mrb[52].mxu0 %v6730_v58  ;;  %v6782_v58 = vld [vmem:[#allocation2 + $0x2b4] ss:$20 sps:$4 sm:$0xff]  }
 0x621   :  { %4126 = vmatprep.mubr.bf16.mxu0 %v6731_v20  ;;  %5771 = vmatmul.mubr.bf16.gmra.mrb[36].mxu1 %v6732_v59 }
 0x622   :  { %5774 = vmatprep.mubr.bf16.mxu1 %v6733_v40 }
 0x628   :  { %4127 = vmatmul.mubr.bf16.gmra.mrb[56].mxu0 %v6734_v47 }
 0x629   :  { %4134 = vmatprep.mubr.bf16.mxu0 %v6735_v24  ;;  %5775 = vmatmul.mubr.bf16.gmra.mrb[40].mxu1 %v6736_v27  ;;  %v6783_v24 = vld [vmem:[#allocation2 + $0x2b0] ss:$20 sps:$4 sm:$0xff]  }
 0x62a   :  { %5778 = vmatprep.mubr.bf16.mxu1 %v6737_v6  ;;  %v6784_v27 = vld [vmem:[#allocation2 + $0x2dc] ss:$20 sps:$4 sm:$0xff]   ;;  %v6785_v6 = vld [vmem:[#allocation2 + $0x2d8] ss:$20 sps:$4 sm:$0xff]  }
 0x630   :  { %4135 = vmatmul.mubr.bf16.gmra.mrb[60].mxu0 %v6738_v37  ;;  %v6786_v37 = vld [vmem:[#allocation2 + $0x304] ss:$20 sps:$4 sm:$0xff]  }
 0x631   :  { %4175 = vmatprep.mubr.bf16.mxu0 %v6739_v8  ;;  %5779 = vmatmul.mubr.bf16.gmra.mrb[44].mxu1 %v6740_v18 }
 0x632   :  { %5782 = vmatprep.mubr.bf16.mxu1 %v6741_v39 }
 0x638   :  { %4176 = vmatmul.mubr.bf16.vlgmr.msra.gmra.mrb[160].mxu0 %v6742_v57 }
 0x639   :  { %4183 = vmatprep.mubr.bf16.mxu0 %v6743_v51  ;;  %5783 = vmatmul.mubr.bf16.gmra.mrb[48].mxu1 %v6744_v25  ;;  %v6787_v51 = vld [vmem:[#allocation2 + $0x300] ss:$20 sps:$4 sm:$0xff]  }
 0x63a   :  { %5786 = vmatprep.mubr.bf16.mxu1 %v6745_v26  ;;  %v6788_v25 = vld [vmem:[#allocation2 + $0x32c] ss:$20 sps:$4 sm:$0xff]   ;;  %v6789_v26 = vld [vmem:[#allocation2 + $0x328] ss:$20 sps:$4 sm:$0xff]  }
 0x640   :  { %4184 = vmatmul.mubr.bf16.gmra.mrb[164].mxu0 %v6746_v30  ;;  %v6790_v30 = vld [vmem:[#allocation2 + $0x354] ss:$20 sps:$4 sm:$0xff]  }
 0x641   :  { %4191 = vmatprep.mubr.bf16.mxu0 %v6747_v45  ;;  %5787 = vmatmul.mubr.bf16.gmra.mrb[52].mxu1 %v6748_v32 }
 0x642   :  { %5790 = vmatprep.mubr.bf16.mxu1 %v6749_v43 }
 0x648   :  { %4192 = vmatmul.mubr.bf16.gmra.mrb[168].mxu0 %v6750_v48 }
 0x649   :  { %4199 = vmatprep.mubr.bf16.mxu0 %v6751_v5  ;;  %5791 = vmatmul.mubr.bf16.gmra.mrb[56].mxu1 %v6752_v31  ;;  %v6791_v5 = vld [vmem:[#allocation2 + $0x350] ss:$20 sps:$4 sm:$0xff]  }
 0x64a   :  { %5794 = vmatprep.mubr.bf16.mxu1 %v6753_v46  ;;  %v6792_v31 = vld [vmem:[#allocation2 + $0x37c] ss:$20 sps:$4 sm:$0xff]   ;;  %v6793_v46 = vld [vmem:[#allocation2 + $0x378] ss:$20 sps:$4 sm:$0xff]  }
 0x650   :  { %4200 = vmatmul.mubr.bf16.gmra.mrb[172].mxu0 %v6754_v13  ;;  %v6794_v13 = vld [vmem:[#allocation2 + $0x3a4] ss:$20 sps:$4 sm:$0xff]  }
 0x651   :  { %4207 = vmatprep.mubr.bf16.mxu0 %v6755_v63  ;;  %5795 = vmatmul.mubr.bf16.gmra.mrb[60].mxu1 %v6756_v16 }
 0x658   :  { %4208 = vmatmul.mubr.bf16.gmra.mrb[176].mxu0 %v6757_v62 }
 0x659   :  { %4215 = vmatprep.mubr.bf16.mxu0 %v6758_v23 }
 0x660   :  { %4216 = vmatmul.mubr.bf16.gmra.mrb[180].mxu0 %v6759_v12  ;;  %v6795_v12 = vld [vmem:[#allocation2 + $0x3a0] ss:$20 sps:$4 sm:$0xff]  }
 0x661   :  { %4223 = vmatprep.mubr.bf16.mxu0 %v6760_v36  ;;  %v6796_v36 = vld [vmem:[#allocation2 + $0x3cc] ss:$20 sps:$4 sm:$0xff]  }
 0x668   :  { %4224 = vmatmul.mubr.bf16.gmra.mrb[184].mxu0 %v6761_v10  ;;  %v6797_v10 = vld [vmem:[#allocation2 + $0x3c8] ss:$20 sps:$4 sm:$0xff]  }
 0x669   :  { %4231 = vmatprep.mubr.bf16.mxu0 %v6762_v54  ;;  %v6798_v54 = vld [vmem:[#allocation2 + $0x3f4] ss:$20 sps:$4 sm:$0xff]  }
 0x670   :  { %4232 = vmatmul.mubr.bf16.gmra.mrb[188].mxu0 %v6763_v4 }
 0x671   :  { %4239 = vmatprep.mubr.bf16.mxu0 %v6764_v42 }
 0x678   :  { %4240 = vmatmul.mubr.bf16.gmra.mrb[192].mxu0 %v6765_v44 }
 0x679   :  { %4247 = vmatprep.mubr.bf16.mxu0 %v6766_v2 }
 0x680   :  { %4248 = vmatmul.mubr.bf16.gmra.mrb[196].mxu0 %v6767_v19  ;;  %v6799_v19 = vld [vmem:[#allocation2 + $0x3f0] ss:$20 sps:$4 sm:$0xff]  }
 0x681   :  { %4255 = vmatprep.mubr.bf16.mxu0 %v6768_v52  ;;  %v6800_v52 = vld [vmem:[#allocation2 + $0x41c] ss:$20 sps:$4 sm:$0xff]  }
 0x688   :  { %4256 = vmatmul.mubr.bf16.gmra.mrb[200].mxu0 %v6769_v33  ;;  %v6801_v33 = vld [vmem:[#allocation2 + $0x418] ss:$20 sps:$4 sm:$0xff]  }
 0x689   :  { %4263 = vmatprep.mubr.bf16.mxu0 %v6770_v29  ;;  %v7548_v29 = vld [vmem:[%s7841_s5] ss:$0 sm:$0xff]  ;;  %s6979_s5 = smov [#allocation11]  }
 0x68a   :  { %s4946_s30 = sshll.u32 %s6979_s5, 4  ;;  %s4947_s30 = int_to_ptr.vmem [resolvable:$true] %s4946_s30 }
 0x68b   :  { %s6916_s8 = scalar_lea.vmem %s4947_s30, 10240  ;;  %p6921_p5 = scmp.lt.s32.totalorder %s4947_s30, %s4947_s30 }
 0x68c   :  { %v7481_v55 = vpop.f32.mrb[240].mxu1  ;;  %p6917_p4 = scmp.ne.s32.totalorder %s4947_s30, %s6916_s8  ;;  %p6922_p6 = scmp.lt.s32.totalorder %s6916_s8, %s6916_s8 }
 0x68d   :  { %v7483_v38 = vpop.f32.mrb[241].mxu1 }
 0x68e   :  { %v7485_v11 = vpop.f32.mrb[242].mxu1  ;;  %p6923_p7 = por %p6922_p6, %p6921_p5 }
 0x68f   :  { %v7487_v9 = vpop.f32.mrb[243].mxu1 }
 0x690   :  { %4264 = vmatmul.mubr.bf16.gmra.mrb[204].mxu0 %v6771_v61  ;;  %v6802_v61 = vld [vmem:[#allocation2 + $0x444] ss:$20 sps:$4 sm:$0xff]   ;;  %p6924_p8 = pnand %p6923_p7, %p6917_p4 }
 0x691   :  { %4271 = vmatprep.mubr.bf16.mxu0 %v6772_v28 }
 0x694   :  { %v7489_v49 = vpop.f32.mrb[244].mxu1 }
 0x695   :  { %v7491_v7 = vpop.f32.mrb[245].mxu1 }
 0x696   :  { %v7493_v17 = vpop.f32.mrb[246].mxu1 }
 0x697   :  { %v7495_v22 = vpop.f32.mrb[247].mxu1 }
 0x698   :  { %4272 = vmatmul.mubr.bf16.gmra.mrb[208].mxu0 %v6773_v21 }
 0x699   :  { %4279 = vmatprep.mubr.bf16.mxu0 %v6774_v3 }
 0x69c   :  { %v7497_v60 = vpop.f32.mrb[248].mxu1 }
 0x69d   :  { %v7499_v50 = vpop.f32.mrb[249].mxu1 }
 0x69e   :  { %v7501_v35 = vpop.f32.mrb[250].mxu1 }
 0x69f   :  { %v7503_v41 = vpop.f32.mrb[251].mxu1 }
 0x6a0   :  { %4280 = vmatmul.mubr.bf16.gmra.mrb[212].mxu0 %v6775_v34 }
 0x6a1   :  { %4287 = vmatprep.mubr.bf16.mxu0 %v6776_v56 }
 0x6a4   :  { %v7505_v20 = vpop.f32.mrb[252].mxu1 }
 0x6a5   :  { %v7507_v59 = vpop.f32.mrb[253].mxu1 }
 0x6a6   :  { %v7509_v40 = vpop.f32.mrb[254].mxu1 }
 0x6a7   :  { %v7511_v47 = vpop.f32.mrb[255].mxu1 }
 0x6a8   :  { %4288 = vmatmul.mubr.bf16.gmra.mrb[216].mxu0 %v6777_v53 }
 0x6a9   :  { %4295 = vmatprep.mubr.bf16.mxu0 %v6778_v14 }
 0x6ac   :  { %v7513_v8 = vpop.f32.mrb[0].mxu1 }
 0x6ad   :  { %v7515_v18 = vpop.f32.mrb[1].mxu1 }
 0x6ae   :  { %v7517_v39 = vpop.f32.mrb[2].mxu1 }
 0x6af   :  { %v7519_v57 = vpop.f32.mrb[3].mxu1 }
 0x6b0   :  { %4296 = vmatmul.mubr.bf16.gmra.mrb[220].mxu0 %v6779_v0 }
 0x6b1   :  { %4303 = vmatprep.mubr.bf16.mxu0 %v6780_v1 }
 0x6b4   :  { %v7521_v45 = vpop.f32.mrb[4].mxu1 }
 0x6b5   :  { %v7523_v32 = vpop.f32.mrb[5].mxu1 }
 0x6b6   :  { %v7525_v43 = vpop.f32.mrb[6].mxu1 }
 0x6b7   :  { %v7527_v48 = vpop.f32.mrb[7].mxu1 }
 0x6b8   :  { %4304 = vmatmul.mubr.bf16.gmra.mrb[224].mxu0 %v6781_v15 }
 0x6b9   :  { %4311 = vmatprep.mubr.bf16.mxu0 %v6782_v58 }
 0x6bc   :  { %v7529_v63 = vpop.f32.mrb[8].mxu1 }
 0x6bd   :  { %v7531_v16 = vpop.f32.mrb[9].mxu1 }
 0x6be   :  { %v7533_v62 = vpop.f32.mrb[10].mxu1 }
 0x6bf   :  { %v7535_v23 = vpop.f32.mrb[11].mxu1 }
 0x6c0   :  { %4312 = vmatmul.mubr.bf16.gmra.mrb[228].mxu0 %v6783_v24 }
 0x6c1   :  { %4319 = vmatprep.mubr.bf16.mxu0 %v6784_v27  ;;  %v6803_v27 = vld [vmem:[#allocation2 + $0x440] ss:$20 sps:$4 sm:$0xff]  }
 0x6c4   :  { %v7537_v4 = vpop.f32.mrb[12].mxu1 }
 0x6c5   :  { %v7539_v42 = vpop.f32.mrb[13].mxu1 }
 0x6c6   :  { %v7541_v44 = vpop.f32.mrb[14].mxu1 }
 0x6c7   :  { %v7543_v2 = vpop.f32.mrb[15].mxu1 }
 0x6c8   :  { %4320 = vmatmul.mubr.bf16.gmra.mrb[232].mxu0 %v6785_v6  ;;  %v6804_v6 = vld [vmem:[#allocation2 + $0x46c] ss:$20 sps:$4 sm:$0xff]  }
 0x6c9   :  { %4327 = vmatprep.mubr.bf16.mxu0 %v6786_v37 }
 0x6cc   :  { %v7551_v34 = vpop.f32.mrb[16].mxu1 }
 0x6cd   :  { %v7553_v53 = vpop.f32.mrb[17].mxu1 }
 0x6ce   :  { %v7557_v15 = vpop.f32.mrb[18].mxu1 }
 0x6cf   :  { %v7559_v58 = vpop.f32.mrb[19].mxu1 }
 0x6d0   :  { %4328 = vmatmul.mubr.bf16.gmra.mrb[236].mxu0 %v6787_v51 }
 0x6d1   :  { %4335 = vmatprep.mubr.bf16.mxu0 %v6788_v25 }
 0x6d8   :  { %4336 = vmatmul.mubr.bf16.gmra.mrb[240].mxu0 %v6789_v26 }
 0x6d9   :  { %4343 = vmatprep.mubr.bf16.mxu0 %v6790_v30 }
 0x6e0   :  { %4344 = vmatmul.mubr.bf16.gmra.mrb[244].mxu0 %v6791_v5 }
 0x6e1   :  { %4351 = vmatprep.mubr.bf16.mxu0 %v6792_v31 }
 0x6e8   :  { %4352 = vmatmul.mubr.bf16.gmra.mrb[248].mxu0 %v6793_v46  ;;  %v6805_v46 = vld [vmem:[#allocation2 + $0x468] ss:$20 sps:$4 sm:$0xff]  }
 0x6e9   :  { %4359 = vmatprep.mubr.bf16.mxu0 %v6794_v13 }
 0x6f0   :  { %4360 = vmatmul.mubr.bf16.gmra.mrb[252].mxu0 %v6795_v12 }
 0x6f1   :  { %4367 = vmatprep.mubr.bf16.mxu0 %v6796_v36 }
 0x6f8   :  { %4368 = vmatmul.mubr.bf16.gmra.mrb[0].mxu0 %v6797_v10  ;;  %v7567_v10 = vpop.f32.mrb[20].mxu1 }
 0x6f9   :  { %4375 = vmatprep.mubr.bf16.mxu0 %v6798_v54 }
 0x700   :  { %4376 = vmatmul.mubr.bf16.gmra.mrb[4].mxu0 %v6799_v19  ;;  %v7569_v19 = vpop.f32.mrb[21].mxu1 }
 0x701   :  { %4383 = vmatprep.mubr.bf16.mxu0 %v6800_v52 }
 0x708   :  { %4384 = vmatmul.mubr.bf16.gmra.mrb[8].mxu0 %v6801_v33 }
 0x709   :  { %4391 = vmatprep.mubr.bf16.mxu0 %v6802_v61 }
 0x70b   :  { %v4177_v28 = vpop.f32.mrb[160].mxu0 }
 0x70c   :  { %v5878_v21 = vadd.f32 %v7548_v29, %v4177_v28  ;;  %v4179_v3 = vpop.f32.mrb[161].mxu0 }
 0x70d   :  { %v4180_v56 = vpop.f32.mrb[162].mxu0  ;;  %v6808_v3 = vld [vmem:[#allocation2 + $0x4bc] ss:$20 sps:$4 sm:$0xff]  }
 0x70e   :  { %v5879_v14 = vadd.f32 %v7548_v29, %v4180_v56  ;;  %v4531_v0 = vadd.f32 %v5878_v21, %v7483_v38  ;;  %v4182_v1 = vpop.f32.mrb[163].mxu0  ;;  %v6807_v21 = vld [vmem:[#allocation2 + $0x490] ss:$20 sps:$4 sm:$0xff]  }
 0x710   :  { %4849 = vst [vmem:[#allocation10] sm:$0xff] %v4531_v0  ;;  %v4534_v24 = vadd.f32 %v5879_v14, %v7487_v9  ;;  %4392 = vmatmul.mubr.bf16.gmra.mrb[12].mxu0 %v6803_v27  ;;  %v6806_v9 = vld [vmem:[#allocation2 + $0x494] ss:$20 sps:$4 sm:$0xff]  }
 0x711   :  { %4399 = vmatprep.mubr.bf16.mxu0 %v6804_v6 }
 0x712   :  { %4850 = vst [vmem:[#allocation10 + $0x8] sm:$0xff] %v4534_v24 }
 0x713   :  { %v4185_v37 = vpop.f32.mrb[164].mxu0 }
 0x714   :  { %v5880_v51 = vadd.f32 %v7548_v29, %v4185_v37  ;;  %v4187_v25 = vpop.f32.mrb[165].mxu0  ;;  %v6809_v37 = vld [vmem:[#allocation2 + $0x4b8] ss:$20 sps:$4 sm:$0xff]  }
 0x715   :  { %v4188_v26 = vpop.f32.mrb[166].mxu0 }
 0x716   :  { %v4539_v38 = vadd.f32 %v5880_v51, %v7481_v55  ;;  %v5881_v30 = vadd.f32 %v7548_v29, %v4188_v26  ;;  %v4190_v5 = vpop.f32.mrb[167].mxu0 }
 0x718   :  { %4851 = vst [vmem:[#allocation10 + $0x10] sm:$0xff] %v4539_v38  ;;  %v4542_v31 = vadd.f32 %v5881_v30, %v7485_v11  ;;  %4400 = vmatmul.mubr.bf16.gmra.mrb[16].mxu0 %v6805_v46  ;;  %v7573_v11 = vpop.f32.mrb[22].mxu1 }
 0x719   :  { %4407 = vmatprep.mubr.bf16.mxu0 %v6806_v9  ;;  %v7575_v61 = vpop.f32.mrb[23].mxu1 }
 0x71a   :  { %4852 = vst [vmem:[#allocation10 + $0x18] sm:$0xff] %v4542_v31  ;;  %v7583_v38 = vpop.f32.mrb[24].mxu1 }
 0x71b   :  { %v4193_v13 = vpop.f32.mrb[168].mxu0  ;;  %v7585_v5 = vpop.f32.mrb[25].mxu1 }
 0x71c   :  { %v5882_v12 = vadd.f32 %v7548_v29, %v4193_v13  ;;  %v4195_v36 = vpop.f32.mrb[169].mxu0 }
 0x71d   :  { %v4196_v54 = vpop.f32.mrb[170].mxu0  ;;  %v6812_v36 = vld [vmem:[#allocation2 + $0x50c] ss:$20 sps:$4 sm:$0xff]  }
 0x71e   :  { %v5883_v55 = vadd.f32 %v7548_v29, %v4196_v54  ;;  %v4547_v52 = vadd.f32 %v5882_v12, %v7491_v7  ;;  %v4198_v33 = vpop.f32.mrb[171].mxu0  ;;  %v6811_v12 = vld [vmem:[#allocation2 + $0x4e0] ss:$20 sps:$4 sm:$0xff]  }
 0x720   :  { %4853 = vst [vmem:[#allocation10 + $0x20] sm:$0xff] %v4547_v52  ;;  %v4550_v28 = vadd.f32 %v5883_v55, %v7495_v22  ;;  %4408 = vmatmul.mubr.bf16.gmra.mrb[20].mxu0 %v6807_v21  ;;  %v6810_v22 = vld [vmem:[#allocation2 + $0x4e4] ss:$20 sps:$4 sm:$0xff]  }
 0x721   :  { %4415 = vmatprep.mubr.bf16.mxu0 %v6808_v3 }
 0x722   :  { %4854 = vst [vmem:[#allocation10 + $0x28] sm:$0xff] %v4550_v28 }
 0x723   :  { %v4201_v56 = vpop.f32.mrb[172].mxu0 }
 0x724   :  { %v5884_v14 = vadd.f32 %v7548_v29, %v4201_v56  ;;  %v4203_v0 = vpop.f32.mrb[173].mxu0  ;;  %v6813_v56 = vld [vmem:[#allocation2 + $0x508] ss:$20 sps:$4 sm:$0xff]  }
 0x725   :  { %v4204_v1 = vpop.f32.mrb[174].mxu0 }
 0x726   :  { %v4555_v7 = vadd.f32 %v5884_v14, %v7489_v49  ;;  %v5885_v24 = vadd.f32 %v7548_v29, %v4204_v1  ;;  %v4206_v27 = vpop.f32.mrb[175].mxu0 }
 0x728   :  { %4855 = vst [vmem:[#allocation10 + $0x30] sm:$0xff] %v4555_v7  ;;  %v4558_v6 = vadd.f32 %v5885_v24, %v7493_v17  ;;  %4416 = vmatmul.mubr.bf16.gmra.mrb[24].mxu0 %v6809_v37  ;;  %v7589_v17 = vpop.f32.mrb[26].mxu1 }
 0x729   :  { %4423 = vmatprep.mubr.bf16.mxu0 %v6810_v22  ;;  %v7591_v9 = vpop.f32.mrb[27].mxu1 }
 0x72a   :  { %4856 = vst [vmem:[#allocation10 + $0x38] sm:$0xff] %v4558_v6  ;;  %v7599_v7 = vpop.f32.mrb[28].mxu1 }
 0x72b   :  { %v4209_v51 = vpop.f32.mrb[176].mxu0  ;;  %v7601_v27 = vpop.f32.mrb[29].mxu1 }
 0x72c   :  { %v5886_v25 = vadd.f32 %v7548_v29, %v4209_v51  ;;  %v4211_v26 = vpop.f32.mrb[177].mxu0 }
 0x72d   :  { %v4212_v30 = vpop.f32.mrb[178].mxu0  ;;  %v6816_v26 = vld [vmem:[#allocation2 + $0x55c] ss:$20 sps:$4 sm:$0xff]  }
 0x72e   :  { %v5887_v49 = vadd.f32 %v7548_v29, %v4212_v30  ;;  %v4563_v31 = vadd.f32 %v5886_v25, %v7499_v50  ;;  %v4214_v46 = vpop.f32.mrb[179].mxu0  ;;  %v6815_v25 = vld [vmem:[#allocation2 + $0x530] ss:$20 sps:$4 sm:$0xff]  }
 0x730   :  { %4857 = vst [vmem:[#allocation10 + $0x40] sm:$0xff] %v4563_v31  ;;  %v4566_v13 = vadd.f32 %v5887_v49, %v7503_v41  ;;  %4424 = vmatmul.mubr.bf16.gmra.mrb[28].mxu0 %v6811_v12  ;;  %v6814_v41 = vld [vmem:[#allocation2 + $0x534] ss:$20 sps:$4 sm:$0xff]  }
 0x731   :  { %4431 = vmatprep.mubr.bf16.mxu0 %v6812_v36 }
 0x732   :  { %4858 = vst [vmem:[#allocation10 + $0x48] sm:$0xff] %v4566_v13 }
 0x733   :  { %v4217_v54 = vpop.f32.mrb[180].mxu0 }
 0x734   :  { %v5888_v55 = vadd.f32 %v7548_v29, %v4217_v54  ;;  %v4219_v52 = vpop.f32.mrb[181].mxu0  ;;  %v6817_v54 = vld [vmem:[#allocation2 + $0x558] ss:$20 sps:$4 sm:$0xff]  }
 0x735   :  { %v4220_v33 = vpop.f32.mrb[182].mxu0 }
 0x736   :  { %v4571_v50 = vadd.f32 %v5888_v55, %v7497_v60  ;;  %v5889_v28 = vadd.f32 %v7548_v29, %v4220_v33  ;;  %v4222_v21 = vpop.f32.mrb[183].mxu0 }
 0x738   :  { %4859 = vst [vmem:[#allocation10 + $0x50] sm:$0xff] %v4571_v50  ;;  %v4574_v3 = vadd.f32 %v5889_v28, %v7501_v35  ;;  %4432 = vmatmul.mubr.bf16.gmra.mrb[32].mxu0 %v6813_v56  ;;  %v7605_v35 = vpop.f32.mrb[30].mxu1 }
 0x739   :  { %4439 = vmatprep.mubr.bf16.mxu0 %v6814_v41  ;;  %v7607_v22 = vpop.f32.mrb[31].mxu1 }
 0x73a   :  { %4860 = vst [vmem:[#allocation10 + $0x58] sm:$0xff] %v4574_v3  ;;  %v7615_v50 = vpop.f32.mrb[32].mxu1 }
 0x73b   :  { %v4225_v14 = vpop.f32.mrb[184].mxu0  ;;  %v7617_v21 = vpop.f32.mrb[33].mxu1 }
 0x73c   :  { %v5890_v0 = vadd.f32 %v7548_v29, %v4225_v14  ;;  %v4227_v1 = vpop.f32.mrb[185].mxu0 }
 0x73d   :  { %v4228_v24 = vpop.f32.mrb[186].mxu0  ;;  %v6820_v1 = vld [vmem:[#allocation2 + $0x5ac] ss:$20 sps:$4 sm:$0xff]  }
 0x73e   :  { %v5891_v60 = vadd.f32 %v7548_v29, %v4228_v24  ;;  %v4579_v6 = vadd.f32 %v5890_v0, %v7507_v59  ;;  %v4230_v37 = vpop.f32.mrb[187].mxu0  ;;  %v6819_v0 = vld [vmem:[#allocation2 + $0x580] ss:$20 sps:$4 sm:$0xff]  }
 0x740   :  { %4861 = vst [vmem:[#allocation10 + $0x60] sm:$0xff] %v4579_v6  ;;  %v4582_v51 = vadd.f32 %v5891_v60, %v7511_v47  ;;  %4440 = vmatmul.mubr.bf16.gmra.mrb[36].mxu0 %v6815_v25  ;;  %v6818_v47 = vld [vmem:[#allocation2 + $0x584] ss:$20 sps:$4 sm:$0xff]  }
 0x741   :  { %4447 = vmatprep.mubr.bf16.mxu0 %v6816_v26 }
 0x742   :  { %4862 = vst [vmem:[#allocation10 + $0x68] sm:$0xff] %v4582_v51 }
 0x743   :  { %v4233_v30 = vpop.f32.mrb[188].mxu0 }
 0x744   :  { %v5892_v49 = vadd.f32 %v7548_v29, %v4233_v30  ;;  %v4235_v31 = vpop.f32.mrb[189].mxu0  ;;  %v6821_v30 = vld [vmem:[#allocation2 + $0x5a8] ss:$20 sps:$4 sm:$0xff]  }
 0x745   :  { %v4236_v46 = vpop.f32.mrb[190].mxu0 }
 0x746   :  { %v4587_v59 = vadd.f32 %v5892_v49, %v7505_v20  ;;  %v5893_v13 = vadd.f32 %v7548_v29, %v4236_v46  ;;  %v4238_v12 = vpop.f32.mrb[191].mxu0 }
 0x748   :  { %4863 = vst [vmem:[#allocation10 + $0x70] sm:$0xff] %v4587_v59  ;;  %v4590_v36 = vadd.f32 %v5893_v13, %v7509_v40  ;;  %4448 = vmatmul.mubr.bf16.gmra.mrb[40].mxu0 %v6817_v54  ;;  %v7621_v40 = vpop.f32.mrb[34].mxu1 }
 0x749   :  { %4455 = vmatprep.mubr.bf16.mxu0 %v6818_v47  ;;  %v7623_v41 = vpop.f32.mrb[35].mxu1 }
 0x74a   :  { %4864 = vst [vmem:[#allocation10 + $0x78] sm:$0xff] %v4590_v36  ;;  %v7631_v59 = vpop.f32.mrb[36].mxu1 }
 0x74b   :  { %v4241_v55 = vpop.f32.mrb[192].mxu0  ;;  %v7633_v12 = vpop.f32.mrb[37].mxu1 }
 0x74c   :  { %v5894_v52 = vadd.f32 %v7548_v29, %v4241_v55  ;;  %v4243_v33 = vpop.f32.mrb[193].mxu0 }
 0x74d   :  { %v4244_v28 = vpop.f32.mrb[194].mxu0  ;;  %v6824_v33 = vld [vmem:[#allocation2 + $0x5fc] ss:$20 sps:$4 sm:$0xff]  }
 0x74e   :  { %v5895_v20 = vadd.f32 %v7548_v29, %v4244_v28  ;;  %v4595_v3 = vadd.f32 %v5894_v52, %v7515_v18  ;;  %v4246_v56 = vpop.f32.mrb[195].mxu0  ;;  %v6823_v52 = vld [vmem:[#allocation2 + $0x5d0] ss:$20 sps:$4 sm:$0xff]  }
 0x750   :  { %4865 = vst [vmem:[#allocation10 + $0x80] sm:$0xff] %v4595_v3  ;;  %v4598_v14 = vadd.f32 %v5895_v20, %v7519_v57  ;;  %4456 = vmatmul.mubr.bf16.gmra.mrb[44].mxu0 %v6819_v0  ;;  %v6822_v57 = vld [vmem:[#allocation2 + $0x5d4] ss:$20 sps:$4 sm:$0xff]  }
 0x751   :  { %4463 = vmatprep.mubr.bf16.mxu0 %v6820_v1 }
 0x752   :  { %4866 = vst [vmem:[#allocation10 + $0x88] sm:$0xff] %v4598_v14 }
 0x753   :  { %v4249_v24 = vpop.f32.mrb[196].mxu0 }
 0x754   :  { %v5896_v60 = vadd.f32 %v7548_v29, %v4249_v24  ;;  %v4251_v6 = vpop.f32.mrb[197].mxu0  ;;  %v6825_v24 = vld [vmem:[#allocation2 + $0x5f8] ss:$20 sps:$4 sm:$0xff]  }
 0x755   :  { %v4252_v37 = vpop.f32.mrb[198].mxu0 }
 0x756   :  { %v4603_v18 = vadd.f32 %v5896_v60, %v7513_v8  ;;  %v5897_v51 = vadd.f32 %v7548_v29, %v4252_v37  ;;  %v4254_v25 = vpop.f32.mrb[199].mxu0 }
 0x758   :  { %4867 = vst [vmem:[#allocation10 + $0x90] sm:$0xff] %v4603_v18  ;;  %v4606_v26 = vadd.f32 %v5897_v51, %v7517_v39  ;;  %4464 = vmatmul.mubr.bf16.gmra.mrb[48].mxu0 %v6821_v30  ;;  %v7637_v39 = vpop.f32.mrb[38].mxu1 }
 0x759   :  { %4471 = vmatprep.mubr.bf16.mxu0 %v6822_v57  ;;  %v7639_v47 = vpop.f32.mrb[39].mxu1 }
 0x75a   :  { %4868 = vst [vmem:[#allocation10 + $0x98] sm:$0xff] %v4606_v26  ;;  %v7647_v18 = vpop.f32.mrb[40].mxu1 }
 0x75b   :  { %v4257_v49 = vpop.f32.mrb[200].mxu0  ;;  %v7649_v25 = vpop.f32.mrb[41].mxu1 }
 0x75c   :  { %v5898_v31 = vadd.f32 %v7548_v29, %v4257_v49  ;;  %v4259_v46 = vpop.f32.mrb[201].mxu0 }
 0x75d   :  { %v4260_v13 = vpop.f32.mrb[202].mxu0 }
 0x75e   :  { %v5899_v8 = vadd.f32 %v7548_v29, %v4260_v13  ;;  %v4611_v36 = vadd.f32 %v5898_v31, %v7523_v32  ;;  %v4262_v54 = vpop.f32.mrb[203].mxu0  ;;  %v6827_v31 = vld [vmem:[#allocation2 + $0x620] ss:$20 sps:$4 sm:$0xff]  }
 0x760   :  { %4869 = vst [vmem:[#allocation10 + $0xa0] sm:$0xff] %v4611_v36  ;;  %v4614_v55 = vadd.f32 %v5899_v8, %v7527_v48  ;;  %4472 = vmatmul.mubr.bf16.gmra.mrb[52].mxu0 %v6823_v52  ;;  %v6826_v48 = vld [vmem:[#allocation2 + $0x624] ss:$20 sps:$4 sm:$0xff]  }
 0x761   :  { %4479 = vmatprep.mubr.bf16.mxu0 %v6824_v33 }
 0x762   :  { %4870 = vst [vmem:[#allocation10 + $0xa8] sm:$0xff] %v4614_v55 }
 0x763   :  { %v4265_v28 = vpop.f32.mrb[204].mxu0 }
 0x764   :  { %v5900_v20 = vadd.f32 %v7548_v29, %v4265_v28  ;;  %v4267_v3 = vpop.f32.mrb[205].mxu0 }
 0x765   :  { %v4268_v56 = vpop.f32.mrb[206].mxu0 }
 0x766   :  { %v4619_v32 = vadd.f32 %v5900_v20, %v7521_v45  ;;  %v5901_v14 = vadd.f32 %v7548_v29, %v4268_v56  ;;  %v4270_v0 = vpop.f32.mrb[207].mxu0 }
 0x768   :  { %4871 = vst [vmem:[#allocation10 + $0xb0] sm:$0xff] %v4619_v32  ;;  %v4622_v1 = vadd.f32 %v5901_v14, %v7525_v43  ;;  %4480 = vmatmul.mubr.bf16.gmra.mrb[56].mxu0 %v6825_v24  ;;  %v7653_v43 = vpop.f32.mrb[42].mxu1 }
 0x769   :  { %4487 = vmatprep.mubr.bf16.mxu0 %v6826_v48  ;;  %v7655_v57 = vpop.f32.mrb[43].mxu1 }
 0x76a   :  { %4872 = vst [vmem:[#allocation10 + $0xb8] sm:$0xff] %v4622_v1  ;;  %v7663_v20 = vpop.f32.mrb[44].mxu1 }
 0x76b   :  { %v4273_v60 = vpop.f32.mrb[208].mxu0  ;;  %v7665_v56 = vpop.f32.mrb[45].mxu1 }
 0x76c   :  { %v5902_v6 = vadd.f32 %v7548_v29, %v4273_v60  ;;  %v4275_v37 = vpop.f32.mrb[209].mxu0  ;;  %v7669_v0 = vpop.f32.mrb[46].mxu1 }
 0x76d   :  { %v4276_v51 = vpop.f32.mrb[210].mxu0  ;;  %v7671_v1 = vpop.f32.mrb[47].mxu1 }
 0x76e   :  { %v5903_v45 = vadd.f32 %v7548_v29, %v4276_v51  ;;  %v4627_v26 = vadd.f32 %v5902_v6, %v7531_v16  ;;  %v4278_v30 = vpop.f32.mrb[211].mxu0 }
 0x770   :  { %4873 = vst [vmem:[#allocation10 + $0xc0] sm:$0xff] %v4627_v26  ;;  %v4630_v49 = vadd.f32 %v5903_v45, %v7535_v23  ;;  %4488 = vmatmul.mubr.bf16.gmra.mrb[60].mxu0 %v6827_v31 }
 0x772   :  { %4874 = vst [vmem:[#allocation10 + $0xc8] sm:$0xff] %v4630_v49 }
 0x773   :  { %v4281_v46 = vpop.f32.mrb[212].mxu0 }
 0x774   :  { %v5904_v13 = vadd.f32 %v7548_v29, %v4281_v46  ;;  %v4283_v8 = vpop.f32.mrb[213].mxu0 }
 0x775   :  { %v4284_v36 = vpop.f32.mrb[214].mxu0 }
 0x776   :  { %v4635_v54 = vadd.f32 %v5904_v13, %v7529_v63  ;;  %v5905_v16 = vadd.f32 %v7548_v29, %v4284_v36  ;;  %v4286_v55 = vpop.f32.mrb[215].mxu0 }
 0x778   :  { %4875 = vst [vmem:[#allocation10 + $0xd0] sm:$0xff] %v4635_v54  ;;  %v4638_v52 = vadd.f32 %v5905_v16, %v7533_v62 }
 0x77a   :  { %4876 = vst [vmem:[#allocation10 + $0xd8] sm:$0xff] %v4638_v52 }
 0x77b   :  { %v4289_v33 = vpop.f32.mrb[216].mxu0 }
 0x77c   :  { %v5906_v23 = vadd.f32 %v7548_v29, %v4289_v33  ;;  %v4291_v28 = vpop.f32.mrb[217].mxu0 }
 0x77d   :  { %v4292_v3 = vpop.f32.mrb[218].mxu0 }
 0x77e   :  { %v5907_v32 = vadd.f32 %v7548_v29, %v4292_v3  ;;  %v4643_v63 = vadd.f32 %v5906_v23, %v7539_v42  ;;  %v4294_v14 = vpop.f32.mrb[219].mxu0 }
 0x780   :  { %4877 = vst [vmem:[#allocation10 + $0xe0] sm:$0xff] %v4643_v63  ;;  %v4646_v62 = vadd.f32 %v5907_v32, %v7543_v2  ;;  %v7679_v2 = vpop.f32.mrb[48].mxu1 }
 0x781   :  { %v7681_v46 = vpop.f32.mrb[49].mxu1 }
 0x782   :  { %4878 = vst [vmem:[#allocation10 + $0xe8] sm:$0xff] %v4646_v62  ;;  %v7685_v36 = vpop.f32.mrb[50].mxu1 }
 0x783   :  { %v4297_v24 = vpop.f32.mrb[220].mxu0  ;;  %v7687_v54 = vpop.f32.mrb[51].mxu1 }
 0x784   :  { %v5908_v48 = vadd.f32 %v7548_v29, %v4297_v24  ;;  %v4299_v60 = vpop.f32.mrb[221].mxu0 }
 0x785   :  { %v4300_v6 = vpop.f32.mrb[222].mxu0 }
 0x786   :  { %v4651_v37 = vadd.f32 %v5908_v48, %v7537_v4  ;;  %v5909_v51 = vadd.f32 %v7548_v29, %v4300_v6  ;;  %v4302_v45 = vpop.f32.mrb[223].mxu0 }
 0x788   :  { %4879 = vst [vmem:[#allocation10 + $0xf0] sm:$0xff] %v4651_v37  ;;  %v4654_v42 = vadd.f32 %v5909_v51, %v7541_v44 }
 0x78a   :  { %4880 = vst [vmem:[#allocation10 + $0xf8] sm:$0xff] %v4654_v42 }
 0x78b   :  { %v4305_v26 = vpop.f32.mrb[224].mxu0 }
 0x78c   :  { %v5910_v30 = vadd.f32 %v7548_v29, %v4305_v26  ;;  %v4307_v49 = vpop.f32.mrb[225].mxu0 }
 0x78d   :  { %v4308_v31 = vpop.f32.mrb[226].mxu0 }
 0x78e   :  { %v5911_v13 = vadd.f32 %v7548_v29, %v4308_v31  ;;  %v4659_v4 = vadd.f32 %v5910_v30, %v7553_v53  ;;  %v4310_v8 = vpop.f32.mrb[227].mxu0 }
 0x790   :  { %4881 = vst [vmem:[#allocation10 + $0x100] sm:$0xff] %v4659_v4  ;;  %v4662_v44 = vadd.f32 %v5911_v13, %v7559_v58  ;;  %v7695_v58 = vpop.f32.mrb[52].mxu1 }
 0x791   :  { %v7697_v24 = vpop.f32.mrb[53].mxu1 }
 0x792   :  { %4882 = vst [vmem:[#allocation10 + $0x108] sm:$0xff] %v4662_v44  ;;  %v7701_v6 = vpop.f32.mrb[54].mxu1 }
 0x793   :  { %v4313_v16 = vpop.f32.mrb[228].mxu0  ;;  %v7703_v37 = vpop.f32.mrb[55].mxu1 }
 0x794   :  { %v5912_v55 = vadd.f32 %v7548_v29, %v4313_v16  ;;  %v4315_v52 = vpop.f32.mrb[229].mxu0 }
 0x795   :  { %v4316_v33 = vpop.f32.mrb[230].mxu0 }
 0x796   :  { %v4667_v23 = vadd.f32 %v5912_v55, %v7551_v34  ;;  %v5913_v28 = vadd.f32 %v7548_v29, %v4316_v33  ;;  %v4318_v3 = vpop.f32.mrb[231].mxu0 }
 0x798   :  { %4883 = vst [vmem:[#allocation10 + $0x110] sm:$0xff] %v4667_v23  ;;  %v4670_v53 = vadd.f32 %v5913_v28, %v7557_v15 }
 0x79a   :  { %4884 = vst [vmem:[#allocation10 + $0x118] sm:$0xff] %v4670_v53 }
 0x79b   :  { %v4321_v32 = vpop.f32.mrb[232].mxu0 }
 0x79c   :  { %v5914_v63 = vadd.f32 %v7548_v29, %v4321_v32  ;;  %v4323_v14 = vpop.f32.mrb[233].mxu0 }
 0x79d   :  { %v4324_v62 = vpop.f32.mrb[234].mxu0 }
 0x79e   :  { %v5915_v48 = vadd.f32 %v7548_v29, %v4324_v62  ;;  %v4675_v34 = vadd.f32 %v5914_v63, %v7569_v19  ;;  %v4326_v60 = vpop.f32.mrb[235].mxu0 }
 0x7a0   :  { %4885 = vst [vmem:[#allocation10 + $0x120] sm:$0xff] %v4675_v34  ;;  %v4678_v15 = vadd.f32 %v5915_v48, %v7575_v61  ;;  %v7711_v61 = vpop.f32.mrb[56].mxu1 }
 0x7a1   :  { %v7713_v16 = vpop.f32.mrb[57].mxu1 }
 0x7a2   :  { %4886 = vst [vmem:[#allocation10 + $0x128] sm:$0xff] %v4678_v15  ;;  %v7717_v33 = vpop.f32.mrb[58].mxu1 }
 0x7a3   :  { %v4329_v51 = vpop.f32.mrb[236].mxu0  ;;  %v7719_v23 = vpop.f32.mrb[59].mxu1 }
 0x7a4   :  { %v5916_v45 = vadd.f32 %v7548_v29, %v4329_v51  ;;  %v4331_v42 = vpop.f32.mrb[237].mxu0 }
 0x7a5   :  { %v4332_v26 = vpop.f32.mrb[238].mxu0 }
 0x7a6   :  { %v4683_v30 = vadd.f32 %v5916_v45, %v7567_v10  ;;  %v5917_v49 = vadd.f32 %v7548_v29, %v4332_v26  ;;  %v4334_v31 = vpop.f32.mrb[239].mxu0 }
 0x7a8   :  { %4887 = vst [vmem:[#allocation10 + $0x130] sm:$0xff] %v4683_v30  ;;  %v4686_v19 = vadd.f32 %v5917_v49, %v7573_v11 }
 0x7aa   :  { %4888 = vst [vmem:[#allocation10 + $0x138] sm:$0xff] %v4686_v19 }
 0x7ab   :  { %v4337_v13 = vpop.f32.mrb[240].mxu0 }
 0x7ac   :  { %v5918_v4 = vadd.f32 %v7548_v29, %v4337_v13  ;;  %v4339_v8 = vpop.f32.mrb[241].mxu0 }
 0x7ad   :  { %v4340_v44 = vpop.f32.mrb[242].mxu0 }
 0x7ae   :  { %v5919_v55 = vadd.f32 %v7548_v29, %v4340_v44  ;;  %v4691_v10 = vadd.f32 %v5918_v4, %v7585_v5  ;;  %v4342_v52 = vpop.f32.mrb[243].mxu0 }
 0x7b0   :  { %4889 = vst [vmem:[#allocation10 + $0x140] sm:$0xff] %v4691_v10  ;;  %v4694_v11 = vadd.f32 %v5919_v55, %v7591_v9  ;;  %v7727_v9 = vpop.f32.mrb[60].mxu1 }
 0x7b1   :  { %v7729_v51 = vpop.f32.mrb[61].mxu1 }
 0x7b2   :  { %4890 = vst [vmem:[#allocation10 + $0x148] sm:$0xff] %v4694_v11  ;;  %v7733_v26 = vpop.f32.mrb[62].mxu1 }
 0x7b3   :  { %v4345_v28 = vpop.f32.mrb[244].mxu0  ;;  %v7735_v30 = vpop.f32.mrb[63].mxu1 }
 0x7b4   :  { %v5920_v3 = vadd.f32 %v7548_v29, %v4345_v28  ;;  %v4347_v53 = vpop.f32.mrb[245].mxu0 }
 0x7b5   :  { %v4348_v32 = vpop.f32.mrb[246].mxu0 }
 0x7b6   :  { %v4699_v63 = vadd.f32 %v5920_v3, %v7583_v38  ;;  %v5921_v14 = vadd.f32 %v7548_v29, %v4348_v32  ;;  %v4350_v62 = vpop.f32.mrb[247].mxu0 }
 0x7b8   :  { %4891 = vst [vmem:[#allocation10 + $0x150] sm:$0xff] %v4699_v63  ;;  %v4702_v5 = vadd.f32 %v5921_v14, %v7589_v17 }
 0x7ba   :  { %4892 = vst [vmem:[#allocation10 + $0x158] sm:$0xff] %v4702_v5 }
 0x7bb   :  { %v4353_v48 = vpop.f32.mrb[248].mxu0 }
 0x7bc   :  { %v5922_v34 = vadd.f32 %v7548_v29, %v4353_v48  ;;  %v4355_v60 = vpop.f32.mrb[249].mxu0 }
 0x7bd   :  { %v4356_v15 = vpop.f32.mrb[250].mxu0 }
 0x7be   :  { %v5923_v45 = vadd.f32 %v7548_v29, %v4356_v15  ;;  %v4707_v38 = vadd.f32 %v5922_v34, %v7601_v27  ;;  %v4358_v42 = vpop.f32.mrb[251].mxu0 }
 0x7c0   :  { %4893 = vst [vmem:[#allocation10 + $0x160] sm:$0xff] %v4707_v38  ;;  %v4710_v17 = vadd.f32 %v5923_v45, %v7607_v22 }
 0x7c2   :  { %4894 = vst [vmem:[#allocation10 + $0x168] sm:$0xff] %v4710_v17 }
 0x7c3   :  { %v4361_v49 = vpop.f32.mrb[252].mxu0 }
 0x7c4   :  { %v5924_v31 = vadd.f32 %v7548_v29, %v4361_v49  ;;  %v4363_v19 = vpop.f32.mrb[253].mxu0 }
 0x7c5   :  { %v4364_v13 = vpop.f32.mrb[254].mxu0 }
 0x7c6   :  { %v4715_v4 = vadd.f32 %v5924_v31, %v7599_v7  ;;  %v5925_v8 = vadd.f32 %v7548_v29, %v4364_v13  ;;  %v4366_v44 = vpop.f32.mrb[255].mxu0 }
 0x7c8   :  { %4895 = vst [vmem:[#allocation10 + $0x170] sm:$0xff] %v4715_v4  ;;  %v4718_v27 = vadd.f32 %v5925_v8, %v7605_v35 }
 0x7ca   :  { %4896 = vst [vmem:[#allocation10 + $0x178] sm:$0xff] %v4718_v27 }
 0x7cb   :  { %v4369_v55 = vpop.f32.mrb[0].mxu0 }
 0x7cc   :  { %v5926_v22 = vadd.f32 %v7548_v29, %v4369_v55  ;;  %v4371_v10 = vpop.f32.mrb[1].mxu0 }
 0x7cd   :  { %6927 = shalt.err (!%p6924_p8)
}
 0x7ce   :  { %s6928_s13 = scalar_lea.hbm %s7843_s7, 10240 }
 0x7cf   :  { %p6929_p9 = scmp.ne.s32.totalorder %s7843_s7, %s6928_s13  ;;  %p6932_p10 = scmp.lt.u32.totalorder %s6928_s13, %s7843_s7 }
 0x7d1   :  { %p6934_p11 = pnand %p6932_p10, %p6929_p9 }
 0x7d3   :  { %6937 = shalt.err (!%p6934_p11)
}
 0x7d4   :  { %s6980_s0 = smov 128   ;;  %s6981_s16 = smov 8   ;;  %v4372_v7 = vpop.f32.mrb[2].mxu0  ;;  %v4723_v52 = vadd.f32 %v5926_v22, %v7617_v21 }
 0x7d5   :  { %4952 = dma.vmem_to_hbm [thread:$0]  %s4947_s30, 10240, %s7843_s7, [#allocation12], %s6980_s0, %s6980_s0, %s6981_s16   ;;  %v5927_v35 = vadd.f32 %v7548_v29, %v4372_v7  ;;  %v4374_v11 = vpop.f32.mrb[3].mxu0 }
 0x7d6   :  { %4897 = vst [vmem:[#allocation10 + $0x180] sm:$0xff] %v4723_v52  ;;  %v4377_v3 = vpop.f32.mrb[4].mxu0  ;;  %s6982_s7 = smov [#allocation10]  }
 0x7d7   :  { %v4726_v28 = vadd.f32 %v5927_v35, %v7623_v41  ;;  %v5928_v53 = vadd.f32 %v7548_v29, %v4377_v3  ;;  %v4379_v32 = vpop.f32.mrb[5].mxu0  ;;  %s4934_s21 = sshll.u32 %s6982_s7, 4  ;;  %s4935_s21 = int_to_ptr.vmem [resolvable:$true] %s4934_s21 }
 0x7d8   :  { %v4380_v63 = vpop.f32.mrb[6].mxu0  ;;  %s6938_s22 = scalar_lea.vmem %s4935_s21, 10240  ;;  %p6943_p13 = scmp.lt.s32.totalorder %s4935_s21, %s4935_s21 }
 0x7d9   :  { %4898 = vst [vmem:[#allocation10 + $0x188] sm:$0xff] %v4726_v28  ;;  %v4731_v14 = vadd.f32 %v5928_v53, %v7615_v50  ;;  %v5929_v62 = vadd.f32 %v7548_v29, %v4380_v63  ;;  %v4382_v5 = vpop.f32.mrb[7].mxu0  ;;  %p6939_p12 = scmp.ne.s32.totalorder %s4935_s21, %s6938_s22  ;;  %p6944_p0 = scmp.lt.s32.totalorder %s6938_s22, %s6938_s22 }
 0x7db   :  { %4899 = vst [vmem:[#allocation10 + $0x190] sm:$0xff] %v4731_v14  ;;  %v4734_v48 = vadd.f32 %v5929_v62, %v7621_v40  ;;  %v4385_v21 = vpop.f32.mrb[8].mxu0  ;;  %p6945_p1 = por %p6944_p0, %p6943_p13 }
 0x7dc   :  { %v5930_v34 = vadd.f32 %v7548_v29, %v4385_v21  ;;  %v4387_v60 = vpop.f32.mrb[9].mxu0 }
 0x7dd   :  { %4900 = vst [vmem:[#allocation10 + $0x198] sm:$0xff] %v4734_v48  ;;  %v4388_v41 = vpop.f32.mrb[10].mxu0  ;;  %p6946_p2 = pnand %p6945_p1, %p6939_p12 }
 0x7de   :  { %v5931_v15 = vadd.f32 %v7548_v29, %v4388_v41  ;;  %v4739_v45 = vadd.f32 %v5930_v34, %v7633_v12  ;;  %v4390_v38 = vpop.f32.mrb[11].mxu0 }
 0x7e0   :  { %4901 = vst [vmem:[#allocation10 + $0x1a0] sm:$0xff] %v4739_v45  ;;  %v4742_v50 = vadd.f32 %v5931_v15, %v7639_v47 }
 0x7e2   :  { %4902 = vst [vmem:[#allocation10 + $0x1a8] sm:$0xff] %v4742_v50 }
 0x7e3   :  { %v4393_v42 = vpop.f32.mrb[12].mxu0 }
 0x7e4   :  { %v5932_v17 = vadd.f32 %v7548_v29, %v4393_v42  ;;  %v4395_v49 = vpop.f32.mrb[13].mxu0 }
 0x7e5   :  { %v4396_v40 = vpop.f32.mrb[14].mxu0 }
 0x7e6   :  { %v4747_v31 = vadd.f32 %v5932_v17, %v7631_v59  ;;  %v5933_v19 = vadd.f32 %v7548_v29, %v4396_v40  ;;  %v4398_v13 = vpop.f32.mrb[15].mxu0 }
 0x7e8   :  { %4903 = vst [vmem:[#allocation10 + $0x1b0] sm:$0xff] %v4747_v31  ;;  %v4750_v4 = vadd.f32 %v5933_v19, %v7637_v39 }
 0x7ea   :  { %4904 = vst [vmem:[#allocation10 + $0x1b8] sm:$0xff] %v4750_v4 }
 0x7eb   :  { %v4401_v12 = vpop.f32.mrb[16].mxu0 }
 0x7ec   :  { %v5934_v8 = vadd.f32 %v7548_v29, %v4401_v12  ;;  %v4403_v44 = vpop.f32.mrb[17].mxu0 }
 0x7ed   :  { %v4404_v47 = vpop.f32.mrb[18].mxu0 }
 0x7ee   :  { %v5935_v27 = vadd.f32 %v7548_v29, %v4404_v47  ;;  %v4755_v55 = vadd.f32 %v5934_v8, %v7649_v25  ;;  %v4406_v22 = vpop.f32.mrb[19].mxu0 }
 0x7f0   :  { %4905 = vst [vmem:[#allocation10 + $0x1c0] sm:$0xff] %v4755_v55  ;;  %v4758_v59 = vadd.f32 %v5935_v27, %v7655_v57 }
 0x7f2   :  { %4906 = vst [vmem:[#allocation10 + $0x1c8] sm:$0xff] %v4758_v59 }
 0x7f3   :  { %v4409_v10 = vpop.f32.mrb[20].mxu0 }
 0x7f4   :  { %v5936_v7 = vadd.f32 %v7548_v29, %v4409_v10  ;;  %v4411_v35 = vpop.f32.mrb[21].mxu0 }
 0x7f5   :  { %v4412_v39 = vpop.f32.mrb[22].mxu0 }
 0x7f6   :  { %v4763_v52 = vadd.f32 %v5936_v7, %v7647_v18  ;;  %v5937_v11 = vadd.f32 %v7548_v29, %v4412_v39  ;;  %v4414_v28 = vpop.f32.mrb[23].mxu0 }
 0x7f8   :  { %4907 = vst [vmem:[#allocation10 + $0x1d0] sm:$0xff] %v4763_v52  ;;  %v4766_v3 = vadd.f32 %v5937_v11, %v7653_v43 }
 0x7fa   :  { %4908 = vst [vmem:[#allocation10 + $0x1d8] sm:$0xff] %v4766_v3 }
 0x7fb   :  { %v4417_v25 = vpop.f32.mrb[24].mxu0 }
 0x7fc   :  { %v5938_v53 = vadd.f32 %v7548_v29, %v4417_v25  ;;  %v4419_v32 = vpop.f32.mrb[25].mxu0 }
 0x7fd   :  { %v4420_v57 = vpop.f32.mrb[26].mxu0 }
 0x7fe   :  { %v5939_v63 = vadd.f32 %v7548_v29, %v4420_v57  ;;  %v4771_v14 = vadd.f32 %v5938_v53, %v7665_v56  ;;  %v4422_v62 = vpop.f32.mrb[27].mxu0 }
 0x800   :  { %4909 = vst [vmem:[#allocation10 + $0x1e0] sm:$0xff] %v4771_v14  ;;  %v4774_v18 = vadd.f32 %v5939_v63, %v7671_v1 }
 0x802   :  { %4910 = vst [vmem:[#allocation10 + $0x1e8] sm:$0xff] %v4774_v18 }
 0x803   :  { %v4425_v5 = vpop.f32.mrb[28].mxu0 }
 0x804   :  { %v5940_v48 = vadd.f32 %v7548_v29, %v4425_v5  ;;  %v4427_v21 = vpop.f32.mrb[29].mxu0 }
 0x805   :  { %v4428_v43 = vpop.f32.mrb[30].mxu0 }
 0x806   :  { %v4779_v34 = vadd.f32 %v5940_v48, %v7663_v20  ;;  %v5941_v60 = vadd.f32 %v7548_v29, %v4428_v43  ;;  %v4430_v41 = vpop.f32.mrb[31].mxu0 }
 0x808   :  { %4911 = vst [vmem:[#allocation10 + $0x1f0] sm:$0xff] %v4779_v34  ;;  %v4782_v15 = vadd.f32 %v5941_v60, %v7669_v0 }
 0x80a   :  { %4912 = vst [vmem:[#allocation10 + $0x1f8] sm:$0xff] %v4782_v15 }
 0x80b   :  { %v4433_v56 = vpop.f32.mrb[32].mxu0 }
 0x80c   :  { %v5942_v45 = vadd.f32 %v7548_v29, %v4433_v56  ;;  %v4435_v38 = vpop.f32.mrb[33].mxu0 }
 0x80d   :  { %v4436_v1 = vpop.f32.mrb[34].mxu0 }
 0x80e   :  { %v5943_v50 = vadd.f32 %v7548_v29, %v4436_v1  ;;  %v4787_v42 = vadd.f32 %v5942_v45, %v7681_v46  ;;  %v4438_v17 = vpop.f32.mrb[35].mxu0 }
 0x810   :  { %4913 = vst [vmem:[#allocation10 + $0x200] sm:$0xff] %v4787_v42  ;;  %v4790_v20 = vadd.f32 %v5943_v50, %v7687_v54 }
 0x812   :  { %4914 = vst [vmem:[#allocation10 + $0x208] sm:$0xff] %v4790_v20 }
 0x813   :  { %v4441_v49 = vpop.f32.mrb[36].mxu0 }
 0x814   :  { %v5944_v40 = vadd.f32 %v7548_v29, %v4441_v49  ;;  %v4443_v31 = vpop.f32.mrb[37].mxu0 }
 0x815   :  { %v4444_v0 = vpop.f32.mrb[38].mxu0 }
 0x816   :  { %v4795_v19 = vadd.f32 %v5944_v40, %v7679_v2  ;;  %v5945_v13 = vadd.f32 %v7548_v29, %v4444_v0  ;;  %v4446_v4 = vpop.f32.mrb[39].mxu0 }
 0x818   :  { %4915 = vst [vmem:[#allocation10 + $0x210] sm:$0xff] %v4795_v19  ;;  %v4798_v12 = vadd.f32 %v5945_v13, %v7685_v36 }
 0x81a   :  { %4916 = vst [vmem:[#allocation10 + $0x218] sm:$0xff] %v4798_v12 }
 0x81b   :  { %v4449_v46 = vpop.f32.mrb[40].mxu0 }
 0x81c   :  { %v5946_v8 = vadd.f32 %v7548_v29, %v4449_v46  ;;  %v4451_v44 = vpop.f32.mrb[41].mxu0 }
 0x81d   :  { %v4452_v54 = vpop.f32.mrb[42].mxu0 }
 0x81e   :  { %v5947_v47 = vadd.f32 %v7548_v29, %v4452_v54  ;;  %v4803_v27 = vadd.f32 %v5946_v8, %v7697_v24  ;;  %v4454_v55 = vpop.f32.mrb[43].mxu0 }
 0x820   :  { %4917 = vst [vmem:[#allocation10 + $0x220] sm:$0xff] %v4803_v27  ;;  %v4806_v2 = vadd.f32 %v5947_v47, %v7703_v37 }
 0x822   :  { %4918 = vst [vmem:[#allocation10 + $0x228] sm:$0xff] %v4806_v2 }
 0x823   :  { %v4457_v22 = vpop.f32.mrb[44].mxu0 }
 0x824   :  { %v5948_v59 = vadd.f32 %v7548_v29, %v4457_v22  ;;  %v4459_v10 = vpop.f32.mrb[45].mxu0 }
 0x825   :  { %v4460_v36 = vpop.f32.mrb[46].mxu0 }
 0x826   :  { %v4811_v7 = vadd.f32 %v5948_v59, %v7695_v58  ;;  %v5949_v35 = vadd.f32 %v7548_v29, %v4460_v36  ;;  %v4462_v39 = vpop.f32.mrb[47].mxu0 }
 0x828   :  { %4919 = vst [vmem:[#allocation10 + $0x230] sm:$0xff] %v4811_v7  ;;  %v4814_v52 = vadd.f32 %v5949_v35, %v7701_v6 }
 0x82a   :  { %4920 = vst [vmem:[#allocation10 + $0x238] sm:$0xff] %v4814_v52 }
 0x82b   :  { %v4465_v24 = vpop.f32.mrb[48].mxu0 }
 0x82c   :  { %v5950_v11 = vadd.f32 %v7548_v29, %v4465_v24  ;;  %v4467_v28 = vpop.f32.mrb[49].mxu0 }
 0x82d   :  { %v4468_v37 = vpop.f32.mrb[50].mxu0 }
 0x82e   :  { %v5951_v3 = vadd.f32 %v7548_v29, %v4468_v37  ;;  %v4819_v25 = vadd.f32 %v5950_v11, %v7713_v16  ;;  %v4470_v53 = vpop.f32.mrb[51].mxu0 }
 0x830   :  { %4921 = vst [vmem:[#allocation10 + $0x240] sm:$0xff] %v4819_v25  ;;  %v4822_v58 = vadd.f32 %v5951_v3, %v7719_v23 }
 0x832   :  { %4922 = vst [vmem:[#allocation10 + $0x248] sm:$0xff] %v4822_v58 }
 0x833   :  { %v4473_v32 = vpop.f32.mrb[52].mxu0 }
 0x834   :  { %v5952_v57 = vadd.f32 %v7548_v29, %v4473_v32  ;;  %v4475_v63 = vpop.f32.mrb[53].mxu0 }
 0x835   :  { %v4476_v6 = vpop.f32.mrb[54].mxu0 }
 0x836   :  { %v4827_v14 = vadd.f32 %v5952_v57, %v7711_v61  ;;  %v5953_v62 = vadd.f32 %v7548_v29, %v4476_v6  ;;  %v4478_v18 = vpop.f32.mrb[55].mxu0 }
 0x838   :  { %4923 = vst [vmem:[#allocation10 + $0x250] sm:$0xff] %v4827_v14  ;;  %v4830_v5 = vadd.f32 %v5953_v62, %v7717_v33 }
 0x83a   :  { %4924 = vst [vmem:[#allocation10 + $0x258] sm:$0xff] %v4830_v5 }
 0x83b   :  { %v4481_v16 = vpop.f32.mrb[56].mxu0 }
 0x83c   :  { %v5954_v48 = vadd.f32 %v7548_v29, %v4481_v16  ;;  %v4483_v21 = vpop.f32.mrb[57].mxu0 }
 0x83d   :  { %v4484_v23 = vpop.f32.mrb[58].mxu0 }
 0x83e   :  { %v5955_v43 = vadd.f32 %v7548_v29, %v4484_v23  ;;  %v4835_v34 = vadd.f32 %v5954_v48, %v7729_v51  ;;  %v4486_v60 = vpop.f32.mrb[59].mxu0 }
 0x840   :  { %4925 = vst [vmem:[#allocation10 + $0x260] sm:$0xff] %v4835_v34  ;;  %v4838_v61 = vadd.f32 %v5955_v43, %v7735_v30 }
 0x842   :  { %4926 = vst [vmem:[#allocation10 + $0x268] sm:$0xff] %v4838_v61 }
 0x843   :  { %v4489_v41 = vpop.f32.mrb[60].mxu0 }
 0x844   :  { %v5956_v15 = vadd.f32 %v7548_v29, %v4489_v41  ;;  %v4491_v56 = vpop.f32.mrb[61].mxu0 }
 0x845   :  { %v4492_v33 = vpop.f32.mrb[62].mxu0 }
 0x846   :  { %v4843_v45 = vadd.f32 %v5956_v15, %v7727_v9  ;;  %v5957_v38 = vadd.f32 %v7548_v29, %v4492_v33  ;;  %v4494_v1 = vpop.f32.mrb[63].mxu0 }
 0x848   :  { %4927 = vst [vmem:[#allocation10 + $0x270] sm:$0xff] %v4843_v45  ;;  %v4846_v51 = vadd.f32 %v5957_v38, %v7733_v26 }
 0x84a   :  { %4928 = vst [vmem:[#allocation10 + $0x278] sm:$0xff] %v4846_v51 }
 0x84b   :  { %6949 = shalt.err (!%p6946_p2)
}
 0x84c   :  { %s6950_s1 = scalar_lea.hbm %s7842_s6, 10240 }
 0x84d   :  { %p6951_p3 = scmp.ne.s32.totalorder %s7842_s6, %s6950_s1  ;;  %p6954_p4 = scmp.lt.u32.totalorder %s6950_s1, %s7842_s6 }
 0x84f   :  { %p6956_p5 = pnand %p6954_p4, %p6951_p3 }
 0x851   :  { %6959 = shalt.err (!%p6956_p5)
}
 0x852   :  { %4940 = dma.vmem_to_hbm [thread:$0]  %s4935_s21, 10240, %s7842_s6, [#allocation4], %s6980_s0, %s6980_s0, %s6981_s16  }
 0x853   :  { %6966 = dma.done.wait [#allocation4], 10240  }
 0x854   :  { %6967 = vsyncadd [#allocation4], 4294957056 }
 0x855   :  { %6968 = dma.done.wait [#allocation12], 10240  }
 0x856   :  { %6969 = vsyncadd [#allocation12], 4294957056 }
 0x857   :  { %4959 = vsyncpa [#allocation3], 1 }
 0x858   :  { %4960 = vsyncpa [#allocation6], 1 }
 0x859   :  { %4961 = vsyncpa [#allocation9], 1 }
 0x85a   :  { %4962 = vsyncpa [#allocation4], 1 }
 0x85b   :  { %4963 = vsyncpa [#allocation12], 1 }

</bundles_post_ra>
